<compile_context>
chip_gen: v5e
topology: v5e:2x2
jax: 0.10.0
libtpu: 0.0.40
codegen_flags: <defaults>
</compile_context>

<pallas_src>
import functools
import math

import jax
import jax.numpy as jnp
import numpy as np
from jax import lax
from jax.experimental import pallas as pl
from jax.experimental.pallas import tpu as pltpu

# Not binding at current tile sizes (a few MiB per call); gate by generation
# (pltpu.get_tpu_info) before growing tiles past ~512 on v7x (64 MiB VMEM).
_VMEM_LIMIT = 32 * 1024 * 1024


def _pick_tile(dim, max_tile=512, base=128):
    """Largest multiple-of-`base` divisor of `dim` that is <= max_tile.

    Falls back to the full dim when `dim` is not a multiple of `base` (a
    full-extent block is always legal)."""
    if dim % base != 0:
        return dim
    best = base
    t = base
    while t <= min(dim, max_tile):
        if dim % t == 0:
            best = t
        t += base
    return best


def _nbytes(*arrays):
    return int(sum(int(a.size) * a.dtype.itemsize for a in arrays))


# ------------------------------ linear kernel -------------------------------
# Shared by the qkv projection and the output projection:
#   x:(B,T,K) @ w:(K,N) + b:(1,N) -> (B,T,N)
# grid (B, T/tm, N/tn, K/tk), reduction axis last ("arbitrary"), f32 VMEM acc.

def _linear_kernel(x_ref, w_ref, b_ref, o_ref, acc_ref):
    kk = pl.program_id(3)

    @pl.when(kk == 0)
    def _():
        acc_ref[...] = jnp.zeros_like(acc_ref)

    acc_ref[...] += jnp.dot(x_ref[0], w_ref[...],
                            preferred_element_type=jnp.float32)

    @pl.when(kk == pl.num_programs(3) - 1)
    def _():
        o_ref[0] = (acc_ref[...] + b_ref[...]).astype(o_ref.dtype)


def _linear(x, w, b, *, out_dtype=None):
    B, T, K = x.shape
    N = w.shape[-1]
    tm = _pick_tile(T, 512)
    tn = _pick_tile(N, 512)
    tk = _pick_tile(K, 512)
    grid = (B, T // tm, N // tn, K // tk)
    out_dtype = out_dtype or x.dtype
    out_shape = jax.ShapeDtypeStruct((B, T, N), out_dtype)
    b2 = b.reshape(1, N)

    return pl.pallas_call(
        _linear_kernel,
        out_shape=out_shape,
        grid_spec=pltpu.PrefetchScalarGridSpec(
            num_scalar_prefetch=0,
            grid=grid,
            in_specs=[
                pl.BlockSpec((1, tm, tk), lambda bb, ti, ni, kk: (bb, ti, kk)),
                pl.BlockSpec((tk, tn), lambda bb, ti, ni, kk: (kk, ni)),
                pl.BlockSpec((1, tn), lambda bb, ti, ni, kk: (0, ni)),
            ],
            out_specs=pl.BlockSpec((1, tm, tn),
                                   lambda bb, ti, ni, kk: (bb, ti, ni)),
            scratch_shapes=[pltpu.VMEM((tm, tn), jnp.float32)],
        ),
        compiler_params=pltpu.CompilerParams(
            dimension_semantics=("parallel", "parallel", "parallel", "arbitrary"),
            vmem_limit_bytes=_VMEM_LIMIT,
        ),
        cost_estimate=pl.CostEstimate(
            flops=2 * B * T * K * N,
            transcendentals=0,
            bytes_accessed=_nbytes(x, w, b2)
            + B * T * N * jnp.dtype(out_dtype).itemsize,
        ),
    )(x, w, b2)


# ------------------------- flash attention kernel ---------------------------
# Reads q/k/v directly out of the (B,T,3C) qkv tensor (head split fused into
# the BlockSpec column-block index) and writes the head-merged (B,T,C) output
# directly (column block = head). Online softmax, causal block skipping.

def _flash_attn_kernel(q_ref, k_ref, v_ref, o_ref, m_sc, l_sc, acc_sc,
                       *, tq, tkv):
    qi = pl.program_id(2)
    ki = pl.program_id(3)

    @pl.when(ki == 0)
    def _():
        m_sc[...] = jnp.full_like(m_sc, -jnp.inf)
        l_sc[...] = jnp.zeros_like(l_sc)
        acc_sc[...] = jnp.zeros_like(acc_sc)

    # Skip kv blocks that lie entirely above the causal diagonal.
    @pl.when(ki * tkv <= qi * tq + (tq - 1))
    def _():
        q = q_ref[0]                       # (tq, hs)  bf16, 1/sqrt(hs) pre-folded
        k = k_ref[0]                       # (tkv, hs) bf16
        v = v_ref[0]                       # (tkv, hs) bf16

        # QK^T without materializing k.T: contract last dims, straight to MXU.
        s = lax.dot_general(q, k, dimension_numbers=(((1,), (1,)), ((), ())),
                            preferred_element_type=jnp.float32)      # (tq, tkv)

        row = qi * tq + lax.broadcasted_iota(jnp.int32, (tq, tkv), 0)
        col = ki * tkv + lax.broadcasted_iota(jnp.int32, (tq, tkv), 1)
        s = jnp.where(col <= row, s, -jnp.inf)

        m_prev = m_sc[...]
        m_new = jnp.maximum(m_prev, jnp.max(s, axis=-1, keepdims=True))
        alpha = jnp.exp(m_prev - m_new)
        p = jnp.exp(s - m_new)
        l_sc[...] = alpha * l_sc[...] + jnp.sum(p, axis=-1, keepdims=True)
        acc_sc[...] = alpha * acc_sc[...] + jnp.dot(
            p.astype(v.dtype), v, preferred_element_type=jnp.float32)
        m_sc[...] = m_new

    @pl.when(ki == pl.num_programs(3) - 1)
    def _():
        inv_l = pl.reciprocal(l_sc[...], approx=True)                # EUP slot
        o_ref[0] = (acc_sc[...] * inv_l).astype(o_ref.dtype)


def _flash_attention(qkv, n_head, hs):
    """qkv:(B,T,3C) -> (B,T,C), causal flash attention, heads merged in-kernel."""
    B, T, threeC = qkv.shape
    H = n_head
    C = H * hs
    assert threeC == 3 * C

    tq = _pick_tile(T, 256)
    tkv = _pick_tile(T, 256)
    nq, nkv = T // tq, T // tkv

    def q_map(b, h, qi, ki):
        return (b, qi, h)

    def _kv_map(which):
        def kv_map(b, h, qi, ki):
            # Clamp to the last block this q tile needs: skipped (masked) steps
            # re-request the same block index, so Pallas elides the DMA.
            last = (qi * tq + (tq - 1)) // tkv
            return (b, jnp.minimum(ki, last), which * H + h)
        return kv_map

    def o_map(b, h, qi, ki):
        return (b, qi, h)

    kernel = functools.partial(_flash_attn_kernel, tq=tq, tkv=tkv)
    out_shape = jax.ShapeDtypeStruct((B, T, C), qkv.dtype)

    return pl.pallas_call(
        kernel,
        out_shape=out_shape,
        grid_spec=pltpu.PrefetchScalarGridSpec(
            num_scalar_prefetch=0,
            grid=(B, H, nq, nkv),
            in_specs=[
                pl.BlockSpec((1, tq, hs), q_map),
                pl.BlockSpec((1, tkv, hs), _kv_map(1)),
                pl.BlockSpec((1, tkv, hs), _kv_map(2)),
            ],
            out_specs=pl.BlockSpec((1, tq, hs), o_map),
            scratch_shapes=[
                pltpu.VMEM((tq, 1), jnp.float32),    # running max m
                pltpu.VMEM((tq, 1), jnp.float32),    # running sum l
                pltpu.VMEM((tq, hs), jnp.float32),   # output accumulator
            ],
        ),
        compiler_params=pltpu.CompilerParams(
            dimension_semantics=("parallel", "parallel", "parallel", "arbitrary"),
            vmem_limit_bytes=_VMEM_LIMIT,
        ),
        cost_estimate=pl.CostEstimate(
            flops=2 * B * H * T * T * hs,            # QK^T + PV, ~halved (causal)
            transcendentals=B * H * T * T // 2,
            bytes_accessed=_nbytes(qkv)
            + int(np.prod(out_shape.shape)) * qkv.dtype.itemsize,
        ),
    )(qkv, qkv, qkv)


# --------------------------- Module forward pass ----------------------------

def causal_self_attention(x, params, n_head):
    """Forward pass of CausalSelfAttention (flash / is_causal=True path)."""
    B, T, C = x.shape
    assert C % n_head == 0
    hs = C // n_head
    # Fused (B,T,3C) head-split layout needs lane-aligned heads; for hs < 128
    # fall back to a head-grouped layout (not needed for this config).
    assert hs % 128 == 0, "head_size must be a multiple of 128"

    out_dtype = x.dtype
    scale = 1.0 / math.sqrt(hs)

    # Fold 1/sqrt(hs) into the q columns of the qkv weight/bias (free at
    # runtime), then cast MXU operands to bf16; biases stay f32 (added to the
    # f32 accumulator at finalize).
    col_scale = jnp.concatenate([jnp.full((C,), scale, jnp.float32),
                                 jnp.ones((2 * C,), jnp.float32)])
    w_qkv = (params["w_qkv"].astype(jnp.float32) * col_scale[None, :]
             ).astype(jnp.bfloat16)
    b_qkv = params["b_qkv"].astype(jnp.float32) * col_scale
    w_proj = params["w_proj"].astype(jnp.bfloat16)
    b_proj = params["b_proj"].astype(jnp.float32)
    x_bf16 = x.astype(jnp.bfloat16)

    qkv = _linear(x_bf16, w_qkv, b_qkv)                      # (B, T, 3C) bf16
    embd = _flash_attention(qkv, n_head, hs)                 # (B, T, C)  bf16
    out = _linear(embd, w_proj, b_proj, out_dtype=out_dtype)  # (B, T, C)

    # TODO(synk): attn_dropout / resid_dropout are training-time stochastic ops;
    # omitted here (eval semantics, dropout == identity).
    return out


# Pure-JAX f32 reference for correctness checking.
def _reference(x, params, n_head):
    B, T, C = x.shape
    hs = C // n_head
    qkv = x @ params["w_qkv"] + params["b_qkv"]
    q, k, v = jnp.split(qkv, 3, axis=-1)
    q = q.reshape(B, T, n_head, hs).transpose(0, 2, 1, 3)
    k = k.reshape(B, T, n_head, hs).transpose(0, 2, 1, 3)
    v = v.reshape(B, T, n_head, hs).transpose(0, 2, 1, 3)
    s = jnp.einsum("bhqd,bhkd->bhqk", q, k) / jnp.sqrt(hs)
    mask = jnp.tril(jnp.ones((T, T), dtype=bool))
    s = jnp.where(mask[None, None], s, -jnp.inf)
    p = jax.nn.softmax(s, axis=-1)
    e = jnp.einsum("bhqk,bhkd->bhqd", p, v)
    e = e.transpose(0, 2, 1, 3).reshape(B, T, C)
    return e @ params["w_proj"] + params["b_proj"]


# ----------------------------------- main ------------------------------------

if __name__ == "__main__":
    # Small-but-aligned config: hs = C / n_head = 128 (lane-aligned heads),
    # T=512 with 256-wide attention tiles exercises multi-block online softmax
    # and the causal block-skip path; C=384 exercises the 384-wide tn/tk tiles.
    B, T, C, n_head = 2, 512, 384, 3

    key = jax.random.PRNGKey(0)
    kx, kw1, kb1, kw2, kb2 = jax.random.split(key, 5)

    x = jax.random.normal(kx, (B, T, C), dtype=jnp.float32)

    params = {
        # main_weight_matrix: Linear(C, 3C) -> stored as (C, 3C)
        "w_qkv": jax.random.normal(kw1, (C, 3 * C), dtype=jnp.float32) * 0.02,
        "b_qkv": jax.random.normal(kb1, (3 * C,), dtype=jnp.float32) * 0.02,
        # proj: Linear(C, C) -> stored as (C, C)
        "w_proj": jax.random.normal(kw2, (C, C), dtype=jnp.float32) * 0.02,
        "b_proj": jax.random.normal(kb2, (C,), dtype=jnp.float32) * 0.02,
    }

    out = causal_self_attention(x, params, n_head)
    out = jax.block_until_ready(out)

    ref = _reference(x, params, n_head)
    # Tolerance accounts for bf16 MXU operands (f32 accumulation), the approx
    # EUP reciprocal, and tiled accumulation order.
    np.testing.assert_allclose(np.asarray(out, dtype=np.float32),
                               np.asarray(ref, dtype=np.float32),
                               atol=2e-2, rtol=2e-2)

    print("KERNEL_OK")
</pallas_src>

<mosaic_0001>
module attributes {stable_mosaic.version = 11 : i64} {
  func.func @_linear_kernel(%arg0: i32, %arg1: i32, %arg2: i32, %arg3: i32, %arg4: memref<1x512x384xbf16, #tpu.memory_space<vmem>>, %arg5: memref<384x384xbf16, #tpu.memory_space<vmem>>, %arg6: memref<1x384xf32, #tpu.memory_space<vmem>>, %arg7: memref<1x512x384xbf16, #tpu.memory_space<vmem>>, %arg8: memref<512x384xf32, #tpu.memory_space<vmem>>) attributes {dimension_semantics = [#tpu.dimension_semantics<parallel>, #tpu.dimension_semantics<parallel>, #tpu.dimension_semantics<parallel>, #tpu.dimension_semantics<arbitrary>], iteration_bounds = array<i64: 2, 1, 3, 1>, scalar_prefetch = 0 : i64, scratch_operands = 1 : i64, tpu.core_type = #tpu.core_type<tc>, window_params = [{transform_indices = @transform_0, window_bounds = array<i64: 1, 512, 384>}, {transform_indices = @transform_1, window_bounds = array<i64: 384, 384>}, {transform_indices = @transform_2, window_bounds = array<i64: 1, 384>}, {transform_indices = @transform_3, window_bounds = array<i64: 1, 512, 384>}]} {
    %c0_i32 = arith.constant 0 : i32
    %0 = arith.cmpi eq, %arg3, %c0_i32 : i32
    %1 = arith.extui %0 : i1 to i32
    %c0_i32_0 = arith.constant 0 : i32
    %2 = arith.cmpi ne, %1, %c0_i32_0 : i32
    scf.if %2 {
      %cst_11 = arith.constant 0.000000e+00 : f32
      %13 = vector.broadcast %cst_11 : f32 to vector<512x384xf32>
      %c0_12 = arith.constant 0 : index
      %c0_13 = arith.constant 0 : index
      %14 = vector.load %arg8[%c0_12, %c0_13] : memref<512x384xf32, #tpu.memory_space<vmem>>, vector<512x384xf32>
      tpu.vector_store %arg8[%c0_12, %c0_13], %13 {strides = array<i32>} : memref<512x384xf32, #tpu.memory_space<vmem>>, vector<512x384xf32>,
    } else {
    }
    %c0 = arith.constant 0 : index
    %c0_1 = arith.constant 0 : index
    %3 = vector.load %arg8[%c0, %c0_1] : memref<512x384xf32, #tpu.memory_space<vmem>>, vector<512x384xf32>
    %c0_2 = arith.constant 0 : index
    %c0_3 = arith.constant 0 : index
    %c0_4 = arith.constant 0 : index
    %4 = vector.load %arg4[%c0_2, %c0_3, %c0_4] : memref<1x512x384xbf16, #tpu.memory_space<vmem>>, vector<1x512x384xbf16>
    %5 = vector.shape_cast %4 : vector<1x512x384xbf16> to vector<512x384xbf16>
    %c0_5 = arith.constant 0 : index
    %c0_6 = arith.constant 0 : index
    %6 = vector.load %arg5[%c0_5, %c0_6] : memref<384x384xbf16, #tpu.memory_space<vmem>>, vector<384x384xbf16>
    %cst = arith.constant dense<0.000000e+00> : vector<512x384xf32>
    %7 = tpu.matmul %5, %6, %cst {dimension_numbers = #tpu.dot_dimension_numbers<[1], [0], [0], [1], [0, 0, 1, 1], [], []>} : vector<512x384xbf16>, vector<384x384xbf16>, vector<512x384xf32> -> vector<512x384xf32>
    %8 = arith.addf %3, %7 : vector<512x384xf32>
    %c0_7 = arith.constant 0 : index
    %c0_8 = arith.constant 0 : index
    %9 = vector.load %arg8[%c0_7, %c0_8] : memref<512x384xf32, #tpu.memory_space<vmem>>, vector<512x384xf32>
    tpu.vector_store %arg8[%c0_7, %c0_8], %8 {strides = array<i32>} : memref<512x384xf32, #tpu.memory_space<vmem>>, vector<512x384xf32>,
    %c0_i32_9 = arith.constant 0 : i32
    %10 = arith.cmpi eq, %arg3, %c0_i32_9 : i32
    %11 = arith.extui %10 : i1 to i32
    %c0_i32_10 = arith.constant 0 : i32
    %12 = arith.cmpi ne, %11, %c0_i32_10 : i32
    scf.if %12 {
      %c0_11 = arith.constant 0 : index
      %c0_12 = arith.constant 0 : index
      %13 = vector.load %arg8[%c0_11, %c0_12] : memref<512x384xf32, #tpu.memory_space<vmem>>, vector<512x384xf32>
      %c0_13 = arith.constant 0 : index
      %c0_14 = arith.constant 0 : index
      %14 = vector.load %arg6[%c0_13, %c0_14] : memref<1x384xf32, #tpu.memory_space<vmem>>, vector<1x384xf32>
      %15 = vector.broadcast %14 : vector<1x384xf32> to vector<512x384xf32>
      %16 = arith.addf %13, %15 : vector<512x384xf32>
      %17 = arith.truncf %16 : vector<512x384xf32> to vector<512x384xbf16>
      %c0_15 = arith.constant 0 : index
      %c0_16 = arith.constant 0 : index
      %c0_17 = arith.constant 0 : index
      %18 = vector.load %arg7[%c0_15, %c0_16, %c0_17] : memref<1x512x384xbf16, #tpu.memory_space<vmem>>, vector<1x512x384xbf16>
      %19 = vector.shape_cast %18 : vector<1x512x384xbf16> to vector<512x384xbf16>
      %20 = vector.shape_cast %17 : vector<512x384xbf16> to vector<1x512x384xbf16>
      tpu.vector_store %arg7[%c0_15, %c0_16, %c0_17], %20 {strides = array<i32>} : memref<1x512x384xbf16, #tpu.memory_space<vmem>>, vector<1x512x384xbf16>,
    } else {
    }
    return
  }
  func.func @transform_0(%arg0: i32, %arg1: i32, %arg2: i32, %arg3: i32) -> (i32, i32, i32) {
    %c0_i32 = arith.constant 0 : i32
    return %arg0, %arg1, %arg3 : i32, i32, i32
  }
  func.func @transform_1(%arg0: i32, %arg1: i32, %arg2: i32, %arg3: i32) -> (i32, i32) {
    %c0_i32 = arith.constant 0 : i32
    return %arg3, %arg2 : i32, i32
  }
  func.func @transform_2(%arg0: i32, %arg1: i32, %arg2: i32, %arg3: i32) -> (i32, i32) {
    %c0_i32 = arith.constant 0 : i32
    %c0_i32_0 = arith.constant 0 : i32
    return %c0_i32, %arg2 : i32, i32
  }
  func.func @transform_3(%arg0: i32, %arg1: i32, %arg2: i32, %arg3: i32) -> (i32, i32, i32) {
    %c0_i32 = arith.constant 0 : i32
    return %arg0, %arg1, %arg2 : i32, i32, i32
  }
}

</mosaic_0001>

<bundles_post_ra>
// kernel: tpu_custom_call.1
= control target key start
LH: loop header
LB: loop body
LE: loop exit
PB: predicated region body
PF: predicated region fallthrough
CT: control target
= control target key end

     0   :  { %s7861_s0 = inlined_call_operand.hbm [shape: bf16[2,512,384], index: 0, kind: input, shape index: {}]   ;;  %s7862_s1 = inlined_call_operand.hbm [shape: bf16[384,1152], index: 1, kind: input, shape index: {}]   ;;  %s7863_s2 = inlined_call_operand.hbm [shape: f32[1,1152], index: 2, kind: input, shape index: {}]   ;;  %s7864_s3 = inlined_call_operand.hbm [shape: bf16[2,512,1152], index: 3, kind: output, shape index: {}]  }
   0x1   :  { %8016 = sst [smem:[#allocation189_spill]] %s7861_s0 }
   0x2   :  { %8017 = sst [smem:[#allocation190_spill]] %s7862_s1 }
   0x3   :  { %8018 = sst [smem:[#allocation191_spill]] %s7864_s3 }
   0x4   :  { %8 = vsyncpa [#allocation4], 0 }
   0x5   :  { %10 = vsyncpa [#allocation4 + $0x1], 0 }
   0x6   :  { %11 = vsyncpa [#allocation7], 0 }
   0x7   :  { %13 = vsyncpa [#allocation7 + $0x1], 0 }
   0x8   :  { %14 = vsyncpa [#allocation5], 0 }
   0x9   :  { %16 = vsyncpa [#allocation5 + $0x1], 0  ;;  %s5845_s12 = smov 0   ;;  %s5847_s13 = smov 0  }
   0xa   :  { %s5849_s14 = smov 0   ;;  %s5851_s15 = smov 0  }
   0xb   :  { %s5853_s16 = smov 0   ;;  %s5855_s17 = smov 0  }
   0xc   :  { %s5857_s18 = smov 0   ;;  %s5859_s19 = smov 0  }
   0xd   :  { %s5861_s20 = smov 0   ;;  %s5863_s21 = smov 0  }
   0xe   :  { %s5865_s22 = smov 0   ;;  %s5867_s23 = smov 0  }
   0xf   :  { %s5869_s24 = smov 0   ;;  %s5871_s25 = smov 0  }
  0x10 LB: > { %8019 = sst [smem:[#allocation13_spill]] %s5765_s12  ;;  %s40_s26 = sadd.s32 1, %s5809_s23  ;;  %s5817_s25 = sphi %s5871_s25, %s22_s25   ;;  %s5813_s24 = sphi %s5869_s24, %s8488_s24   ;;  %s5809_s23 = sphi %s5867_s23, %s8498_s23   ;;  %s5805_s22 = sphi %s5865_s22, %s8486_s22   ;;  %s5801_s21 = sphi %s5863_s21, %s8497_s21   ;;  %s5797_s20 = sphi %s5861_s20, %s8485_s20   ;;  %s5793_s19 = sphi %s5859_s19, %s8496_s19   ;;  %s5789_s18 = sphi %s5857_s18, %s8495_s18   ;;  %s5785_s17 = sphi %s5855_s17, %s8494_s17   ;;  %s5781_s16 = sphi %s5853_s16, %s8493_s16   ;;  %s5777_s15 = sphi %s5851_s15, %s8492_s15   ;;  %s5773_s14 = sphi %s5849_s14, %s8482_s14   ;;  %s5769_s13 = sphi %s5847_s13, %s8491_s13   ;;  %s5765_s12 = sphi %s5845_s12, %s8490_s12  }
  0x11   : > { %8020 = sst [smem:[#allocation14_spill]] %s5773_s14  ;;  %p67_p0 = scmp.eq.s32.totalorder %s5817_s25, 0 }
  0x12   : > { %8021 = sst [smem:[#allocation15_spill]] %s5797_s20  ;;  %p5919_p1 = scmp.ge.s32.totalorder %s40_s26, 3 }
  0x13   : > { %8022 = sst [smem:[#allocation16_spill]] %s5805_s22  ;;  %p94_p2 = scmp.ne.s32.totalorder %s5785_s17, %s5781_s16 }
  0x14   : > { %8023 = sst [smem:[#allocation17_spill]] %s5813_s24  ;;  %p100_p3 = scmp.ne.s32.totalorder %s5781_s16, %s5777_s15 }
  0x15   : > { %8024 = sst [smem:[#allocation18_spill]] %s5817_s25  ;;  %p5457_p4 = scmp.lt.s32.totalorder %s5817_s25, 6 }
  0x16   : > { %p96_p5 = por %p94_p2, %p67_p0  ;;  %s207_s29 = sand.u32 1, %s5817_s25  }
  0x17   : > { %s7865_s30 = sand.u32 1, %s5785_s17   ;;  %s5233_s6 = smul.u32 12, %s5809_s23 }
  0x18   : > { %s5428_s4 = smul.u32 576, %s7865_s30  ;;  %p5937_p6 = pnand %p5457_p4, %p96_p5 }
  0x19   : > { %s8027_s1 = sld [smem:[#allocation190_spill]]  ;;  %p4557_p7 = scmp.ge.s32.totalorder %s5817_s25, 1 }
  0x1a   : > { %s211_s10 = scalar_lea.vmem [#allocation6], %s5428_s4  ;;  %s5946_s28 = scalar_lea.sflag [#allocation7], %s207_s29 }
  0x1b   : > { %s222_s11 = sshll.u32 %s211_s10, 4  ;;  %s7866_s7 = smov 192   ;;  %s223_s11 = int_to_ptr.vmem [resolvable:$true] %s222_s11 }
  0x1c   : > { %s7867_s4 = smov 12   ;;  %p249_p8 = scmp.lt.s32.totalorder %s5817_s25, 7 }
  0x1d   : > { %s4552_s29 = sadd.s32 4294967294, %s5817_s25   ;;  %s8500_s26 = smov (%p5919_p1, %s40_s26), 0 }
  0x1e   : > { %p5954_p9 = pnand %p4557_p7, %p249_p8  ;;  %8029 = sst [smem:[#allocation19_spill]] %s8500_s26 }
  0x1f   : > { %s219_s9 = scalar_lea.hbm %s8027_s1, %s5233_s6  ;;  %s5819_s6 = smov 576  }
  0x20   : > { %s220_s30 = sshll.u32 %s219_s9, 4  ;;  %s5959_s9 = sadd.s32 4294967295, %s5817_s25   ;;  %s221_s30 = int_to_ptr.hbm [resolvable:$true] %s220_s30 }
  0x21   : > { %5449 = dma.hbm_to_vmem [thread:$0]  (!%p5937_p6), %s221_s30, 9216, %s223_s11, %s5946_s28, %s5819_s6, %s7866_s7, %s7867_s4  }
  0x22   : > { %s48_s10 = sadd.s32 1, %s5813_s24  ;;  %s59_s30 = sadd.s32 1, %s5797_s20 }
  0x23   : > { %s8502_s10 = smov (!%p5919_p1, %s48_s10), %s5813_s24  ;;  %p66_p10 = scmp.ne.s32.totalorder %s5797_s20, %s5793_s19 }
  0x24   : > { %p72_p11 = scmp.ne.s32.totalorder %s5793_s19, %s5789_s18  ;;  %p50_p12 = scmp.ge.s32.totalorder %s8502_s10, 2 }
  0x25   : > { %p73_p13 = scmp.eq.s32.totalorder %s5959_s9, 0  ;;  %p5980_p2 = por %p67_p0, %p66_p10 }
  0x26   : > { %s83_s6 = ssub.s32 %s5809_s23, %s8500_s26  ;;  %s8504_s10 = smov (%p50_p12, %s8502_s10), 0 }
  0x27   : > { %8031 = sst [smem:[#allocation20_spill]] %s8504_s10  ;;  %p5988_p1 = por %p73_p13, %p72_p11 }
  0x28   : > { %p85_p5 = scmp.eq.s32.totalorder %s83_s6, 0  ;;  %s52_s18 = ssub.s32 %s5813_s24, %s8504_s10 }
  0x29   : > { %p5997_p7 = por %p100_p3, %p73_p13  ;;  %p57_p0 = scmp.eq.s32.totalorder %s52_s18, 0 }
  0x2a   : > { %s140_s4 = sor.u32 %s83_s6, %s52_s18  ;;  %s8034_s1 = sadd.s32 1, %s5785_s17 }
  0x2b   : > { %s6004_s26 = scalar_select %p85_p5, %s5785_s17, %s8034_s1  }
  0x2c   : > { %s6007_s3 = scalar_select %p57_p0, %s5797_s20, %s59_s30  }
  0x2d   : > { %8035 = sst [smem:[#allocation21_spill]] %s6004_s26  ;;  %p141_p8 = scmp.eq.s32.totalorder %s140_s4, 0 }
  0x2e   : > { %8036 = sst [smem:[#allocation22_spill]] %s6007_s3  ;;  %s143_s22 = sadd.s32 1, %s5773_s14 }
  0x2f   : > { %p153_p10 = scmp.ne.s32.totalorder %s5773_s14, %s5769_s13  ;;  %p154_p11 = scmp.eq.s32.totalorder %s5959_s9, 5 }
  0x30   : > { %s6014_s10 = scalar_select %p141_p8, %s5773_s14, %s143_s22  }
  0x31   : > { %p6016_p3 = por %p154_p11, %p153_p10  ;;  %p159_p12 = scmp.ne.s32.totalorder %s5769_s13, %s5765_s12 }
  0x32   : > { %8037 = sst [smem:[#allocation23_spill]] %s6014_s10  ;;  %p160_p13 = scmp.eq.s32.totalorder %s4552_s29, 5 }
  0x33   : > { %s8038_s15 = scalar_select %p6016_p3, 1, 0 }
  0x34   : > { %s180_s6 = sand.u32 1, %s5797_s20   ;;  %p6023_p5 = por %p160_p13, %p159_p12 }
  0x35   : > { %8039 = sst [smem:[#allocation24_spill]] %s8038_s15  ;;  %s5426_s18 = smul.u32 768, %s180_s6 }
  0x36   : > { %s8040_s1 = scalar_select %p6023_p5, 1, 0 }
  0x37   : > { %s5427_s4 = smul.u32 768, %s5813_s24  ;;  %p5444_p0 = pnand %p5457_p4, %p5980_p2 }
  0x38   : > { %8041 = sst [smem:[#allocation25_spill]] %s8040_s1  ;;  %s184_s26 = scalar_lea.vmem [#allocation3], %s5426_s18 }
  0x39   : > { %s8042_s0 = sld [smem:[#allocation189_spill]]  ;;  %s197_s10 = sshll.u32 %s184_s26, 4  ;;  %s198_s10 = int_to_ptr.vmem [resolvable:$true] %s197_s10 }
  0x3a   : > { %s181_s29 = scalar_lea.sflag [#allocation4], %s180_s6  ;;  %s8043_s20 = smov 12  }
  0x3b   : > { %s8044_s12 = smov 192   ;;  %s8045_s24 = sand.u32 1, %s5785_s17  }
  0x3c   : > { %s5429_s11 = smul.u32 3, %s8045_s24 }
  0x3d   : > { %s237_s1 = smul.u32 3, %s5809_s23 }
  0x3f   : > { %s194_s3 = scalar_lea.hbm %s8042_s0, %s5427_s4  ;;  %s240_s22 = scalar_lea.hbm %s7863_s2, %s237_s1 }
  0x40   : > { %s195_s14 = sshll.u32 %s194_s3, 4  ;;  %s236_s4 = scalar_lea.vmem [#allocation8], %s5429_s11  ;;  %s196_s14 = int_to_ptr.hbm [resolvable:$true] %s195_s14 }
  0x41   : > { %5446 = dma.hbm_to_vmem [thread:$0]  (!%p5444_p0), %s196_s14, 12288, %s198_s10, %s181_s29, %s8044_s12, %s8044_s12, %s8043_s20  }
  0x42   : > { %s244_s30 = sshll.u32 %s236_s4, 4  ;;  %s242_s0 = sshll.u32 %s240_s22, 4  ;;  %s245_s30 = int_to_ptr.vmem [resolvable:$true] %s244_s30  ;;  %s243_s0 = int_to_ptr.hbm [resolvable:$true] %s242_s0 }
  0x43   : > { %5452 = dma.hbm_to_vmem [thread:$0]  (!%p5937_p6), %s243_s0, 48, %s245_s30, %s5946_s28  }
  0x44   : > { %253 = sbr.rel (%p5954_p9) target bundleno = 1407 (0x57f), region = 32 }
  0x49   : > { %s255_s3 = sand.u32 1, %s5793_s19  }
  0x4a   : > { %s5430_s12 = smul.u32 768, %s255_s3  ;;  %s256_s14 = scalar_lea.sflag [#allocation4], %s255_s3 }
  0x4c   : > { %s6050_s20 = scalar_lea.vmem [#allocation3], %s5430_s12 }
  0x4d   : > { %5752 = dma.done.wait (%p5988_p1), %s256_s14, 12288  }
  0x4e   : > { %5754 = vsyncadd (%p5988_p1), %s256_s14, 4294955008  ;;  %s265_s0 = sand.u32 1, %s5959_s9   ;;  %s267_s24 = sand.u32 1, %s5781_s16  }
  0x4f   : > { %s5431_s25 = smul.u32 576, %s267_s24  ;;  %s266_s26 = scalar_lea.sflag [#allocation7], %s265_s0 }
  0x51   : > { %s6060_s28 = scalar_lea.vmem [#allocation6], %s5431_s25 }
  0x52   : > { %5756 = dma.done.wait (%p5997_p7), %s266_s26, 9264  }
  0x53   : > { %5758 = vsyncadd (%p5997_p7), %s266_s26, 4294958032  ;;  %v5028_v0 = vld [vmem:[%s6060_s28 + $0xa8] sm:$0xf]  ;;  %v5352_v1 = vld [vmem:[%s6060_s28 + $0xb0] sm:$0xf0]  ;;  %s5432_s5 = smul.u32 3, %s267_s24 }
  0x54   : > { %v5016_v2 = vld [vmem:[%s6060_s28 + $0x90] sm:$0xf]  ;;  %v5029_v3 = vor.u32 %v5352_v1, %v5028_v0  ;;  %v5349_v4 = vld [vmem:[%s6060_s28 + $0x98] sm:$0xf0]  ;;  %v5004_v6 = vld [vmem:[%s6060_s28 + $0x78] sm:$0xf] }
  0x55   : > { %v5017_v5 = vor.u32 %v5349_v4, %v5016_v2  ;;  %v5346_v7 = vld [vmem:[%s6060_s28 + $0x80] sm:$0xf0]  ;;  %v4992_v9 = vld [vmem:[%s6060_s28 + $0x60] sm:$0xf]  ;;  %v5343_v10 = vld [vmem:[%s6060_s28 + $0x68] sm:$0xf0] }
  0x56   : > { %1828 = vmatpush.bf16.msra.mxu0 %v5029_v3  ;;  %5402 = vmatpush.bf16.msra.mxu1 %v5029_v3  ;;  %v5005_v8 = vor.u32 %v5346_v7, %v5004_v6  ;;  %v4993_v11 = vor.u32 %v5343_v10, %v4992_v9  ;;  %v4980_v12 = vld [vmem:[%s6060_s28 + $0x48] sm:$0xf]  ;;  %v5340_v13 = vld [vmem:[%s6060_s28 + $0x50] sm:$0xf0]  ;;  %v4968_v15 = vld [vmem:[%s6060_s28 + $0x30] sm:$0xf] }
  0x57   : > { %5403 = vmatpush.bf16.msra.mxu2 %v5029_v3  ;;  %5404 = vmatpush.bf16.msra.mxu3 %v5029_v3  ;;  %v4981_v14 = vor.u32 %v5340_v13, %v4980_v12  ;;  %v5337_v16 = vld [vmem:[%s6060_s28 + $0x38] sm:$0xf0]  ;;  %v4956_v18 = vld [vmem:[%s6060_s28 + $0x18] sm:$0xf]  ;;  %v5334_v19 = vld [vmem:[%s6060_s28 + $0x20] sm:$0xf0] }
  0x58   : > { %v4969_v17 = vor.u32 %v5337_v16, %v4968_v15  ;;  %v4957_v20 = vor.u32 %v5334_v19, %v4956_v18  ;;  %v4944_v21 = vld [vmem:[%s6060_s28] sm:$0xf]  ;;  %v5331_v22 = vld [vmem:[%s6060_s28 + $0x8] sm:$0xf0]  ;;  %v5220_v27 = vld [vmem:[%s6060_s28 + $0x228] sm:$0xf] }
  0x59   : > { %v4560_v23 = vld [vmem:[%s6050_s20] sm:$0xf]  ;;  %v5235_v24 = vld [vmem:[%s6050_s20 + $0x8] sm:$0xf0]  ;;  %v5400_v28 = vld [vmem:[%s6060_s28 + $0x230] sm:$0xf0]  ;;  %v4945_v31 = vor.u32 %v5331_v22, %v4944_v21 }
  0x5a   : > { %1829 = vmatpush.bf16.msra.mxu0 %v5017_v5  ;;  %5405 = vmatpush.bf16.msra.mxu1 %v5017_v5  ;;  %v4656_v25 = vld [vmem:[%s6050_s20 + $0xc0] sm:$0xf]  ;;  %v5259_v26 = vld [vmem:[%s6050_s20 + $0xc8] sm:$0xf0]  ;;  %v5030_v30 = vld [vmem:[%s6060_s28 + $0xb4] sm:$0xf0]  ;;  %v5221_v38 = vor.u32 %v5400_v28, %v5220_v27  ;;  %v6099_v43 = vor.u32 %v5235_v24, %v4560_v23 }
  0x5b   : > { %5406 = vmatpush.bf16.msra.mxu2 %v5017_v5  ;;  %5407 = vmatpush.bf16.msra.mxu3 %v5017_v5  ;;  %v5351_v29 = vld [vmem:[%s6060_s28 + $0xac] sm:$0xf]  ;;  %v4752_v32 = vld [vmem:[%s6050_s20 + $0x180] sm:$0xf]  ;;  %v5124_v36 = vld [vmem:[%s6060_s28 + $0x168] sm:$0xf]  ;;  %v6101_v44 = vor.u32 %v5259_v26, %v4656_v25 }
  0x5c   : > { %v5283_v33 = vld [vmem:[%s6050_s20 + $0x188] sm:$0xf0]  ;;  %v4848_v34 = vld [vmem:[%s6050_s20 + $0x240] sm:$0xf]  ;;  %v5376_v37 = vld [vmem:[%s6060_s28 + $0x170] sm:$0xf0]  ;;  %v5033_v39 = vor.u32 %v5351_v29, %v5030_v30 }
  0x5d   : > { %v5307_v35 = vld [vmem:[%s6050_s20 + $0x248] sm:$0xf0]  ;;  %v5126_v41 = vld [vmem:[%s6060_s28 + $0x174] sm:$0xf0]  ;;  %v5208_v42 = vld [vmem:[%s6060_s28 + $0x210] sm:$0xf]  ;;  %v6106_v48 = vor.u32 %v5283_v33, %v4752_v32  ;;  %v5125_v50 = vor.u32 %v5376_v37, %v5124_v36 }
  0x5e   : > { %1830 = vmatpush.bf16.msra.mxu0 %v5005_v8  ;;  %5408 = vmatpush.bf16.msra.mxu1 %v5005_v8  ;;  %v5375_v40 = vld [vmem:[%s6060_s28 + $0x16c] sm:$0xf]  ;;  %8046 = vst [vmem:[#allocation26_spill] sm:$0xff] %v6099_v43  ;;  %v5397_v45 = vld [vmem:[%s6060_s28 + $0x218] sm:$0xf0]  ;;  %v6108_v49 = vor.u32 %v5307_v35, %v4848_v34  ;;  %s279_s7 = scalar_lea.vmem [#allocation8], %s5432_s5 }
  0x5f   : > { %5409 = vmatpush.bf16.msra.mxu2 %v5005_v8  ;;  %5410 = vmatpush.bf16.msra.mxu3 %v5005_v8  ;;  %8047 = vst [vmem:[#allocation27_spill] sm:$0xff] %v6101_v44  ;;  %v5348_v46 = vld [vmem:[%s6060_s28 + $0x94] sm:$0xf]  ;;  %v5018_v47 = vld [vmem:[%s6060_s28 + $0x9c] sm:$0xf0]  ;;  %v5129_v51 = vor.u32 %v5375_v40, %v5126_v41  ;;  %v5209_v53 = vor.u32 %v5397_v45, %v5208_v42  ;;  %s310_s8 = sand.u32 1, %s5769_s13  }
  0x60   : > { %8048 = vst [vmem:[#allocation28_spill] sm:$0xff] %v6106_v48  ;;  %v5112_v52 = vld [vmem:[%s6060_s28 + $0x150] sm:$0xf]  ;;  %v5021_v54 = vor.u32 %v5348_v46, %v5018_v47  ;;  %v5373_v55 = vld [vmem:[%s6060_s28 + $0x158] sm:$0xf0]  ;;  %s5433_s9 = smul.u32 768, %s310_s8 }
  0x61   : > { %8049 = vst [vmem:[#allocation29_spill] sm:$0xff] %v6108_v49  ;;  %v5372_v56 = vld [vmem:[%s6060_s28 + $0x154] sm:$0xf]  ;;  %v5114_v57 = vld [vmem:[%s6060_s28 + $0x15c] sm:$0xf0]  ;;  %v5113_v61 = vor.u32 %v5373_v55, %v5112_v52  ;;  %s8470_s27 = sld [smem:[#allocation16_spill]] }
  0x62   : > { %1831 = vmatpush.bf16.msra.mxu0 %v4993_v11  ;;  %5411 = vmatpush.bf16.msra.mxu1 %v4993_v11  ;;  %v5196_v58 = vld [vmem:[%s6060_s28 + $0x1f8] sm:$0xf]  ;;  %v5394_v59 = vld [vmem:[%s6060_s28 + $0x200] sm:$0xf0]  ;;  %v5345_v60 = vld [vmem:[%s6060_s28 + $0x7c] sm:$0xf]  ;;  %v5117_v62 = vor.u32 %v5372_v56, %v5114_v57 }
  0x63   : > { %5412 = vmatpush.bf16.msra.mxu2 %v4993_v11  ;;  %5413 = vmatpush.bf16.msra.mxu3 %v4993_v11  ;;  %v5006_v63 = vld [vmem:[%s6060_s28 + $0x84] sm:$0xf0]  ;;  %v5100_v0 = vld [vmem:[%s6060_s28 + $0x138] sm:$0xf]  ;;  %v5197_v1 = vor.u32 %v5394_v59, %v5196_v58  ;;  %v5370_v3 = vld [vmem:[%s6060_s28 + $0x140] sm:$0xf0] }
  0x64   : > { %v5009_v2 = vor.u32 %v5345_v60, %v5006_v63  ;;  %v5369_v4 = vld [vmem:[%s6060_s28 + $0x13c] sm:$0xf]  ;;  %v5102_v5 = vld [vmem:[%s6060_s28 + $0x144] sm:$0xf0]  ;;  %v5101_v6 = vor.u32 %v5370_v3, %v5100_v0  ;;  %v4572_v8 = vld [vmem:[%s6050_s20 + $0x18] sm:$0xf] }
  0x65   : > { %v5105_v7 = vor.u32 %v5369_v4, %v5102_v5  ;;  %v5238_v9 = vld [vmem:[%s6050_s20 + $0x20] sm:$0xf0]  ;;  %v4668_v10 = vld [vmem:[%s6050_s20 + $0xd8] sm:$0xf]  ;;  %v5391_v21 = vld [vmem:[%s6060_s28 + $0x1e8] sm:$0xf0] }
  0x66   : > { %1832 = vmatpush.bf16.msra.mxu0 %v4981_v14  ;;  %5414 = vmatpush.bf16.msra.mxu1 %v4981_v14  ;;  %v5262_v11 = vld [vmem:[%s6050_s20 + $0xe0] sm:$0xf0]  ;;  %v4764_v12 = vld [vmem:[%s6050_s20 + $0x198] sm:$0xf]  ;;  %v6134_v16 = vor.u32 %v5238_v9, %v4572_v8  ;;  %v4994_v24 = vld [vmem:[%s6060_s28 + $0x6c] sm:$0xf0] }
  0x67   : > { %5415 = vmatpush.bf16.msra.mxu2 %v4981_v14  ;;  %5416 = vmatpush.bf16.msra.mxu3 %v4981_v14  ;;  %v5286_v13 = vld [vmem:[%s6050_s20 + $0x1a0] sm:$0xf0]  ;;  %v4860_v14 = vld [vmem:[%s6050_s20 + $0x258] sm:$0xf]  ;;  %v5088_v25 = vld [vmem:[%s6060_s28 + $0x120] sm:$0xf] }
  0x68   : > { %v5310_v15 = vld [vmem:[%s6050_s20 + $0x260] sm:$0xf0]  ;;  %8050 = vst [vmem:[#allocation30_spill] sm:$0xff] %v6134_v16  ;;  %v6138_v18 = vor.u32 %v5286_v13, %v4764_v12  ;;  %v5367_v26 = vld [vmem:[%s6060_s28 + $0x128] sm:$0xf0]  ;;  %s7251_s10 = scalar_lea.vmem [#allocation9], %s5433_s9 }
  0x69   : > { %v6140_v19 = vor.u32 %v5310_v15, %v4860_v14  ;;  %v5342_v22 = vld [vmem:[%s6060_s28 + $0x64] sm:$0xf]  ;;  %v5089_v28 = vor.u32 %v5367_v26, %v5088_v25  ;;  %v5090_v30 = vld [vmem:[%s6060_s28 + $0x12c] sm:$0xf0]  ;;  %v5241_v33 = vld [vmem:[%s6050_s20 + $0x38] sm:$0xf0] }
  0x6a   : > { %1833 = vmatpush.bf16.msra.mxu0 %v4969_v17  ;;  %5417 = vmatpush.bf16.msra.mxu1 %v4969_v17  ;;  %8052 = vst [vmem:[#allocation32_spill] sm:$0xff] %v6138_v18  ;;  %v4997_v27 = vor.u32 %v5342_v22, %v4994_v24  ;;  %v5366_v29 = vld [vmem:[%s6060_s28 + $0x124] sm:$0xf]  ;;  %v4584_v32 = vld [vmem:[%s6050_s20 + $0x30] sm:$0xf]  ;;  %s4393_s15 = smul.u32 3, %s5801_s21 }
  0x6b   : > { %5418 = vmatpush.bf16.msra.mxu2 %v4969_v17  ;;  %5419 = vmatpush.bf16.msra.mxu3 %v4969_v17  ;;  %v6136_v17 = vor.u32 %v5262_v11, %v4668_v10  ;;  %8053 = vst [vmem:[#allocation33_spill] sm:$0xff] %v6140_v19  ;;  %v4680_v34 = vld [vmem:[%s6050_s20 + $0xf0] sm:$0xf]  ;;  %v5265_v35 = vld [vmem:[%s6050_s20 + $0xf8] sm:$0xf0]  ;;  %v6162_v40 = vor.u32 %v5241_v33, %v4584_v32  ;;  %s5434_s6 = smul.u32 576, %s8470_s27 }
  0x6c   : > { %v4776_v36 = vld [vmem:[%s6050_s20 + $0x1b0] sm:$0xf]  ;;  %v5289_v37 = vld [vmem:[%s6050_s20 + $0x1b8] sm:$0xf0]  ;;  %v6164_v41 = vor.u32 %v5265_v35, %v4680_v34  ;;  %v5172_v46 = vld [vmem:[%s6060_s28 + $0x1c8] sm:$0xf] }
  0x6d   : > { %8051 = vst [vmem:[#allocation31_spill] sm:$0xff] %v6136_v17  ;;  %v6166_v42 = vor.u32 %v5289_v37, %v4776_v36  ;;  %v5388_v47 = vld [vmem:[%s6060_s28 + $0x1d0] sm:$0xf0]  ;;  %v4982_v52 = vld [vmem:[%s6060_s28 + $0x54] sm:$0xf0]  ;;  %s4399_s18 = sadd.s32 %s5434_s6, %s4393_s15  ;;  %s8475_s11 = sld [smem:[#allocation191_spill]] }
  0x6e   : > { %1834 = vmatpush.bf16.msra.mxu0 %v4957_v20  ;;  %5420 = vmatpush.bf16.msra.mxu1 %v4957_v20  ;;  %8054 = vst [vmem:[#allocation34_spill] sm:$0xff] %v6162_v40  ;;  %v5363_v57 = vld [vmem:[%s6060_s28 + $0x10c] sm:$0xf]  ;;  %v5078_v58 = vld [vmem:[%s6060_s28 + $0x114] sm:$0xf0]  ;;  %s5230_s21 = sshll.u32 %s4399_s18, 2 }
  0x6f   : > { %5421 = vmatpush.bf16.msra.mxu2 %v4957_v20  ;;  %5422 = vmatpush.bf16.msra.mxu3 %v4957_v20  ;;  %v5184_v20 = vld [vmem:[%s6060_s28 + $0x1e0] sm:$0xf]  ;;  %8055 = vst [vmem:[#allocation35_spill] sm:$0xff] %v6164_v41  ;;  %v5081_v59 = vor.u32 %v5363_v57, %v5078_v58  ;;  %v4596_v60 = vld [vmem:[%s6050_s20 + $0x48] sm:$0xf]  ;;  %s4402_s30 = sshll.u32 %s7251_s10, 4  ;;  %s4403_s30 = int_to_ptr.vmem [resolvable:$true] %s4402_s30 }
  0x70   : > { %v5185_v23 = vor.u32 %v5391_v21, %v5184_v20  ;;  %8056 = vst [vmem:[#allocation36_spill] sm:$0xff] %v6166_v42  ;;  %v5268_v63 = vld [vmem:[%s6050_s20 + $0x110] sm:$0xf0]  ;;  %v4788_v0 = vld [vmem:[%s6050_s20 + $0x1c8] sm:$0xf]  ;;  %s4385_s12 = scalar_lea.sflag [#allocation5], %s310_s8 }
  0x71   : > { %v5316_v3 = vld [vmem:[%s6050_s20 + $0x290] sm:$0xf0]  ;;  %v5160_v8 = vld [vmem:[%s6060_s28 + $0x1b0] sm:$0xf]  ;;  %v5385_v9 = vld [vmem:[%s6060_s28 + $0x1b8] sm:$0xf0] }
  0x72   : > { %1835 = vmatpush.bf16.msra.mxu0 %v4945_v31  ;;  %5423 = vmatpush.bf16.msra.mxu1 %v4945_v31  ;;  %v5336_v10 = vld [vmem:[%s6060_s28 + $0x34] sm:$0xf]  ;;  %v5161_v11 = vor.u32 %v5385_v9, %v5160_v8  ;;  %v4970_v12 = vld [vmem:[%s6060_s28 + $0x3c] sm:$0xf0]  ;;  %v5064_v13 = vld [vmem:[%s6060_s28 + $0xf0] sm:$0xf] }
  0x73   : > { %5424 = vmatpush.bf16.msra.mxu2 %v4945_v31  ;;  %5425 = vmatpush.bf16.msra.mxu3 %v4945_v31  ;;  %v5093_v31 = vor.u32 %v5366_v29, %v5090_v30  ;;  %v5361_v14 = vld [vmem:[%s6060_s28 + $0xf8] sm:$0xf0]  ;;  %v4973_v15 = vor.u32 %v5336_v10, %v4970_v12  ;;  %v5360_v21 = vld [vmem:[%s6060_s28 + $0xf4] sm:$0xf]  ;;  %v5066_v22 = vld [vmem:[%s6060_s28 + $0xfc] sm:$0xf0]  ;;  %s4401_s22 = scalar_lea.hbm %s8475_s11, %s5230_s21 }
  0x74   : > { %v5065_v20 = vor.u32 %v5361_v14, %v5064_v13  ;;  %v4608_v24 = vld [vmem:[%s6050_s20 + $0x60] sm:$0xf]  ;;  %v5247_v25 = vld [vmem:[%s6050_s20 + $0x68] sm:$0xf0]  ;;  %v5148_v36 = vld [vmem:[%s6060_s28 + $0x198] sm:$0xf] }
  0x75   : > { %1836 = vmatmul.bf16.vlgmr.msra.gmra.mxu0 %v6099_v43  ;;  %1876 = vmatmul.bf16.vlgmr.msra.gmra.mxu1 %v6101_v44  ;;  %v4704_v26 = vld [vmem:[%s6050_s20 + $0x120] sm:$0xf]  ;;  %v5295_v29 = vld [vmem:[%s6050_s20 + $0x1e8] sm:$0xf0]  ;;  %v6218_v32 = vor.u32 %v5247_v25, %v4608_v24  ;;  %v5382_v37 = vld [vmem:[%s6060_s28 + $0x1a0] sm:$0xf0] }
  0x76   : > { %1916 = vmatmul.bf16.vlgmr.msra.gmra.mxu2 %v6106_v48  ;;  %1956 = vmatmul.bf16.vlgmr.msra.gmra.mxu3 %v6108_v49  ;;  %v4896_v30 = vld [vmem:[%s6050_s20 + $0x2a0] sm:$0xf]  ;;  %v5250_v57 = vld [vmem:[%s6050_s20 + $0x80] sm:$0xf0]  ;;  %v4716_v58 = vld [vmem:[%s6050_s20 + $0x138] sm:$0xf] }
  0x77   : > { %2166 = vmatpush.bf16.msrb.mxu2 %v5221_v38  ;;  %2335 = vmatpush.bf16.msrb.mxu3 %v5033_v39  ;;  %v4872_v38 = vld [vmem:[%s6050_s20 + $0x270] sm:$0xf]  ;;  %v5313_v39 = vld [vmem:[%s6050_s20 + $0x278] sm:$0xf0]  ;;  %8062 = vst [vmem:[#allocation42_spill] sm:$0xff] %v6218_v32  ;;  %s4404_s3 = sshll.u32 %s4401_s22, 4  ;;  %s4405_s3 = int_to_ptr.hbm [resolvable:$true] %s4404_s3 }
  0x78   : > { %1997 = vmatpush.bf16.msrb.mxu1 %v5125_v50  ;;  %2504 = vmatpush.bf16.msrb.mxu0 %v5129_v51  ;;  %v6168_v45 = vor.u32 %v5313_v39, %v4872_v38  ;;  %v5339_v50 = vld [vmem:[%s6060_s28 + $0x4c] sm:$0xf]  ;;  %v5173_v51 = vor.u32 %v5388_v47, %v5172_v46  ;;  %v5333_v38 = vld [vmem:[%s6060_s28 + $0x1c] sm:$0xf]  ;;  %v5149_v39 = vor.u32 %v5382_v37, %v5148_v36  ;;  %v4958_v46 = vld [vmem:[%s6060_s28 + $0x24] sm:$0xf0] }
  0x79   : > { %v4985_v55 = vor.u32 %v5339_v50, %v4982_v52  ;;  %v5052_v47 = vld [vmem:[%s6060_s28 + $0xd8] sm:$0xf]  ;;  %v5358_v50 = vld [vmem:[%s6060_s28 + $0xe0] sm:$0xf0]  ;;  %v5136_v8 = vld [vmem:[%s6060_s28 + $0x180] sm:$0xf] }
  0x7a   : > { %8057 = vst [vmem:[#allocation37_spill] sm:$0xff] %v6168_v45  ;;  %v5053_v52 = vor.u32 %v5358_v50, %v5052_v47  ;;  %v5379_v9 = vld [vmem:[%s6060_s28 + $0x188] sm:$0xf0]  ;;  %v5330_v10 = vld [vmem:[%s6060_s28 + $0x4] sm:$0xf]  ;;  %s5681_s14 = sshra.s32 %s4405_s3, 4  ;;  %s5682_s14 = int_to_ptr.hbm [resolvable:$true] %s5681_s14 }
  0x7b   : > { %2167 = vmatpush.bf16.msrb.mxu2 %v5209_v53  ;;  %2336 = vmatpush.bf16.msrb.mxu3 %v5021_v54  ;;  %v5076_v53 = vld [vmem:[%s6060_s28 + $0x108] sm:$0xf]  ;;  %v5364_v54 = vld [vmem:[%s6060_s28 + $0x110] sm:$0xf0]  ;;  %v4946_v12 = vld [vmem:[%s6060_s28 + $0xc] sm:$0xf0]  ;;  %p5688_p2 = scmp.lt.s32.totalorder %s5682_s14, %s8475_s11 }
  0x7c   : > { %1998 = vmatpush.bf16.msrb.mxu1 %v5113_v61  ;;  %2505 = vmatpush.bf16.msrb.mxu0 %v5117_v62  ;;  %v5077_v56 = vor.u32 %v5364_v54, %v5076_v53  ;;  %v5244_v61 = vld [vmem:[%s6050_s20 + $0x50] sm:$0xf0]  ;;  %v4692_v62 = vld [vmem:[%s6050_s20 + $0x108] sm:$0xf]  ;;  %v5357_v53 = vld [vmem:[%s6060_s28 + $0xdc] sm:$0xf] }
  0x7d   : > { %v6190_v4 = vor.u32 %v5244_v61, %v4596_v60  ;;  %v6192_v5 = vor.u32 %v5268_v63, %v4692_v62  ;;  %v5054_v54 = vld [vmem:[%s6060_s28 + $0xe4] sm:$0xf0]  ;;  %v4812_v60 = vld [vmem:[%s6050_s20 + $0x1f8] sm:$0xf]  ;;  %v5298_v61 = vld [vmem:[%s6050_s20 + $0x200] sm:$0xf0] }
  0x7e   : > { %v4908_v62 = vld [vmem:[%s6050_s20 + $0x2b8] sm:$0xf]  ;;  %v5322_v63 = vld [vmem:[%s6050_s20 + $0x2c0] sm:$0xf0]  ;;  %v5040_v13 = vld [vmem:[%s6060_s28 + $0xc0] sm:$0xf] }
  0x7f   : > { %2168 = vmatpush.bf16.msrb.mxu2 %v5197_v1  ;;  %2337 = vmatpush.bf16.msrb.mxu3 %v5009_v2  ;;  %v5292_v1 = vld [vmem:[%s6050_s20 + $0x1d0] sm:$0xf0]  ;;  %v4884_v2 = vld [vmem:[%s6050_s20 + $0x288] sm:$0xf]  ;;  %8058 = vst [vmem:[#allocation38_spill] sm:$0xff] %v6190_v4  ;;  %s5687_s25 = scalar_lea.hbm %s8475_s11, 4608 }
  0x80   : > { %1999 = vmatpush.bf16.msrb.mxu1 %v5101_v6  ;;  %2506 = vmatpush.bf16.msrb.mxu0 %v5105_v7  ;;  %8059 = vst [vmem:[#allocation39_spill] sm:$0xff] %v6192_v5  ;;  %v6194_v6 = vor.u32 %v5292_v1, %v4788_v0  ;;  %v6196_v7 = vor.u32 %v5316_v3, %v4884_v2  ;;  %v5355_v14 = vld [vmem:[%s6060_s28 + $0xc8] sm:$0xf0]  ;;  %v4632_v24 = vld [vmem:[%s6050_s20 + $0x90] sm:$0xf] }
  0x81   : > { %v6250_v2 = vor.u32 %v5298_v61, %v4812_v60  ;;  %v6252_v3 = vor.u32 %v5322_v63, %v4908_v62  ;;  %v5253_v25 = vld [vmem:[%s6050_s20 + $0x98] sm:$0xf0]  ;;  %v5132_v50 = vld [vmem:[%s6060_s28 + $0x170] sm:$0xf]  ;;  %v4644_v60 = vld [vmem:[%s6050_s20 + $0xa8] sm:$0xf] }
  0x82   : > { %8060 = vst [vmem:[#allocation40_spill] sm:$0xff] %v6194_v6  ;;  %v6274_v36 = vor.u32 %v5253_v25, %v4632_v24  ;;  %v5353_v47 = vld [vmem:[%s6060_s28 + $0xb8] sm:$0xf0]  ;;  %v5256_v61 = vld [vmem:[%s6050_s20 + $0xb0] sm:$0xf0] }
  0x83   : > { %2169 = vmatpush.bf16.msrb.mxu2 %v5185_v23  ;;  %2338 = vmatpush.bf16.msrb.mxu3 %v4997_v27  ;;  %8061 = vst [vmem:[#allocation41_spill] sm:$0xff] %v6196_v7  ;;  %v5069_v23 = vor.u32 %v5360_v21, %v5066_v22  ;;  %v5271_v27 = vld [vmem:[%s6050_s20 + $0x128] sm:$0xf0]  ;;  %v5354_v21 = vld [vmem:[%s6060_s28 + $0xc4] sm:$0xf] }
  0x84   : > { %2000 = vmatpush.bf16.msrb.mxu1 %v5089_v28  ;;  %2507 = vmatpush.bf16.msrb.mxu0 %v5093_v31  ;;  %v4800_v28 = vld [vmem:[%s6050_s20 + $0x1e0] sm:$0xf]  ;;  %v5319_v31 = vld [vmem:[%s6050_s20 + $0x2a8] sm:$0xf0]  ;;  %v6220_v33 = vor.u32 %v5271_v27, %v4704_v26  ;;  %8068 = vst [vmem:[#allocation48_spill] sm:$0xff] %v6250_v2 }
  0x85   : > { %1841 = vmatmul.bf16.gmra.mxu0 %v6134_v16  ;;  %1881 = vmatmul.bf16.gmra.mxu1 %v6136_v17  ;;  %v6222_v34 = vor.u32 %v5295_v29, %v4800_v28  ;;  %v6224_v35 = vor.u32 %v5319_v31, %v4896_v30  ;;  %8069 = vst [vmem:[#allocation49_spill] sm:$0xff] %v6252_v3  ;;  %v5042_v22 = vld [vmem:[%s6060_s28 + $0xcc] sm:$0xf0]  ;;  %v5277_v27 = vld [vmem:[%s6050_s20 + $0x158] sm:$0xf0] }
  0x86   : > { %1921 = vmatmul.bf16.gmra.mxu2 %v6138_v18  ;;  %1961 = vmatmul.bf16.gmra.mxu3 %v6140_v19  ;;  %8063 = vst [vmem:[#allocation43_spill] sm:$0xff] %v6220_v33  ;;  %v4728_v26 = vld [vmem:[%s6050_s20 + $0x150] sm:$0xf]  ;;  %v5301_v29 = vld [vmem:[%s6050_s20 + $0x218] sm:$0xf0] }
  0x87   : > { %2170 = vmatpush.bf16.msrb.mxu2 %v5173_v51  ;;  %2339 = vmatpush.bf16.msrb.mxu3 %v4985_v55  ;;  %8064 = vst [vmem:[#allocation44_spill] sm:$0xff] %v6222_v34  ;;  %v4961_v51 = vor.u32 %v5333_v38, %v4958_v46  ;;  %v5057_v55 = vor.u32 %v5357_v53, %v5054_v54  ;;  %v4824_v28 = vld [vmem:[%s6050_s20 + $0x210] sm:$0xf]  ;;  %v5325_v31 = vld [vmem:[%s6050_s20 + $0x2d8] sm:$0xf0] }
  0x88   : > { %2001 = vmatpush.bf16.msrb.mxu1 %v5077_v56  ;;  %2508 = vmatpush.bf16.msrb.mxu0 %v5081_v59  ;;  %8065 = vst [vmem:[#allocation45_spill] sm:$0xff] %v6224_v35  ;;  %v4620_v56 = vld [vmem:[%s6050_s20 + $0x78] sm:$0xf]  ;;  %v5274_v59 = vld [vmem:[%s6050_s20 + $0x140] sm:$0xf0]  ;;  %v6276_v37 = vor.u32 %v5277_v27, %v4728_v26  ;;  %v6278_v38 = vor.u32 %v5301_v29, %v4824_v28 }
  0x89   : > { %v6246_v0 = vor.u32 %v5250_v57, %v4620_v56  ;;  %v6248_v1 = vor.u32 %v5274_v59, %v4716_v58  ;;  %v4920_v30 = vld [vmem:[%s6050_s20 + $0x2d0] sm:$0xf]  ;;  %8070 = vst [vmem:[#allocation50_spill] sm:$0xff] %v6274_v36  ;;  %v5399_v54 = vld [vmem:[%s6060_s28 + $0x22c] sm:$0xf] }
  0x8a   : > { %8071 = vst [vmem:[#allocation51_spill] sm:$0xff] %v6276_v37  ;;  %v5036_v46 = vld [vmem:[%s6060_s28 + $0xb0] sm:$0xf]  ;;  %v5401_v58 = vld [vmem:[%s6060_s28 + $0x238] sm:$0xf0] }
  0x8b   : > { %2171 = vmatpush.bf16.msrb.mxu2 %v5161_v11  ;;  %2340 = vmatpush.bf16.msrb.mxu3 %v4973_v15  ;;  %8066 = vst [vmem:[#allocation46_spill] sm:$0xff] %v6246_v0  ;;  %v5137_v11 = vor.u32 %v5379_v9, %v5136_v8  ;;  %v4949_v15 = vor.u32 %v5330_v10, %v4946_v12  ;;  %v5228_v56 = vld [vmem:[%s6060_s28 + $0x230] sm:$0xf]  ;;  %v4740_v62 = vld [vmem:[%s6050_s20 + $0x168] sm:$0xf] }
  0x8c   : > { %2002 = vmatpush.bf16.msrb.mxu1 %v5065_v20  ;;  %2509 = vmatpush.bf16.msrb.mxu0 %v5069_v23  ;;  %8067 = vst [vmem:[#allocation47_spill] sm:$0xff] %v6248_v1  ;;  %v5041_v20 = vor.u32 %v5355_v14, %v5040_v13  ;;  %v5045_v23 = vor.u32 %v5354_v21, %v5042_v22  ;;  %v5280_v63 = vld [vmem:[%s6050_s20 + $0x170] sm:$0xf0]  ;;  %v4836_v8 = vld [vmem:[%s6050_s20 + $0x228] sm:$0xf] }
  0x8d   : > { %8072 = vst [vmem:[#allocation52_spill] sm:$0xff] %v6278_v38  ;;  %v5229_v59 = vor.u32 %v5401_v58, %v5228_v56  ;;  %v5304_v9 = vld [vmem:[%s6050_s20 + $0x230] sm:$0xf0]  ;;  %v4932_v10 = vld [vmem:[%s6050_s20 + $0x2e8] sm:$0xf]  ;;  %v6302_v12 = vor.u32 %v5256_v61, %v4644_v60  ;;  %v6304_v13 = vor.u32 %v5280_v63, %v4740_v62 }
  0x8e   : > { %v6306_v14 = vor.u32 %v5304_v9, %v4836_v8  ;;  %v4562_v21 = vld [vmem:[%s6050_s20 + $0xc] sm:$0xf0]  ;;  %v4568_v22 = vld [vmem:[%s6050_s20 + $0x8] sm:$0xf]  ;;  %v5240_v62 = vld [vmem:[%s6050_s20 + $0x34] sm:$0xf] }
  0x8f   : > { %2172 = vmatpush.bf16.msrb.mxu2 %v5149_v39  ;;  %2341 = vmatpush.bf16.msrb.mxu3 %v4961_v51  ;;  %v6280_v39 = vor.u32 %v5325_v31, %v4920_v30  ;;  %v5037_v51 = vor.u32 %v5353_v47, %v5036_v46  ;;  %8074 = vst [vmem:[#allocation54_spill] sm:$0xff] %v6302_v12  ;;  %v5237_v46 = vld [vmem:[%s6050_s20 + $0x1c] sm:$0xf]  ;;  %v4574_v47 = vld [vmem:[%s6050_s20 + $0x24] sm:$0xf0] }
  0x90   : > { %2003 = vmatpush.bf16.msrb.mxu1 %v5053_v52  ;;  %2510 = vmatpush.bf16.msrb.mxu0 %v5057_v55  ;;  %v5377_v52 = vld [vmem:[%s6060_s28 + $0x178] sm:$0xf0]  ;;  %v5222_v55 = vld [vmem:[%s6060_s28 + $0x234] sm:$0xf0]  ;;  %8075 = vst [vmem:[#allocation55_spill] sm:$0xff] %v6304_v13 }
  0x91   : > { %8073 = vst [vmem:[#allocation53_spill] sm:$0xff] %v6280_v39  ;;  %v5133_v53 = vor.u32 %v5377_v52, %v5132_v50  ;;  %v5225_v57 = vor.u32 %v5399_v54, %v5222_v55  ;;  %v4580_v50 = vld [vmem:[%s6050_s20 + $0x20] sm:$0xf]  ;;  %v6346_v54 = vor.u32 %v5237_v46, %v4574_v47  ;;  %v4592_v8 = vld [vmem:[%s6050_s20 + $0x38] sm:$0xf] }
  0x92   : > { %8076 = vst [vmem:[#allocation56_spill] sm:$0xff] %v6306_v14  ;;  %v4586_v63 = vld [vmem:[%s6050_s20 + $0x3c] sm:$0xf0]  ;;  %v5242_v9 = vld [vmem:[%s6050_s20 + $0x40] sm:$0xf0] }
  0x93   : > { %2173 = vmatpush.bf16.msrb.mxu2 %v5137_v11  ;;  %2342 = vmatpush.bf16.msrb.mxu3 %v4949_v15  ;;  %v5328_v11 = vld [vmem:[%s6050_s20 + $0x2f0] sm:$0xf0]  ;;  %8084 = vst [vmem:[#allocation64_spill] sm:$0xff] %v6346_v54  ;;  %v5024_v46 = vld [vmem:[%s6060_s28 + $0x98] sm:$0xf] }
  0x94   : > { %2004 = vmatpush.bf16.msrb.mxu1 %v5041_v20  ;;  %2511 = vmatpush.bf16.msrb.mxu0 %v5045_v23  ;;  %v6308_v15 = vor.u32 %v5328_v11, %v4932_v10  ;;  %v5234_v20 = vld [vmem:[%s6050_s20 + $0x4] sm:$0xf]  ;;  %v5236_v23 = vld [vmem:[%s6050_s20 + $0x10] sm:$0xf0] }
  0x95   : > { %1846 = vmatmul.bf16.gmra.mxu0 %v6162_v40  ;;  %1886 = vmatmul.bf16.gmra.mxu1 %v6164_v41  ;;  %v6318_v24 = vor.u32 %v5234_v20, %v4562_v21  ;;  %v6324_v27 = vor.u32 %v5236_v23, %v4568_v22  ;;  %v6374_v20 = vor.u32 %v5240_v62, %v4586_v63  ;;  %v5350_v47 = vld [vmem:[%s6060_s28 + $0xa0] sm:$0xf0] }
  0x96   : > { %1926 = vmatmul.bf16.gmra.mxu2 %v6166_v42  ;;  %1966 = vmatmul.bf16.gmra.mxu3 %v6168_v45  ;;  %8077 = vst [vmem:[#allocation57_spill] sm:$0xff] %v6308_v15  ;;  %v6380_v23 = vor.u32 %v5242_v9, %v4592_v8  ;;  %v5374_v62 = vld [vmem:[%s6060_s28 + $0x160] sm:$0xf0]  ;;  %v5395_v45 = vld [vmem:[%s6060_s28 + $0x208] sm:$0xf0] }
  0x97   : > { %2842 = vmatpush.bf16.msra.mxu2 %v5037_v51  ;;  %3011 = vmatpush.bf16.msra.mxu3 %v5133_v53  ;;  %8078 = vst [vmem:[#allocation58_spill] sm:$0xff] %v6318_v24  ;;  %v5239_v51 = vld [vmem:[%s6050_s20 + $0x28] sm:$0xf0] }
  0x98   : > { %2673 = vmatpush.bf16.msra.mxu1 %v5225_v57  ;;  %3180 = vmatpush.bf16.msra.mxu0 %v5229_v59  ;;  %8079 = vst [vmem:[#allocation59_spill] sm:$0xff] %v6324_v27  ;;  %v6352_v57 = vor.u32 %v5239_v51, %v4580_v50  ;;  %v5120_v50 = vld [vmem:[%s6060_s28 + $0x158] sm:$0xf]  ;;  %v5025_v51 = vor.u32 %v5350_v47, %v5024_v46  ;;  %v5398_v47 = vld [vmem:[%s6060_s28 + $0x220] sm:$0xf0] }
  0x99   : > { %8090 = vst [vmem:[#allocation70_spill] sm:$0xff] %v6374_v20  ;;  %v5121_v63 = vor.u32 %v5374_v62, %v5120_v50  ;;  %v5243_v50 = vld [vmem:[%s6050_s20 + $0x4c] sm:$0xf]  ;;  %v4598_v62 = vld [vmem:[%s6050_s20 + $0x54] sm:$0xf0] }
  0x9a   : > { %8085 = vst [vmem:[#allocation65_spill] sm:$0xff] %v6352_v57 }
  0x9b   : > { %8091 = vst [vmem:[#allocation71_spill] sm:$0xff] %v6380_v23  ;;  %2843 = vmatpush.bf16.msra.mxu2 %v5025_v51  ;;  %3012 = vmatpush.bf16.msra.mxu3 %v5121_v63  ;;  %v6410_v63 = vor.u32 %v5243_v50, %v4598_v62  ;;  %v5246_v50 = vld [vmem:[%s6050_s20 + $0x64] sm:$0xf]  ;;  %v4610_v62 = vld [vmem:[%s6050_s20 + $0x6c] sm:$0xf0] }
  0x9d   : > { %8096 = vst [vmem:[#allocation76_spill] sm:$0xff] %v6410_v63 }
  0xa5   : > { %1851 = vmatmul.bf16.gmra.mxu0 %v6190_v4  ;;  %1891 = vmatmul.bf16.gmra.mxu1 %v6192_v5 }
  0xa6   : > { %1931 = vmatmul.bf16.gmra.mxu2 %v6194_v6  ;;  %1971 = vmatmul.bf16.gmra.mxu3 %v6196_v7  ;;  %v5198_v7 = vld [vmem:[%s6060_s28 + $0x204] sm:$0xf0] }
  0xb5   : > { %1856 = vmatmul.bf16.gmra.mxu0 %v6218_v32  ;;  %1896 = vmatmul.bf16.gmra.mxu1 %v6220_v33 }
  0xb6   : > { %1936 = vmatmul.bf16.gmra.mxu2 %v6222_v34  ;;  %1976 = vmatmul.bf16.gmra.mxu3 %v6224_v35 }
  0xc5   : > { %1861 = vmatmul.bf16.gmra.mxu0 %v6246_v0  ;;  %1901 = vmatmul.bf16.gmra.mxu1 %v6248_v1 }
  0xc6   : > { %1941 = vmatmul.bf16.gmra.mxu2 %v6250_v2  ;;  %1981 = vmatmul.bf16.gmra.mxu3 %v6252_v3 }
  0xd5   : > { %1866 = vmatmul.bf16.gmra.mxu0 %v6274_v36  ;;  %1906 = vmatmul.bf16.gmra.mxu1 %v6276_v37 }
  0xd6   : > { %1946 = vmatmul.bf16.gmra.mxu2 %v6278_v38  ;;  %1986 = vmatmul.bf16.gmra.mxu3 %v6280_v39 }
  0xe5   : > { %1871 = vmatmul.bf16.gmra.mxu0 %v6302_v12  ;;  %1911 = vmatmul.bf16.gmra.mxu1 %v6304_v13 }
  0xe6   : > { %1951 = vmatmul.bf16.gmra.mxu2 %v6306_v14  ;;  %1991 = vmatmul.bf16.gmra.mxu3 %v6308_v15 }
  0xf2   : > { %v6320_v25 = vpop.f32.mrf.mxu0  ;;  %v6322_v26 = vpop.f32.mrf.mxu1 }
  0xf5   : > { %2005 = vmatmul.bf16.vlgmr.msrb.gmra.mxu1 %v6318_v24  ;;  %2512 = vmatmul.bf16.vlgmr.msrb.gmra.mxu0 %v6318_v24 }
  0xf6   : > { %2174 = vmatmul.bf16.vlgmr.msrb.gmra.mxu2 %v6324_v27  ;;  %2343 = vmatmul.bf16.vlgmr.msrb.gmra.mxu3 %v6099_v43  ;;  %v5249_v43 = vld [vmem:[%s6050_s20 + $0x7c] sm:$0xf]  ;;  %v4622_v27 = vld [vmem:[%s6050_s20 + $0x84] sm:$0xf0] }
  0xf9   : > { %v6330_v28 = vpop.f32.mrf.mxu2  ;;  %v6332_v29 = vpop.f32.mrf.mxu3 }
  0xfa   : > { %8080 = vst [vmem:[#allocation60_spill] sm:$0xff] %v6330_v28  ;;  %v6334_v30 = vpop.f32.mrf.mxu0  ;;  %v6336_v31 = vpop.f32.mrf.mxu1  ;;  %v5263_v28 = vld [vmem:[%s6050_s20 + $0xe8] sm:$0xf0] }
  0xfb   : > { %8081 = vst [vmem:[#allocation61_spill] sm:$0xff] %v6332_v29 }
 0x101   : > { %v6342_v52 = vpop.f32.mrf.mxu2  ;;  %v6344_v53 = vpop.f32.mrf.mxu3 }
 0x102   : > { %8082 = vst [vmem:[#allocation62_spill] sm:$0xff] %v6342_v52  ;;  %v6348_v55 = vpop.f32.mrf.mxu0  ;;  %v6350_v56 = vpop.f32.mrf.mxu1  ;;  %v4676_v52 = vld [vmem:[%s6050_s20 + $0xe0] sm:$0xf] }
 0x103   : > { %8083 = vst [vmem:[#allocation63_spill] sm:$0xff] %v6344_v53 }
 0x105   : > { %2010 = vmatmul.bf16.gmra.mxu1 %v6346_v54  ;;  %2517 = vmatmul.bf16.gmra.mxu0 %v6346_v54 }
 0x106   : > { %2179 = vmatmul.bf16.gmra.mxu2 %v6352_v57  ;;  %2348 = vmatmul.bf16.gmra.mxu3 %v6134_v16  ;;  %v4604_v16 = vld [vmem:[%s6050_s20 + $0x50] sm:$0xf] }
 0x109   : > { %v6358_v58 = vpop.f32.mrf.mxu2  ;;  %v6360_v59 = vpop.f32.mrf.mxu3 }
 0x10a   : > { %8086 = vst [vmem:[#allocation66_spill] sm:$0xff] %v6358_v58  ;;  %v6362_v60 = vpop.f32.mrf.mxu0  ;;  %v6364_v61 = vpop.f32.mrf.mxu1 }
 0x10b   : > { %8087 = vst [vmem:[#allocation67_spill] sm:$0xff] %v6360_v59  ;;  %v5216_v59 = vld [vmem:[%s6060_s28 + $0x218] sm:$0xf] }
 0x10c   : > { %v5217_v54 = vor.u32 %v5398_v47, %v5216_v59 }
 0x10e   : > { %3181 = vmatpush.bf16.msra.mxu0 %v5217_v54 }
 0x111   : > { %v6370_v10 = vpop.f32.mrf.mxu2  ;;  %v6372_v11 = vpop.f32.mrf.mxu3 }
 0x112   : > { %8088 = vst [vmem:[#allocation68_spill] sm:$0xff] %v6370_v10  ;;  %v6376_v21 = vpop.f32.mrf.mxu0  ;;  %v6378_v22 = vpop.f32.mrf.mxu1 }
 0x113   : > { %8089 = vst [vmem:[#allocation69_spill] sm:$0xff] %v6372_v11  ;;  %v5210_v11 = vld [vmem:[%s6060_s28 + $0x21c] sm:$0xf0] }
 0x115   : > { %2015 = vmatmul.bf16.gmra.mxu1 %v6374_v20  ;;  %2522 = vmatmul.bf16.gmra.mxu0 %v6374_v20 }
 0x116   : > { %2184 = vmatmul.bf16.gmra.mxu2 %v6380_v23  ;;  %2353 = vmatmul.bf16.gmra.mxu3 %v6162_v40  ;;  %v5396_v40 = vld [vmem:[%s6060_s28 + $0x214] sm:$0xf] }
 0x117   : > { %v5213_v46 = vor.u32 %v5396_v40, %v5210_v11 }
 0x119   : > { %v6390_v8 = vpop.f32.mrf.mxu2  ;;  %v6392_v9 = vpop.f32.mrf.mxu3  ;;  %2674 = vmatpush.bf16.msra.mxu1 %v5213_v46 }
 0x11a   : > { %8092 = vst [vmem:[#allocation72_spill] sm:$0xff] %v6390_v8  ;;  %v6394_v20 = vpop.f32.mrf.mxu0  ;;  %v6396_v23 = vpop.f32.mrf.mxu1 }
 0x11b   : > { %8093 = vst [vmem:[#allocation73_spill] sm:$0xff] %v6392_v9  ;;  %v5245_v9 = vld [vmem:[%s6050_s20 + $0x58] sm:$0xf0] }
 0x11c   : > { %v6416_v59 = vor.u32 %v5245_v9, %v4604_v16  ;;  %v4616_v16 = vld [vmem:[%s6050_s20 + $0x68] sm:$0xf]  ;;  %v5248_v9 = vld [vmem:[%s6050_s20 + $0x70] sm:$0xf0] }
 0x11d   : > { %v6444_v29 = vor.u32 %v5248_v9, %v4616_v16  ;;  %v4628_v16 = vld [vmem:[%s6050_s20 + $0x80] sm:$0xf]  ;;  %v5251_v9 = vld [vmem:[%s6050_s20 + $0x88] sm:$0xf0] }
 0x11e   : > { %8097 = vst [vmem:[#allocation77_spill] sm:$0xff] %v6416_v59  ;;  %v6472_v39 = vor.u32 %v5251_v9, %v4628_v16  ;;  %v5252_v16 = vld [vmem:[%s6050_s20 + $0x94] sm:$0xf]  ;;  %v4634_v9 = vld [vmem:[%s6050_s20 + $0x9c] sm:$0xf0] }
 0x11f   : > { %8103 = vst [vmem:[#allocation83_spill] sm:$0xff] %v6444_v29 }
 0x120   : > { %8109 = vst [vmem:[#allocation89_spill] sm:$0xff] %v6472_v39 }
 0x121   : > { %v6406_v51 = vpop.f32.mrf.mxu2  ;;  %v6408_v57 = vpop.f32.mrf.mxu3 }
 0x122   : > { %8094 = vst [vmem:[#allocation74_spill] sm:$0xff] %v6406_v51  ;;  %v6412_v53 = vpop.f32.mrf.mxu0  ;;  %v6414_v40 = vpop.f32.mrf.mxu1  ;;  %v5204_v51 = vld [vmem:[%s6060_s28 + $0x200] sm:$0xf] }
 0x123   : > { %8095 = vst [vmem:[#allocation75_spill] sm:$0xff] %v6408_v57  ;;  %v5205_v10 = vor.u32 %v5395_v45, %v5204_v51 }
 0x125   : > { %2020 = vmatmul.bf16.gmra.mxu1 %v6410_v63  ;;  %2527 = vmatmul.bf16.gmra.mxu0 %v6410_v63 }
 0x126   : > { %2189 = vmatmul.bf16.gmra.mxu2 %v6416_v59  ;;  %2358 = vmatmul.bf16.gmra.mxu3 %v6190_v4  ;;  %v6438_v4 = vor.u32 %v5246_v50, %v4610_v62 }
 0x127   : > { %3182 = vmatpush.bf16.msra.mxu0 %v5205_v10 }
 0x128   : > { %8102 = vst [vmem:[#allocation82_spill] sm:$0xff] %v6438_v4 }
 0x129   : > { %v6422_v54 = vpop.f32.mrf.mxu2  ;;  %v6424_v11 = vpop.f32.mrf.mxu3 }
 0x12a   : > { %8098 = vst [vmem:[#allocation78_spill] sm:$0xff] %v6422_v54  ;;  %v6426_v46 = vpop.f32.mrf.mxu0  ;;  %v6428_v47 = vpop.f32.mrf.mxu1 }
 0x12b   : > { %8099 = vst [vmem:[#allocation79_spill] sm:$0xff] %v6424_v11 }
 0x131   : > { %v6434_v57 = vpop.f32.mrf.mxu2  ;;  %v6436_v63 = vpop.f32.mrf.mxu3 }
 0x132   : > { %8100 = vst [vmem:[#allocation80_spill] sm:$0xff] %v6434_v57  ;;  %v6440_v59 = vpop.f32.mrf.mxu0  ;;  %v6442_v11 = vpop.f32.mrf.mxu1 }
 0x133   : > { %8101 = vst [vmem:[#allocation81_spill] sm:$0xff] %v6436_v63 }
 0x135   : > { %2025 = vmatmul.bf16.gmra.mxu1 %v6438_v4  ;;  %2532 = vmatmul.bf16.gmra.mxu0 %v6438_v4 }
 0x136   : > { %2194 = vmatmul.bf16.gmra.mxu2 %v6444_v29  ;;  %2363 = vmatmul.bf16.gmra.mxu3 %v6218_v32  ;;  %v6466_v32 = vor.u32 %v5249_v43, %v4622_v27 }
 0x138   : > { %8108 = vst [vmem:[#allocation88_spill] sm:$0xff] %v6466_v32 }
 0x139   : > { %v6450_v24 = vpop.f32.mrf.mxu2  ;;  %v6452_v63 = vpop.f32.mrf.mxu3 }
 0x13a   : > { %8104 = vst [vmem:[#allocation84_spill] sm:$0xff] %v6450_v24  ;;  %v6454_v50 = vpop.f32.mrf.mxu0  ;;  %v6456_v62 = vpop.f32.mrf.mxu1 }
 0x13b   : > { %8105 = vst [vmem:[#allocation85_spill] sm:$0xff] %v6452_v63 }
 0x141   : > { %v6462_v15 = vpop.f32.mrf.mxu2  ;;  %v6464_v4 = vpop.f32.mrf.mxu3 }
 0x142   : > { %8106 = vst [vmem:[#allocation86_spill] sm:$0xff] %v6462_v15  ;;  %v6468_v29 = vpop.f32.mrf.mxu0  ;;  %v6470_v63 = vpop.f32.mrf.mxu1  ;;  %v4640_v15 = vld [vmem:[%s6050_s20 + $0x98] sm:$0xf] }
 0x143   : > { %8107 = vst [vmem:[#allocation87_spill] sm:$0xff] %v6464_v4 }
 0x145   : > { %2030 = vmatmul.bf16.gmra.mxu1 %v6466_v32  ;;  %2537 = vmatmul.bf16.gmra.mxu0 %v6466_v32  ;;  %v5254_v32 = vld [vmem:[%s6050_s20 + $0xa0] sm:$0xf0] }
 0x146   : > { %2199 = vmatmul.bf16.gmra.mxu2 %v6472_v39  ;;  %2368 = vmatmul.bf16.gmra.mxu3 %v6246_v0  ;;  %v6494_v0 = vor.u32 %v5252_v16, %v4634_v9  ;;  %v6500_v35 = vor.u32 %v5254_v32, %v4640_v15  ;;  %v5347_v16 = vld [vmem:[%s6060_s28 + $0x88] sm:$0xf0]  ;;  %v5108_v9 = vld [vmem:[%s6060_s28 + $0x140] sm:$0xf] }
 0x147   : > { %v5371_v32 = vld [vmem:[%s6060_s28 + $0x148] sm:$0xf0] }
 0x148   : > { %8114 = vst [vmem:[#allocation94_spill] sm:$0xff] %v6494_v0  ;;  %v5109_v15 = vor.u32 %v5371_v32, %v5108_v9  ;;  %v4652_v9 = vld [vmem:[%s6050_s20 + $0xb0] sm:$0xf]  ;;  %v5257_v32 = vld [vmem:[%s6050_s20 + $0xb8] sm:$0xf0] }
 0x149   : > { %v6478_v3 = vpop.f32.mrf.mxu2  ;;  %v6480_v4 = vpop.f32.mrf.mxu3  ;;  %8115 = vst [vmem:[#allocation95_spill] sm:$0xff] %v6500_v35 }
 0x14a   : > { %8110 = vst [vmem:[#allocation90_spill] sm:$0xff] %v6478_v3  ;;  %v6482_v43 = vpop.f32.mrf.mxu0  ;;  %v6484_v27 = vpop.f32.mrf.mxu1  ;;  %3013 = vmatpush.bf16.msra.mxu3 %v5109_v15 }
 0x14b   : > { %8111 = vst [vmem:[#allocation91_spill] sm:$0xff] %v6480_v4 }
 0x151   : > { %v6490_v24 = vpop.f32.mrf.mxu2  ;;  %v6492_v39 = vpop.f32.mrf.mxu3 }
 0x152   : > { %8112 = vst [vmem:[#allocation92_spill] sm:$0xff] %v6490_v24  ;;  %v6496_v3 = vpop.f32.mrf.mxu0  ;;  %v6498_v4 = vpop.f32.mrf.mxu1 }
 0x153   : > { %8113 = vst [vmem:[#allocation93_spill] sm:$0xff] %v6492_v39  ;;  %v5012_v39 = vld [vmem:[%s6060_s28 + $0x80] sm:$0xf] }
 0x154   : > { %v5013_v24 = vor.u32 %v5347_v16, %v5012_v39  ;;  %v5255_v39 = vld [vmem:[%s6050_s20 + $0xac] sm:$0xf]  ;;  %v4646_v16 = vld [vmem:[%s6050_s20 + $0xb4] sm:$0xf0] }
 0x155   : > { %2035 = vmatmul.bf16.gmra.mxu1 %v6494_v0  ;;  %2542 = vmatmul.bf16.gmra.mxu0 %v6494_v0  ;;  %v6530_v15 = vor.u32 %v5255_v39, %v4646_v16  ;;  %v5258_v39 = vld [vmem:[%s6050_s20 + $0xc4] sm:$0xf]  ;;  %v4658_v16 = vld [vmem:[%s6050_s20 + $0xcc] sm:$0xf0] }
 0x156   : > { %2204 = vmatmul.bf16.gmra.mxu2 %v6500_v35  ;;  %2373 = vmatmul.bf16.gmra.mxu3 %v6274_v36  ;;  %v5393_v36 = vld [vmem:[%s6060_s28 + $0x1fc] sm:$0xf] }
 0x157   : > { %2844 = vmatpush.bf16.msra.mxu2 %v5013_v24  ;;  %v5201_v8 = vor.u32 %v5393_v36, %v5198_v7  ;;  %8120 = vst [vmem:[#allocation100_spill] sm:$0xff] %v6530_v15  ;;  %v6536_v36 = vor.u32 %v5257_v32, %v4652_v9  ;;  %v4664_v9 = vld [vmem:[%s6050_s20 + $0xc8] sm:$0xf]  ;;  %v5260_v32 = vld [vmem:[%s6050_s20 + $0xd0] sm:$0xf0] }
 0x159   : > { %v6510_v57 = vpop.f32.mrf.mxu2  ;;  %v6512_v0 = vpop.f32.mrf.mxu3  ;;  %2675 = vmatpush.bf16.msra.mxu1 %v5201_v8  ;;  %8121 = vst [vmem:[#allocation101_spill] sm:$0xff] %v6536_v36 }
 0x15a   : > { %8116 = vst [vmem:[#allocation96_spill] sm:$0xff] %v6510_v57  ;;  %v6514_v35 = vpop.f32.mrf.mxu0  ;;  %v6516_v54 = vpop.f32.mrf.mxu1 }
 0x15b   : > { %8117 = vst [vmem:[#allocation97_spill] sm:$0xff] %v6512_v0 }
 0x161   : > { %v6526_v24 = vpop.f32.mrf.mxu2  ;;  %v6528_v0 = vpop.f32.mrf.mxu3 }
 0x162   : > { %8118 = vst [vmem:[#allocation98_spill] sm:$0xff] %v6526_v24  ;;  %v6532_v57 = vpop.f32.mrf.mxu0  ;;  %v6534_v7 = vpop.f32.mrf.mxu1 }
 0x163   : > { %8119 = vst [vmem:[#allocation99_spill] sm:$0xff] %v6528_v0 }
 0x165   : > { %2040 = vmatmul.bf16.gmra.mxu1 %v6530_v15  ;;  %2547 = vmatmul.bf16.gmra.mxu0 %v6530_v15  ;;  %v6558_v15 = vor.u32 %v5258_v39, %v4658_v16 }
 0x166   : > { %2209 = vmatmul.bf16.gmra.mxu2 %v6536_v36  ;;  %2378 = vmatmul.bf16.gmra.mxu3 %v6302_v12 }
 0x167   : > { %8127 = vst [vmem:[#allocation107_spill] sm:$0xff] %v6558_v15 }
 0x169   : > { %v6542_v45 = vpop.f32.mrf.mxu2  ;;  %v6544_v10 = vpop.f32.mrf.mxu3 }
 0x16a   : > { %8122 = vst [vmem:[#allocation102_spill] sm:$0xff] %v6542_v45  ;;  %v6546_v8 = vpop.f32.mrf.mxu0  ;;  %v6548_v51 = vpop.f32.mrf.mxu1 }
 0x16b   : > { %8123 = vst [vmem:[#allocation103_spill] sm:$0xff] %v6544_v10  ;;  %v6560_v10 = vor.u32 %v5260_v32, %v4664_v9  ;;  %v5261_v9 = vld [vmem:[%s6050_s20 + $0xdc] sm:$0xf]  ;;  %v4670_v32 = vld [vmem:[%s6050_s20 + $0xe4] sm:$0xf0] }
 0x16c   : > { %8124 = vst [vmem:[#allocation104_spill] sm:$0xff] %v6548_v51  ;;  %v6576_v51 = vor.u32 %v5261_v9, %v4670_v32  ;;  %v5266_v9 = vld [vmem:[%s6050_s20 + $0x100] sm:$0xf0] }
 0x16d   : > { %8128 = vst [vmem:[#allocation108_spill] sm:$0xff] %v6560_v10 }
 0x16e   : > { %8129 = vst [vmem:[#allocation109_spill] sm:$0xff] %v6576_v51 }
 0x171   : > { %v6554_v0 = vpop.f32.mrf.mxu2  ;;  %v6556_v24 = vpop.f32.mrf.mxu3 }
 0x172   : > { %8125 = vst [vmem:[#allocation105_spill] sm:$0xff] %v6554_v0  ;;  %v2006_v12 = vpop.f32.mrf.mxu1  ;;  %v2513_v36 = vpop.f32.mrf.mxu0 }
 0x173   : > { %8126 = vst [vmem:[#allocation106_spill] sm:$0xff] %v6556_v24  ;;  %v2007_v24 = vadd.f32 %v2006_v12, %v6320_v25 }
 0x175   : > { %2045 = vmatmul.bf16.gmra.mxu1 %v6558_v15  ;;  %2552 = vmatmul.bf16.gmra.mxu0 %v6558_v15 }
 0x176   : > { %2214 = vmatmul.bf16.gmra.mxu2 %v6560_v10  ;;  %2383 = vmatmul.bf16.gmra.mxu3 %v6101_v44 }
 0x179   : > { %v2175_v0 = vpop.f32.mrf.mxu2  ;;  %v2344_v39 = vpop.f32.mrf.mxu3 }
 0x17a   : > { %v6567_v16 = vadd.f32 %v2175_v0, %v2007_v24  ;;  %v6569_v45 = vadd.f32 %v2513_v36, %v2344_v39  ;;  %v2008_v58 = vpop.f32.mrf.mxu1  ;;  %v2515_v19 = vpop.f32.mrf.mxu0  ;;  %v6582_v24 = vor.u32 %v5263_v28, %v4676_v52  ;;  %v5264_v28 = vld [vmem:[%s6050_s20 + $0xf4] sm:$0xf]  ;;  %v4682_v52 = vld [vmem:[%s6050_s20 + $0xfc] sm:$0xf0]  ;;  %v4688_v39 = vld [vmem:[%s6050_s20 + $0xf8] sm:$0xf] }
 0x17b   : > { %v2009_v15 = vadd.f32 %v2008_v58, %v6334_v30 }
 0x17c   : > { %8130 = vst [vmem:[#allocation110_spill] sm:$0xff] %v6582_v24 }
 0x181   : > { %v2177_v49 = vpop.f32.mrf.mxu2  ;;  %v2346_v10 = vpop.f32.mrf.mxu3 }
 0x182   : > { %v6578_v44 = vadd.f32 %v2177_v49, %v2009_v15  ;;  %v6580_v12 = vadd.f32 %v2515_v19, %v2346_v10  ;;  %v2011_v0 = vpop.f32.mrf.mxu1  ;;  %v2518_v25 = vpop.f32.mrf.mxu0 }
 0x183   : > { %v2012_v49 = vadd.f32 %v2011_v0, %v6348_v55  ;;  %v6598_v0 = vor.u32 %v5264_v28, %v4682_v52  ;;  %v5368_v28 = vld [vmem:[%s6060_s28 + $0x130] sm:$0xf0] }
 0x185   : > { %2050 = vmatmul.bf16.gmra.mxu1 %v6576_v51  ;;  %2557 = vmatmul.bf16.gmra.mxu0 %v6576_v51  ;;  %8132 = vst [vmem:[#allocation112_spill] sm:$0xff] %v6598_v0 }
 0x186   : > { %2219 = vmatmul.bf16.gmra.mxu2 %v6582_v24  ;;  %2388 = vmatmul.bf16.gmra.mxu3 %v6136_v17  ;;  %v6604_v17 = vor.u32 %v5266_v9, %v4688_v39  ;;  %v5392_v24 = vld [vmem:[%s6060_s28 + $0x1f0] sm:$0xf0] }
 0x188   : > { %8135 = vst [vmem:[#allocation115_spill] sm:$0xff] %v6604_v17 }
 0x189   : > { %v2180_v30 = vpop.f32.mrf.mxu2  ;;  %v2349_v19 = vpop.f32.mrf.mxu3 }
 0x18a   : > { %v6589_v58 = vadd.f32 %v2180_v30, %v2012_v49  ;;  %v6591_v15 = vadd.f32 %v2518_v25, %v2349_v19  ;;  %v2013_v36 = vpop.f32.mrf.mxu1  ;;  %v2520_v10 = vpop.f32.mrf.mxu0 }
 0x18b   : > { %v2014_v32 = vadd.f32 %v2013_v36, %v6362_v60  ;;  %v5000_v60 = vld [vmem:[%s6060_s28 + $0x68] sm:$0xf]  ;;  %v5344_v36 = vld [vmem:[%s6060_s28 + $0x70] sm:$0xf0] }
 0x18c   : > { %8131 = vst [vmem:[#allocation111_spill] sm:$0xff] %v6589_v58  ;;  %v5269_v58 = vld [vmem:[%s6050_s20 + $0x118] sm:$0xf0] }
 0x191   : > { %v2182_v51 = vpop.f32.mrf.mxu2  ;;  %v2351_v55 = vpop.f32.mrf.mxu3 }
 0x192   : > { %v6600_v49 = vadd.f32 %v2182_v51, %v2014_v32  ;;  %v6602_v25 = vadd.f32 %v2520_v10, %v2351_v55  ;;  %v2016_v30 = vpop.f32.mrf.mxu1  ;;  %v2523_v19 = vpop.f32.mrf.mxu0  ;;  %v5096_v51 = vld [vmem:[%s6060_s28 + $0x128] sm:$0xf]  ;;  %v5001_v10 = vor.u32 %v5344_v36, %v5000_v60  ;;  %v5390_v60 = vld [vmem:[%s6060_s28 + $0x1e4] sm:$0xf]  ;;  %v5186_v36 = vld [vmem:[%s6060_s28 + $0x1ec] sm:$0xf0] }
 0x193   : > { %v2017_v52 = vadd.f32 %v2016_v30, %v6376_v21  ;;  %v5097_v39 = vor.u32 %v5368_v28, %v5096_v51  ;;  %v5267_v21 = vld [vmem:[%s6050_s20 + $0x10c] sm:$0xf]  ;;  %v4694_v30 = vld [vmem:[%s6050_s20 + $0x114] sm:$0xf0]  ;;  %v4700_v28 = vld [vmem:[%s6050_s20 + $0x110] sm:$0xf] }
 0x194   : > { %8133 = vst [vmem:[#allocation113_spill] sm:$0xff] %v6600_v49  ;;  %2845 = vmatpush.bf16.msra.mxu2 %v5001_v10  ;;  %v5192_v49 = vld [vmem:[%s6060_s28 + $0x1e8] sm:$0xf] }
 0x195   : > { %8134 = vst [vmem:[#allocation114_spill] sm:$0xff] %v6602_v25  ;;  %2055 = vmatmul.bf16.gmra.mxu1 %v6598_v0  ;;  %2562 = vmatmul.bf16.gmra.mxu0 %v6598_v0  ;;  %v5189_v25 = vor.u32 %v5390_v60, %v5186_v36  ;;  %v5193_v51 = vor.u32 %v5392_v24, %v5192_v49 }
 0x196   : > { %2224 = vmatmul.bf16.gmra.mxu2 %v6604_v17  ;;  %2393 = vmatmul.bf16.gmra.mxu3 %v6164_v41  ;;  %v6634_v24 = vor.u32 %v5269_v58, %v4700_v28  ;;  %v5270_v58 = vld [vmem:[%s6050_s20 + $0x124] sm:$0xf]  ;;  %v4712_v28 = vld [vmem:[%s6050_s20 + $0x128] sm:$0xf] }
 0x197   : > { %3014 = vmatpush.bf16.msra.mxu3 %v5097_v39  ;;  %2676 = vmatpush.bf16.msra.mxu1 %v5189_v25 }
 0x198   : > { %3183 = vmatpush.bf16.msra.mxu0 %v5193_v51  ;;  %8137 = vst [vmem:[#allocation117_spill] sm:$0xff] %v6634_v24  ;;  %v4706_v51 = vld [vmem:[%s6050_s20 + $0x12c] sm:$0xf0] }
 0x199   : > { %v2185_v9 = vpop.f32.mrf.mxu2  ;;  %v2354_v32 = vpop.f32.mrf.mxu3 }
 0x19a   : > { %v6615_v55 = vadd.f32 %v2185_v9, %v2017_v52  ;;  %v6617_v0 = vadd.f32 %v2523_v19, %v2354_v32  ;;  %v2018_v41 = vpop.f32.mrf.mxu1  ;;  %v2525_v17 = vpop.f32.mrf.mxu0  ;;  %v6628_v9 = vor.u32 %v5267_v21, %v4694_v30 }
 0x19b   : > { %v2019_v10 = vadd.f32 %v2018_v41, %v6394_v20 }
 0x19c   : > { %8136 = vst [vmem:[#allocation116_spill] sm:$0xff] %v6628_v9 }
 0x1a1   : > { %v2187_v52 = vpop.f32.mrf.mxu2  ;;  %v2356_v19 = vpop.f32.mrf.mxu3 }
 0x1a2   : > { %v6630_v32 = vadd.f32 %v2187_v52, %v2019_v10  ;;  %v6632_v39 = vadd.f32 %v2525_v17, %v2356_v19  ;;  %v2021_v60 = vpop.f32.mrf.mxu1  ;;  %v2528_v36 = vpop.f32.mrf.mxu0  ;;  %v5272_v10 = vld [vmem:[%s6050_s20 + $0x130] sm:$0xf0] }
 0x1a3   : > { %v2022_v41 = vadd.f32 %v2021_v60, %v6412_v53 }
 0x1a5   : > { %2060 = vmatmul.bf16.gmra.mxu1 %v6628_v9  ;;  %2567 = vmatmul.bf16.gmra.mxu0 %v6628_v9 }
 0x1a6   : > { %2229 = vmatmul.bf16.gmra.mxu2 %v6634_v24  ;;  %2398 = vmatmul.bf16.gmra.mxu3 %v6192_v5  ;;  %v6650_v24 = vor.u32 %v5270_v58, %v4706_v51  ;;  %v5273_v51 = vld [vmem:[%s6050_s20 + $0x13c] sm:$0xf] }
 0x1a8   : > { %8138 = vst [vmem:[#allocation118_spill] sm:$0xff] %v6650_v24 }
 0x1a9   : > { %v2190_v20 = vpop.f32.mrf.mxu2  ;;  %v2359_v17 = vpop.f32.mrf.mxu3 }
 0x1aa   : > { %v6641_v49 = vadd.f32 %v2190_v20, %v2022_v41  ;;  %v6643_v25 = vadd.f32 %v2528_v36, %v2359_v17  ;;  %v2023_v21 = vpop.f32.mrf.mxu1  ;;  %v2530_v30 = vpop.f32.mrf.mxu0  ;;  %v6656_v41 = vor.u32 %v5272_v10, %v4712_v28  ;;  %v4718_v28 = vld [vmem:[%s6050_s20 + $0x144] sm:$0xf0]  ;;  %v4724_v10 = vld [vmem:[%s6050_s20 + $0x140] sm:$0xf] }
 0x1ab   : > { %v2024_v52 = vadd.f32 %v2023_v21, %v6426_v46 }
 0x1ac   : > { %8140 = vst [vmem:[#allocation120_spill] sm:$0xff] %v6656_v41 }
 0x1b1   : > { %v2192_v19 = vpop.f32.mrf.mxu2  ;;  %v2361_v9 = vpop.f32.mrf.mxu3 }
 0x1b2   : > { %v6652_v5 = vadd.f32 %v2192_v19, %v2024_v52  ;;  %v6654_v53 = vadd.f32 %v2530_v30, %v2361_v9  ;;  %v2026_v60 = vpop.f32.mrf.mxu1  ;;  %v2533_v36 = vpop.f32.mrf.mxu0  ;;  %v5275_v52 = vld [vmem:[%s6050_s20 + $0x148] sm:$0xf0] }
 0x1b3   : > { %v2027_v46 = vadd.f32 %v2026_v60, %v6440_v59 }
 0x1b4   : > { %8139 = vst [vmem:[#allocation119_spill] sm:$0xff] %v6652_v5  ;;  %v6672_v5 = vor.u32 %v5273_v51, %v4718_v28  ;;  %v5276_v51 = vld [vmem:[%s6050_s20 + $0x154] sm:$0xf]  ;;  %v4730_v28 = vld [vmem:[%s6050_s20 + $0x15c] sm:$0xf0] }
 0x1b5   : > { %2065 = vmatmul.bf16.gmra.mxu1 %v6650_v24  ;;  %2572 = vmatmul.bf16.gmra.mxu0 %v6650_v24 }
 0x1b6   : > { %2234 = vmatmul.bf16.gmra.mxu2 %v6656_v41  ;;  %2403 = vmatmul.bf16.gmra.mxu3 %v6220_v33  ;;  %8141 = vst [vmem:[#allocation121_spill] sm:$0xff] %v6672_v5 }
 0x1b9   : > { %v2195_v20 = vpop.f32.mrf.mxu2  ;;  %v2364_v9 = vpop.f32.mrf.mxu3 }
 0x1ba   : > { %v6663_v17 = vadd.f32 %v2195_v20, %v2027_v46  ;;  %v6665_v21 = vadd.f32 %v2533_v36, %v2364_v9  ;;  %v2028_v30 = vpop.f32.mrf.mxu1  ;;  %v2535_v58 = vpop.f32.mrf.mxu0  ;;  %v6678_v46 = vor.u32 %v5275_v52, %v4724_v10  ;;  %v4736_v10 = vld [vmem:[%s6050_s20 + $0x158] sm:$0xf]  ;;  %v5278_v52 = vld [vmem:[%s6050_s20 + $0x160] sm:$0xf0] }
 0x1bb   : > { %v2029_v19 = vadd.f32 %v2028_v30, %v6454_v50 }
 0x1bc   : > { %8142 = vst [vmem:[#allocation122_spill] sm:$0xff] %v6678_v46 }
 0x1c1   : > { %v2197_v24 = vpop.f32.mrf.mxu2  ;;  %v2366_v41 = vpop.f32.mrf.mxu3 }
 0x1c2   : > { %v6674_v33 = vadd.f32 %v2197_v24, %v2029_v19  ;;  %v6676_v59 = vadd.f32 %v2535_v58, %v2366_v41  ;;  %v2031_v60 = vpop.f32.mrf.mxu1  ;;  %v2538_v36 = vpop.f32.mrf.mxu0 }
 0x1c3   : > { %v2032_v50 = vadd.f32 %v2031_v60, %v6468_v29  ;;  %v6694_v60 = vor.u32 %v5276_v51, %v4730_v28  ;;  %v5365_v51 = vld [vmem:[%s6060_s28 + $0x118] sm:$0xf0] }
 0x1c5   : > { %2070 = vmatmul.bf16.gmra.mxu1 %v6672_v5  ;;  %2577 = vmatmul.bf16.gmra.mxu0 %v6672_v5  ;;  %8144 = vst [vmem:[#allocation124_spill] sm:$0xff] %v6694_v60 }
 0x1c6   : > { %2239 = vmatmul.bf16.gmra.mxu2 %v6678_v46  ;;  %2408 = vmatmul.bf16.gmra.mxu3 %v6248_v1  ;;  %v6700_v1 = vor.u32 %v5278_v52, %v4736_v10  ;;  %v5389_v46 = vld [vmem:[%s6060_s28 + $0x1d8] sm:$0xf0] }
 0x1c8   : > { %8147 = vst [vmem:[#allocation127_spill] sm:$0xff] %v6700_v1 }
 0x1c9   : > { %v2200_v24 = vpop.f32.mrf.mxu2  ;;  %v2369_v41 = vpop.f32.mrf.mxu3 }
 0x1ca   : > { %v6685_v20 = vadd.f32 %v2200_v24, %v2032_v50  ;;  %v6687_v9 = vadd.f32 %v2538_v36, %v2369_v41  ;;  %v2033_v30 = vpop.f32.mrf.mxu1  ;;  %v2540_v58 = vpop.f32.mrf.mxu0 }
 0x1cb   : > { %v2034_v19 = vadd.f32 %v2033_v30, %v6482_v43  ;;  %v4988_v43 = vld [vmem:[%s6060_s28 + $0x50] sm:$0xf]  ;;  %v5341_v30 = vld [vmem:[%s6060_s28 + $0x58] sm:$0xf0] }
 0x1cc   : > { %8143 = vst [vmem:[#allocation123_spill] sm:$0xff] %v6685_v20  ;;  %v5281_v20 = vld [vmem:[%s6050_s20 + $0x178] sm:$0xf0] }
 0x1d1   : > { %v2202_v5 = vpop.f32.mrf.mxu2  ;;  %v2371_v29 = vpop.f32.mrf.mxu3 }
 0x1d2   : > { %v6696_v50 = vadd.f32 %v2202_v5, %v2034_v19  ;;  %v6698_v36 = vadd.f32 %v2540_v58, %v2371_v29  ;;  %v2036_v24 = vpop.f32.mrf.mxu1  ;;  %v2543_v41 = vpop.f32.mrf.mxu0  ;;  %v5084_v5 = vld [vmem:[%s6060_s28 + $0x110] sm:$0xf]  ;;  %v4989_v58 = vor.u32 %v5341_v30, %v4988_v43  ;;  %v5387_v43 = vld [vmem:[%s6060_s28 + $0x1cc] sm:$0xf]  ;;  %v5174_v30 = vld [vmem:[%s6060_s28 + $0x1d4] sm:$0xf0] }
 0x1d3   : > { %v2037_v28 = vadd.f32 %v2036_v24, %v6496_v3  ;;  %v5085_v10 = vor.u32 %v5365_v51, %v5084_v5  ;;  %v5279_v3 = vld [vmem:[%s6050_s20 + $0x16c] sm:$0xf]  ;;  %v4742_v24 = vld [vmem:[%s6050_s20 + $0x174] sm:$0xf0]  ;;  %v4748_v51 = vld [vmem:[%s6050_s20 + $0x170] sm:$0xf] }
 0x1d4   : > { %8145 = vst [vmem:[#allocation125_spill] sm:$0xff] %v6696_v50  ;;  %2846 = vmatpush.bf16.msra.mxu2 %v4989_v58  ;;  %v5180_v50 = vld [vmem:[%s6060_s28 + $0x1d0] sm:$0xf] }
 0x1d5   : > { %8146 = vst [vmem:[#allocation126_spill] sm:$0xff] %v6698_v36  ;;  %2075 = vmatmul.bf16.gmra.mxu1 %v6694_v60  ;;  %2582 = vmatmul.bf16.gmra.mxu0 %v6694_v60  ;;  %v5177_v36 = vor.u32 %v5387_v43, %v5174_v30  ;;  %v5181_v5 = vor.u32 %v5389_v46, %v5180_v50 }
 0x1d6   : > { %2244 = vmatmul.bf16.gmra.mxu2 %v6700_v1  ;;  %2413 = vmatmul.bf16.gmra.mxu3 %v6276_v37  ;;  %v6730_v46 = vor.u32 %v5281_v20, %v4748_v51  ;;  %v5282_v20 = vld [vmem:[%s6050_s20 + $0x184] sm:$0xf]  ;;  %v4760_v51 = vld [vmem:[%s6050_s20 + $0x188] sm:$0xf] }
 0x1d7   : > { %3015 = vmatpush.bf16.msra.mxu3 %v5085_v10  ;;  %2677 = vmatpush.bf16.msra.mxu1 %v5177_v36 }
 0x1d8   : > { %3184 = vmatpush.bf16.msra.mxu0 %v5181_v5  ;;  %8149 = vst [vmem:[#allocation129_spill] sm:$0xff] %v6730_v46  ;;  %v4754_v5 = vld [vmem:[%s6050_s20 + $0x18c] sm:$0xf0] }
 0x1d9   : > { %v2205_v52 = vpop.f32.mrf.mxu2  ;;  %v2374_v19 = vpop.f32.mrf.mxu3 }
 0x1da   : > { %v6711_v29 = vadd.f32 %v2205_v52, %v2037_v28  ;;  %v6713_v60 = vadd.f32 %v2543_v41, %v2374_v19  ;;  %v2038_v37 = vpop.f32.mrf.mxu1  ;;  %v2545_v1 = vpop.f32.mrf.mxu0  ;;  %v6724_v52 = vor.u32 %v5279_v3, %v4742_v24 }
 0x1db   : > { %v2039_v58 = vadd.f32 %v2038_v37, %v6514_v35 }
 0x1dc   : > { %8148 = vst [vmem:[#allocation128_spill] sm:$0xff] %v6724_v52 }
 0x1e1   : > { %v2207_v28 = vpop.f32.mrf.mxu2  ;;  %v2376_v41 = vpop.f32.mrf.mxu3 }
 0x1e2   : > { %v6726_v19 = vadd.f32 %v2207_v28, %v2039_v58  ;;  %v6728_v10 = vadd.f32 %v2545_v1, %v2376_v41  ;;  %v2041_v43 = vpop.f32.mrf.mxu1  ;;  %v2548_v30 = vpop.f32.mrf.mxu0  ;;  %v5284_v58 = vld [vmem:[%s6050_s20 + $0x190] sm:$0xf0] }
 0x1e3   : > { %v2042_v35 = vadd.f32 %v2041_v43, %v6532_v57 }
 0x1e5   : > { %2080 = vmatmul.bf16.gmra.mxu1 %v6724_v52  ;;  %2587 = vmatmul.bf16.gmra.mxu0 %v6724_v52 }
 0x1e6   : > { %2249 = vmatmul.bf16.gmra.mxu2 %v6730_v46  ;;  %2418 = vmatmul.bf16.gmra.mxu3 %v6304_v13  ;;  %v6746_v46 = vor.u32 %v5282_v20, %v4754_v5  ;;  %v5285_v5 = vld [vmem:[%s6050_s20 + $0x19c] sm:$0xf] }
 0x1e8   : > { %8150 = vst [vmem:[#allocation130_spill] sm:$0xff] %v6746_v46 }
 0x1e9   : > { %v2210_v37 = vpop.f32.mrf.mxu2  ;;  %v2379_v1 = vpop.f32.mrf.mxu3 }
 0x1ea   : > { %v6737_v50 = vadd.f32 %v2210_v37, %v2042_v35  ;;  %v6739_v36 = vadd.f32 %v2548_v30, %v2379_v1  ;;  %v2043_v3 = vpop.f32.mrf.mxu1  ;;  %v2550_v24 = vpop.f32.mrf.mxu0  ;;  %v6752_v35 = vor.u32 %v5284_v58, %v4760_v51  ;;  %v4766_v51 = vld [vmem:[%s6050_s20 + $0x1a4] sm:$0xf0]  ;;  %v4772_v58 = vld [vmem:[%s6050_s20 + $0x1a0] sm:$0xf] }
 0x1eb   : > { %v2044_v28 = vadd.f32 %v2043_v3, %v6546_v8 }
 0x1ec   : > { %8152 = vst [vmem:[#allocation132_spill] sm:$0xff] %v6752_v35 }
 0x1f1   : > { %v2212_v41 = vpop.f32.mrf.mxu2  ;;  %v2381_v52 = vpop.f32.mrf.mxu3 }
 0x1f2   : > { %v6748_v13 = vadd.f32 %v2212_v41, %v2044_v28  ;;  %v6750_v57 = vadd.f32 %v2550_v24, %v2381_v52  ;;  %v2046_v43 = vpop.f32.mrf.mxu1  ;;  %v2553_v30 = vpop.f32.mrf.mxu0  ;;  %v5287_v28 = vld [vmem:[%s6050_s20 + $0x1a8] sm:$0xf0] }
 0x1f3   : > { %v2047_v8 = vadd.f32 %v2046_v43, %v6322_v26 }
 0x1f4   : > { %8151 = vst [vmem:[#allocation131_spill] sm:$0xff] %v6748_v13  ;;  %v6768_v13 = vor.u32 %v5285_v5, %v4766_v51  ;;  %v5288_v5 = vld [vmem:[%s6050_s20 + $0x1b4] sm:$0xf]  ;;  %v4778_v51 = vld [vmem:[%s6050_s20 + $0x1bc] sm:$0xf0] }
 0x1f5   : > { %2085 = vmatmul.bf16.gmra.mxu1 %v6746_v46  ;;  %2592 = vmatmul.bf16.gmra.mxu0 %v6746_v46 }
 0x1f6   : > { %2254 = vmatmul.bf16.gmra.mxu2 %v6752_v35  ;;  %2423 = vmatmul.bf16.gmra.mxu3 %v6106_v48  ;;  %8153 = vst [vmem:[#allocation133_spill] sm:$0xff] %v6768_v13 }
 0x1f9   : > { %v2215_v37 = vpop.f32.mrf.mxu2  ;;  %v2384_v52 = vpop.f32.mrf.mxu3 }
 0x1fa   : > { %v6759_v1 = vadd.f32 %v2215_v37, %v2047_v8  ;;  %v6761_v3 = vadd.f32 %v2553_v30, %v2384_v52  ;;  %v2048_v24 = vpop.f32.mrf.mxu1  ;;  %v2555_v20 = vpop.f32.mrf.mxu0  ;;  %v6774_v8 = vor.u32 %v5287_v28, %v4772_v58  ;;  %v4784_v58 = vld [vmem:[%s6050_s20 + $0x1b8] sm:$0xf]  ;;  %v5290_v28 = vld [vmem:[%s6050_s20 + $0x1c0] sm:$0xf0] }
 0x1fb   : > { %v2049_v41 = vadd.f32 %v2048_v24, %v6336_v31 }
 0x1fc   : > { %8154 = vst [vmem:[#allocation134_spill] sm:$0xff] %v6774_v8 }
 0x201   : > { %v2217_v46 = vpop.f32.mrf.mxu2  ;;  %v2386_v35 = vpop.f32.mrf.mxu3 }
 0x202   : > { %v6770_v48 = vadd.f32 %v2217_v46, %v2049_v41  ;;  %v6772_v26 = vadd.f32 %v2555_v20, %v2386_v35  ;;  %v2051_v43 = vpop.f32.mrf.mxu1  ;;  %v2558_v30 = vpop.f32.mrf.mxu0 }
 0x203   : > { %v2052_v31 = vadd.f32 %v2051_v43, %v6350_v56  ;;  %v6790_v43 = vor.u32 %v5288_v5, %v4778_v51  ;;  %v5362_v5 = vld [vmem:[%s6060_s28 + $0x100] sm:$0xf0] }
 0x205   : > { %2090 = vmatmul.bf16.gmra.mxu1 %v6768_v13  ;;  %2597 = vmatmul.bf16.gmra.mxu0 %v6768_v13  ;;  %8156 = vst [vmem:[#allocation136_spill] sm:$0xff] %v6790_v43 }
 0x206   : > { %2259 = vmatmul.bf16.gmra.mxu2 %v6774_v8  ;;  %2428 = vmatmul.bf16.gmra.mxu3 %v6138_v18  ;;  %v6796_v18 = vor.u32 %v5290_v28, %v4784_v58  ;;  %v5386_v8 = vld [vmem:[%s6060_s28 + $0x1c0] sm:$0xf0] }
 0x208   : > { %8159 = vst [vmem:[#allocation139_spill] sm:$0xff] %v6796_v18 }
 0x209   : > { %v2220_v46 = vpop.f32.mrf.mxu2  ;;  %v2389_v35 = vpop.f32.mrf.mxu3 }
 0x20a   : > { %v6781_v37 = vadd.f32 %v2220_v46, %v2052_v31  ;;  %v6783_v52 = vadd.f32 %v2558_v30, %v2389_v35  ;;  %v2053_v24 = vpop.f32.mrf.mxu1  ;;  %v2560_v20 = vpop.f32.mrf.mxu0 }
 0x20b   : > { %v2054_v41 = vadd.f32 %v2053_v24, %v6364_v61  ;;  %v4976_v61 = vld [vmem:[%s6060_s28 + $0x38] sm:$0xf]  ;;  %v5338_v24 = vld [vmem:[%s6060_s28 + $0x40] sm:$0xf0] }
 0x20c   : > { %8155 = vst [vmem:[#allocation135_spill] sm:$0xff] %v6781_v37  ;;  %v5293_v37 = vld [vmem:[%s6050_s20 + $0x1d8] sm:$0xf0] }
 0x211   : > { %v2222_v13 = vpop.f32.mrf.mxu2  ;;  %v2391_v56 = vpop.f32.mrf.mxu3 }
 0x212   : > { %v6792_v31 = vadd.f32 %v2222_v13, %v2054_v41  ;;  %v6794_v30 = vadd.f32 %v2560_v20, %v2391_v56  ;;  %v2056_v46 = vpop.f32.mrf.mxu1  ;;  %v2563_v35 = vpop.f32.mrf.mxu0  ;;  %v5072_v13 = vld [vmem:[%s6060_s28 + $0xf8] sm:$0xf]  ;;  %v4977_v20 = vor.u32 %v5338_v24, %v4976_v61  ;;  %v5384_v61 = vld [vmem:[%s6060_s28 + $0x1b4] sm:$0xf]  ;;  %v5162_v24 = vld [vmem:[%s6060_s28 + $0x1bc] sm:$0xf0] }
 0x213   : > { %v2057_v51 = vadd.f32 %v2056_v46, %v6378_v22  ;;  %v5073_v58 = vor.u32 %v5362_v5, %v5072_v13  ;;  %v5291_v22 = vld [vmem:[%s6050_s20 + $0x1cc] sm:$0xf]  ;;  %v4790_v46 = vld [vmem:[%s6050_s20 + $0x1d4] sm:$0xf0]  ;;  %v4796_v5 = vld [vmem:[%s6050_s20 + $0x1d0] sm:$0xf] }
 0x214   : > { %8157 = vst [vmem:[#allocation137_spill] sm:$0xff] %v6792_v31  ;;  %2847 = vmatpush.bf16.msra.mxu2 %v4977_v20  ;;  %v5168_v31 = vld [vmem:[%s6060_s28 + $0x1b8] sm:$0xf] }
 0x215   : > { %8158 = vst [vmem:[#allocation138_spill] sm:$0xff] %v6794_v30  ;;  %2095 = vmatmul.bf16.gmra.mxu1 %v6790_v43  ;;  %2602 = vmatmul.bf16.gmra.mxu0 %v6790_v43  ;;  %v5165_v30 = vor.u32 %v5384_v61, %v5162_v24  ;;  %v5169_v13 = vor.u32 %v5386_v8, %v5168_v31 }
 0x216   : > { %2264 = vmatmul.bf16.gmra.mxu2 %v6796_v18  ;;  %2433 = vmatmul.bf16.gmra.mxu3 %v6166_v42  ;;  %v6826_v8 = vor.u32 %v5293_v37, %v4796_v5  ;;  %v5294_v37 = vld [vmem:[%s6050_s20 + $0x1e4] sm:$0xf]  ;;  %v4808_v5 = vld [vmem:[%s6050_s20 + $0x1e8] sm:$0xf] }
 0x217   : > { %3016 = vmatpush.bf16.msra.mxu3 %v5073_v58  ;;  %2678 = vmatpush.bf16.msra.mxu1 %v5165_v30 }
 0x218   : > { %3185 = vmatpush.bf16.msra.mxu0 %v5169_v13  ;;  %8161 = vst [vmem:[#allocation141_spill] sm:$0xff] %v6826_v8  ;;  %v4802_v13 = vld [vmem:[%s6050_s20 + $0x1ec] sm:$0xf0] }
 0x219   : > { %v2225_v28 = vpop.f32.mrf.mxu2  ;;  %v2394_v41 = vpop.f32.mrf.mxu3 }
 0x21a   : > { %v6807_v56 = vadd.f32 %v2225_v28, %v2057_v51  ;;  %v6809_v43 = vadd.f32 %v2563_v35, %v2394_v41  ;;  %v2058_v42 = vpop.f32.mrf.mxu1  ;;  %v2565_v18 = vpop.f32.mrf.mxu0  ;;  %v6820_v28 = vor.u32 %v5291_v22, %v4790_v46 }
 0x21b   : > { %v2059_v20 = vadd.f32 %v2058_v42, %v6396_v23 }
 0x21c   : > { %8160 = vst [vmem:[#allocation140_spill] sm:$0xff] %v6820_v28 }
 0x221   : > { %v2227_v51 = vpop.f32.mrf.mxu2  ;;  %v2396_v35 = vpop.f32.mrf.mxu3 }
 0x222   : > { %v6822_v41 = vadd.f32 %v2227_v51, %v2059_v20  ;;  %v6824_v58 = vadd.f32 %v2565_v18, %v2396_v35  ;;  %v2061_v61 = vpop.f32.mrf.mxu1  ;;  %v2568_v24 = vpop.f32.mrf.mxu0  ;;  %v5296_v20 = vld [vmem:[%s6050_s20 + $0x1f0] sm:$0xf0] }
 0x223   : > { %v2062_v42 = vadd.f32 %v2061_v61, %v6414_v40 }
 0x225   : > { %2100 = vmatmul.bf16.gmra.mxu1 %v6820_v28  ;;  %2607 = vmatmul.bf16.gmra.mxu0 %v6820_v28 }
 0x226   : > { %2269 = vmatmul.bf16.gmra.mxu2 %v6826_v8  ;;  %2438 = vmatmul.bf16.gmra.mxu3 %v6194_v6  ;;  %v6842_v8 = vor.u32 %v5294_v37, %v4802_v13  ;;  %v5297_v13 = vld [vmem:[%s6050_s20 + $0x1fc] sm:$0xf] }
 0x228   : > { %8162 = vst [vmem:[#allocation142_spill] sm:$0xff] %v6842_v8 }
 0x229   : > { %v2230_v23 = vpop.f32.mrf.mxu2  ;;  %v2399_v18 = vpop.f32.mrf.mxu3 }
 0x22a   : > { %v6833_v31 = vadd.f32 %v2230_v23, %v2062_v42  ;;  %v6835_v30 = vadd.f32 %v2568_v24, %v2399_v18  ;;  %v2063_v22 = vpop.f32.mrf.mxu1  ;;  %v2570_v46 = vpop.f32.mrf.mxu0  ;;  %v6848_v42 = vor.u32 %v5296_v20, %v4808_v5  ;;  %v4814_v5 = vld [vmem:[%s6050_s20 + $0x204] sm:$0xf0]  ;;  %v4820_v20 = vld [vmem:[%s6050_s20 + $0x200] sm:$0xf] }
 0x22b   : > { %v2064_v51 = vadd.f32 %v2063_v22, %v6428_v47 }
 0x22c   : > { %8164 = vst [vmem:[#allocation144_spill] sm:$0xff] %v6848_v42 }
 0x231   : > { %v2232_v35 = vpop.f32.mrf.mxu2  ;;  %v2401_v28 = vpop.f32.mrf.mxu3 }
 0x232   : > { %v6844_v6 = vadd.f32 %v2232_v35, %v2064_v51  ;;  %v6846_v40 = vadd.f32 %v2570_v46, %v2401_v28  ;;  %v2066_v61 = vpop.f32.mrf.mxu1  ;;  %v2573_v24 = vpop.f32.mrf.mxu0  ;;  %v5299_v51 = vld [vmem:[%s6050_s20 + $0x208] sm:$0xf0] }
 0x233   : > { %v2067_v47 = vadd.f32 %v2066_v61, %v6442_v11 }
 0x234   : > { %8163 = vst [vmem:[#allocation143_spill] sm:$0xff] %v6844_v6  ;;  %v6864_v6 = vor.u32 %v5297_v13, %v4814_v5  ;;  %v5300_v13 = vld [vmem:[%s6050_s20 + $0x214] sm:$0xf]  ;;  %v4826_v5 = vld [vmem:[%s6050_s20 + $0x21c] sm:$0xf0] }
 0x235   : > { %2105 = vmatmul.bf16.gmra.mxu1 %v6842_v8  ;;  %2612 = vmatmul.bf16.gmra.mxu0 %v6842_v8 }
 0x236   : > { %2274 = vmatmul.bf16.gmra.mxu2 %v6848_v42  ;;  %2443 = vmatmul.bf16.gmra.mxu3 %v6222_v34  ;;  %8165 = vst [vmem:[#allocation145_spill] sm:$0xff] %v6864_v6 }
 0x239   : > { %v2235_v23 = vpop.f32.mrf.mxu2  ;;  %v2404_v28 = vpop.f32.mrf.mxu3 }
 0x23a   : > { %v6855_v18 = vadd.f32 %v2235_v23, %v2067_v47  ;;  %v6857_v22 = vadd.f32 %v2573_v24, %v2404_v28  ;;  %v2068_v46 = vpop.f32.mrf.mxu1  ;;  %v2575_v37 = vpop.f32.mrf.mxu0  ;;  %v6870_v47 = vor.u32 %v5299_v51, %v4820_v20  ;;  %v4832_v20 = vld [vmem:[%s6050_s20 + $0x218] sm:$0xf]  ;;  %v5302_v51 = vld [vmem:[%s6050_s20 + $0x220] sm:$0xf0] }
 0x23b   : > { %v2069_v35 = vadd.f32 %v2068_v46, %v6456_v62 }
 0x23c   : > { %8166 = vst [vmem:[#allocation146_spill] sm:$0xff] %v6870_v47 }
 0x241   : > { %v2237_v8 = vpop.f32.mrf.mxu2  ;;  %v2406_v42 = vpop.f32.mrf.mxu3 }
 0x242   : > { %v6866_v34 = vadd.f32 %v2237_v8, %v2069_v35  ;;  %v6868_v11 = vadd.f32 %v2575_v37, %v2406_v42  ;;  %v2071_v61 = vpop.f32.mrf.mxu1  ;;  %v2578_v24 = vpop.f32.mrf.mxu0 }
 0x243   : > { %v2072_v62 = vadd.f32 %v2071_v61, %v6470_v63  ;;  %v6886_v61 = vor.u32 %v5300_v13, %v4826_v5  ;;  %v5359_v13 = vld [vmem:[%s6060_s28 + $0xe8] sm:$0xf0] }
 0x245   : > { %2110 = vmatmul.bf16.gmra.mxu1 %v6864_v6  ;;  %2617 = vmatmul.bf16.gmra.mxu0 %v6864_v6  ;;  %8168 = vst [vmem:[#allocation148_spill] sm:$0xff] %v6886_v61 }
 0x246   : > { %2279 = vmatmul.bf16.gmra.mxu2 %v6870_v47  ;;  %2448 = vmatmul.bf16.gmra.mxu3 %v6250_v2  ;;  %v6892_v2 = vor.u32 %v5302_v51, %v4832_v20  ;;  %v5383_v47 = vld [vmem:[%s6060_s28 + $0x1a8] sm:$0xf0] }
 0x248   : > { %8171 = vst [vmem:[#allocation151_spill] sm:$0xff] %v6892_v2 }
 0x249   : > { %v2240_v8 = vpop.f32.mrf.mxu2  ;;  %v2409_v42 = vpop.f32.mrf.mxu3 }
 0x24a   : > { %v6877_v23 = vadd.f32 %v2240_v8, %v2072_v62  ;;  %v6879_v28 = vadd.f32 %v2578_v24, %v2409_v42  ;;  %v2073_v46 = vpop.f32.mrf.mxu1  ;;  %v2580_v37 = vpop.f32.mrf.mxu0 }
 0x24b   : > { %v2074_v35 = vadd.f32 %v2073_v46, %v6484_v27  ;;  %v4964_v27 = vld [vmem:[%s6060_s28 + $0x20] sm:$0xf]  ;;  %v5335_v46 = vld [vmem:[%s6060_s28 + $0x28] sm:$0xf0] }
 0x24c   : > { %8167 = vst [vmem:[#allocation147_spill] sm:$0xff] %v6877_v23  ;;  %v5305_v23 = vld [vmem:[%s6050_s20 + $0x238] sm:$0xf0] }
 0x251   : > { %v2242_v6 = vpop.f32.mrf.mxu2  ;;  %v2411_v63 = vpop.f32.mrf.mxu3 }
 0x252   : > { %v6888_v62 = vadd.f32 %v2242_v6, %v2074_v35  ;;  %v6890_v24 = vadd.f32 %v2580_v37, %v2411_v63  ;;  %v2076_v8 = vpop.f32.mrf.mxu1  ;;  %v2583_v42 = vpop.f32.mrf.mxu0  ;;  %v5060_v6 = vld [vmem:[%s6060_s28 + $0xe0] sm:$0xf]  ;;  %v4965_v37 = vor.u32 %v5335_v46, %v4964_v27  ;;  %v5381_v27 = vld [vmem:[%s6060_s28 + $0x19c] sm:$0xf]  ;;  %v5150_v46 = vld [vmem:[%s6060_s28 + $0x1a4] sm:$0xf0] }
 0x253   : > { %v2077_v5 = vadd.f32 %v2076_v8, %v6498_v4  ;;  %v5061_v20 = vor.u32 %v5359_v13, %v5060_v6  ;;  %v5303_v4 = vld [vmem:[%s6050_s20 + $0x22c] sm:$0xf]  ;;  %v4838_v8 = vld [vmem:[%s6050_s20 + $0x234] sm:$0xf0]  ;;  %v4844_v13 = vld [vmem:[%s6050_s20 + $0x230] sm:$0xf] }
 0x254   : > { %8169 = vst [vmem:[#allocation149_spill] sm:$0xff] %v6888_v62  ;;  %2848 = vmatpush.bf16.msra.mxu2 %v4965_v37  ;;  %v5156_v62 = vld [vmem:[%s6060_s28 + $0x1a0] sm:$0xf] }
 0x255   : > { %8170 = vst [vmem:[#allocation150_spill] sm:$0xff] %v6890_v24  ;;  %2115 = vmatmul.bf16.gmra.mxu1 %v6886_v61  ;;  %2622 = vmatmul.bf16.gmra.mxu0 %v6886_v61  ;;  %v5153_v24 = vor.u32 %v5381_v27, %v5150_v46  ;;  %v5157_v6 = vor.u32 %v5383_v47, %v5156_v62 }
 0x256   : > { %2284 = vmatmul.bf16.gmra.mxu2 %v6892_v2  ;;  %2453 = vmatmul.bf16.gmra.mxu3 %v6278_v38  ;;  %v6922_v47 = vor.u32 %v5305_v23, %v4844_v13  ;;  %v5306_v23 = vld [vmem:[%s6050_s20 + $0x244] sm:$0xf]  ;;  %v4856_v13 = vld [vmem:[%s6050_s20 + $0x248] sm:$0xf] }
 0x257   : > { %3017 = vmatpush.bf16.msra.mxu3 %v5061_v20  ;;  %2679 = vmatpush.bf16.msra.mxu1 %v5153_v24 }
 0x258   : > { %3186 = vmatpush.bf16.msra.mxu0 %v5157_v6  ;;  %8175 = vst [vmem:[#allocation155_spill] sm:$0xff] %v6922_v47  ;;  %v4850_v6 = vld [vmem:[%s6050_s20 + $0x24c] sm:$0xf0] }
 0x259   : > { %v2245_v51 = vpop.f32.mrf.mxu2  ;;  %v2414_v35 = vpop.f32.mrf.mxu3 }
 0x25a   : > { %v6903_v63 = vadd.f32 %v2245_v51, %v2077_v5  ;;  %v6905_v61 = vadd.f32 %v2583_v42, %v2414_v35  ;;  %v2078_v38 = vpop.f32.mrf.mxu1  ;;  %v2585_v2 = vpop.f32.mrf.mxu0  ;;  %v6916_v51 = vor.u32 %v5303_v4, %v4838_v8 }
 0x25b   : > { %v2079_v37 = vadd.f32 %v2078_v38, %v6516_v54 }
 0x25c   : > { %8172 = vst [vmem:[#allocation152_spill] sm:$0xff] %v6916_v51 }
 0x261   : > { %v2247_v5 = vpop.f32.mrf.mxu2  ;;  %v2416_v42 = vpop.f32.mrf.mxu3 }
 0x262   : > { %v6918_v35 = vadd.f32 %v2247_v5, %v2079_v37  ;;  %v6920_v20 = vadd.f32 %v2585_v2, %v2416_v42  ;;  %v2081_v27 = vpop.f32.mrf.mxu1  ;;  %v2588_v46 = vpop.f32.mrf.mxu0  ;;  %v5308_v37 = vld [vmem:[%s6050_s20 + $0x250] sm:$0xf0] }
 0x263   : > { %v2082_v38 = vadd.f32 %v2081_v27, %v6534_v7  ;;  %v8178_v5 = vld [vmem:[#allocation104_spill] sm:$0xff] }
 0x264   : > { %8173 = vst [vmem:[#allocation153_spill] sm:$0xff] %v6918_v35  ;;  %v6938_v35 = vor.u32 %v5306_v23, %v4850_v6 }
 0x265   : > { %8174 = vst [vmem:[#allocation154_spill] sm:$0xff] %v6920_v20  ;;  %2120 = vmatmul.bf16.gmra.mxu1 %v6916_v51  ;;  %2627 = vmatmul.bf16.gmra.mxu0 %v6916_v51  ;;  %v8204_v20 = vld [vmem:[#allocation74_spill] sm:$0xff] }
 0x266   : > { %2289 = vmatmul.bf16.gmra.mxu2 %v6922_v47  ;;  %2458 = vmatmul.bf16.gmra.mxu3 %v6306_v14  ;;  %8179 = vst [vmem:[#allocation104_spill] sm:$0xff] %v6938_v35 }
 0x269   : > { %v2250_v54 = vpop.f32.mrf.mxu2  ;;  %v2419_v2 = vpop.f32.mrf.mxu3 }
 0x26a   : > { %v6929_v62 = vadd.f32 %v2250_v54, %v2082_v38  ;;  %v6931_v24 = vadd.f32 %v2588_v46, %v2419_v2  ;;  %v2083_v4 = vpop.f32.mrf.mxu1  ;;  %v2590_v8 = vpop.f32.mrf.mxu0  ;;  %v6944_v38 = vor.u32 %v5308_v37, %v4856_v13  ;;  %v8183_v54 = vld [vmem:[#allocation29_spill] sm:$0xff]  ;;  %v4862_v37 = vld [vmem:[%s6050_s20 + $0x264] sm:$0xf0] }
 0x26b   : > { %v2084_v42 = vadd.f32 %v2083_v4, %v8178_v5  ;;  %v5309_v13 = vld [vmem:[%s6050_s20 + $0x25c] sm:$0xf] }
 0x26c   : > { %8176 = vst [vmem:[#allocation156_spill] sm:$0xff] %v6929_v62 }
 0x26d   : > { %8177 = vst [vmem:[#allocation157_spill] sm:$0xff] %v6931_v24  ;;  %v6960_v24 = vor.u32 %v5309_v13, %v4862_v37  ;;  %v4874_v37 = vld [vmem:[%s6050_s20 + $0x27c] sm:$0xf0] }
 0x26e   : > { %8182 = vst [vmem:[#allocation160_spill] sm:$0xff] %v6944_v38 }
 0x271   : > { %v2252_v51 = vpop.f32.mrf.mxu2  ;;  %v2421_v47 = vpop.f32.mrf.mxu3 }
 0x272   : > { %v6940_v14 = vadd.f32 %v2252_v51, %v2084_v42  ;;  %v6942_v7 = vadd.f32 %v2590_v8, %v2421_v47  ;;  %v2086_v27 = vpop.f32.mrf.mxu1  ;;  %v2593_v46 = vpop.f32.mrf.mxu0  ;;  %v8184_v51 = vld [vmem:[#allocation60_spill] sm:$0xff]  ;;  %v4868_v42 = vld [vmem:[%s6050_s20 + $0x260] sm:$0xf] }
 0x273   : > { %v2087_v2 = vadd.f32 %v2086_v27, %v8184_v51 }
 0x274   : > { %8180 = vst [vmem:[#allocation158_spill] sm:$0xff] %v6940_v14  ;;  %v5311_v14 = vld [vmem:[%s6050_s20 + $0x268] sm:$0xf0] }
 0x275   : > { %8181 = vst [vmem:[#allocation159_spill] sm:$0xff] %v6942_v7  ;;  %2125 = vmatmul.bf16.gmra.mxu1 %v6938_v35  ;;  %2632 = vmatmul.bf16.gmra.mxu0 %v6938_v35  ;;  %v8187_v7 = vld [vmem:[#allocation62_spill] sm:$0xff] }
 0x276   : > { %2294 = vmatmul.bf16.gmra.mxu2 %v6944_v38  ;;  %2463 = vmatmul.bf16.gmra.mxu3 %v8183_v54  ;;  %8188 = vst [vmem:[#allocation62_spill] sm:$0xff] %v6960_v24 }
 0x279   : > { %v2255_v4 = vpop.f32.mrf.mxu2  ;;  %v2424_v47 = vpop.f32.mrf.mxu3 }
 0x27a   : > { %v6951_v8 = vadd.f32 %v2255_v4, %v2087_v2  ;;  %v6953_v23 = vadd.f32 %v2593_v46, %v2424_v47  ;;  %v2088_v6 = vpop.f32.mrf.mxu1  ;;  %v2595_v5 = vpop.f32.mrf.mxu0  ;;  %v6966_v2 = vor.u32 %v5311_v14, %v4868_v42  ;;  %v5312_v14 = vld [vmem:[%s6050_s20 + $0x274] sm:$0xf]  ;;  %v4880_v42 = vld [vmem:[%s6050_s20 + $0x278] sm:$0xf] }
 0x27b   : > { %v2089_v35 = vadd.f32 %v2088_v6, %v8187_v7  ;;  %v8192_v7 = vld [vmem:[#allocation33_spill] sm:$0xff] }
 0x27c   : > { %8185 = vst [vmem:[#allocation60_spill] sm:$0xff] %v6951_v8  ;;  %v5380_v8 = vld [vmem:[%s6060_s28 + $0x190] sm:$0xf0] }
 0x27d   : > { %8186 = vst [vmem:[#allocation161_spill] sm:$0xff] %v6953_v23  ;;  %v5317_v23 = vld [vmem:[%s6050_s20 + $0x298] sm:$0xf0] }
 0x27e   : > { %8191 = vst [vmem:[#allocation164_spill] sm:$0xff] %v6966_v2 }
 0x281   : > { %v2257_v62 = vpop.f32.mrf.mxu2  ;;  %v2426_v38 = vpop.f32.mrf.mxu3 }
 0x282   : > { %v6962_v54 = vadd.f32 %v2257_v62, %v2089_v35  ;;  %v6964_v27 = vadd.f32 %v2595_v5, %v2426_v38  ;;  %v2091_v46 = vpop.f32.mrf.mxu1  ;;  %v2598_v51 = vpop.f32.mrf.mxu0  ;;  %v8193_v35 = vld [vmem:[#allocation66_spill] sm:$0xff] }
 0x283   : > { %v2092_v62 = vadd.f32 %v2091_v46, %v8193_v35  ;;  %v6982_v35 = vor.u32 %v5312_v14, %v4874_v37  ;;  %v5332_v14 = vld [vmem:[%s6060_s28 + $0x10] sm:$0xf0] }
 0x284   : > { %8189 = vst [vmem:[#allocation162_spill] sm:$0xff] %v6962_v54  ;;  %v8196_v54 = vld [vmem:[#allocation68_spill] sm:$0xff] }
 0x285   : > { %8190 = vst [vmem:[#allocation163_spill] sm:$0xff] %v6964_v27  ;;  %2130 = vmatmul.bf16.gmra.mxu1 %v6960_v24  ;;  %2637 = vmatmul.bf16.gmra.mxu0 %v6960_v24  ;;  %v5314_v24 = vld [vmem:[%s6050_s20 + $0x280] sm:$0xf0]  ;;  %v8202_v37 = vld [vmem:[#allocation72_spill] sm:$0xff] }
 0x286   : > { %2299 = vmatmul.bf16.gmra.mxu2 %v6966_v2  ;;  %2468 = vmatmul.bf16.gmra.mxu3 %v8192_v7  ;;  %8197 = vst [vmem:[#allocation68_spill] sm:$0xff] %v6982_v35 }
 0x289   : > { %v2260_v4 = vpop.f32.mrf.mxu2  ;;  %v2429_v38 = vpop.f32.mrf.mxu3 }
 0x28a   : > { %v6973_v47 = vadd.f32 %v2260_v4, %v2092_v62  ;;  %v6975_v6 = vadd.f32 %v2598_v51, %v2429_v38  ;;  %v2093_v5 = vpop.f32.mrf.mxu1  ;;  %v2600_v13 = vpop.f32.mrf.mxu0 }
 0x28b   : > { %v2094_v2 = vadd.f32 %v2093_v5, %v8196_v54  ;;  %v8201_v54 = vld [vmem:[#allocation37_spill] sm:$0xff]  ;;  %v4952_v5 = vld [vmem:[%s6060_s28 + $0x8] sm:$0xf] }
 0x28c   : > { %8194 = vst [vmem:[#allocation66_spill] sm:$0xff] %v6973_v47  ;;  %v6988_v47 = vor.u32 %v5314_v24, %v4880_v42 }
 0x28d   : > { %8195 = vst [vmem:[#allocation165_spill] sm:$0xff] %v6975_v6  ;;  %v5144_v6 = vld [vmem:[%s6060_s28 + $0x188] sm:$0xf] }
 0x28e   : > { %8200 = vst [vmem:[#allocation168_spill] sm:$0xff] %v6988_v47 }
 0x291   : > { %v2262_v7 = vpop.f32.mrf.mxu2  ;;  %v2431_v46 = vpop.f32.mrf.mxu3 }
 0x292   : > { %v6984_v62 = vadd.f32 %v2262_v7, %v2094_v2  ;;  %v6986_v51 = vadd.f32 %v2600_v13, %v2431_v46  ;;  %v2096_v4 = vpop.f32.mrf.mxu1  ;;  %v2603_v38 = vpop.f32.mrf.mxu0  ;;  %v5048_v2 = vld [vmem:[%s6060_s28 + $0xc8] sm:$0xf]  ;;  %v4953_v7 = vor.u32 %v5332_v14, %v4952_v5  ;;  %v5356_v13 = vld [vmem:[%s6060_s28 + $0xd0] sm:$0xf0]  ;;  %v5378_v5 = vld [vmem:[%s6060_s28 + $0x184] sm:$0xf] }
 0x293   : > { %v2097_v24 = vadd.f32 %v2096_v4, %v8202_v37  ;;  %v5049_v42 = vor.u32 %v5356_v13, %v5048_v2  ;;  %v5138_v14 = vld [vmem:[%s6060_s28 + $0x18c] sm:$0xf0]  ;;  %v5315_v4 = vld [vmem:[%s6050_s20 + $0x28c] sm:$0xf]  ;;  %v4886_v37 = vld [vmem:[%s6050_s20 + $0x294] sm:$0xf0]  ;;  %v5145_v2 = vor.u32 %v5380_v8, %v5144_v6 }
 0x294   : > { %8198 = vst [vmem:[#allocation166_spill] sm:$0xff] %v6984_v62  ;;  %2849 = vmatpush.bf16.msra.mxu2 %v4953_v7  ;;  %v5141_v27 = vor.u32 %v5378_v5, %v5138_v14  ;;  %v4892_v13 = vld [vmem:[%s6050_s20 + $0x290] sm:$0xf] }
 0x295   : > { %8199 = vst [vmem:[#allocation167_spill] sm:$0xff] %v6986_v51  ;;  %2135 = vmatmul.bf16.gmra.mxu1 %v6982_v35  ;;  %2642 = vmatmul.bf16.gmra.mxu0 %v6982_v35  ;;  %v7018_v8 = vor.u32 %v5317_v23, %v4892_v13  ;;  %v5318_v23 = vld [vmem:[%s6050_s20 + $0x2a4] sm:$0xf]  ;;  %v4898_v13 = vld [vmem:[%s6050_s20 + $0x2ac] sm:$0xf0] }
 0x296   : > { %2304 = vmatmul.bf16.gmra.mxu2 %v6988_v47  ;;  %2473 = vmatmul.bf16.gmra.mxu3 %v8201_v54 }
 0x297   : > { %3018 = vmatpush.bf16.msra.mxu3 %v5049_v42  ;;  %2680 = vmatpush.bf16.msra.mxu1 %v5141_v27  ;;  %8208 = vst [vmem:[#allocation171_spill] sm:$0xff] %v7018_v8  ;;  %v8210_v27 = vld [vmem:[#allocation78_spill] sm:$0xff] }
 0x298   : > { %3187 = vmatpush.bf16.msra.mxu0 %v5145_v2 }
 0x299   : > { %v2265_v46 = vpop.f32.mrf.mxu2  ;;  %v2434_v35 = vpop.f32.mrf.mxu3 }
 0x29a   : > { %v6999_v54 = vadd.f32 %v2265_v46, %v2097_v24  ;;  %v7001_v47 = vadd.f32 %v2603_v38, %v2434_v35  ;;  %v2098_v62 = vpop.f32.mrf.mxu1  ;;  %v2605_v51 = vpop.f32.mrf.mxu0  ;;  %v7012_v38 = vor.u32 %v5315_v4, %v4886_v37 }
 0x29b   : > { %v2099_v7 = vadd.f32 %v2098_v62, %v8204_v20  ;;  %v8209_v20 = vld [vmem:[#allocation41_spill] sm:$0xff] }
 0x29c   : > { %8203 = vst [vmem:[#allocation72_spill] sm:$0xff] %v6999_v54  ;;  %v7034_v54 = vor.u32 %v5318_v23, %v4898_v13  ;;  %v5321_v13 = vld [vmem:[%s6050_s20 + $0x2bc] sm:$0xf] }
 0x29d   : > { %8205 = vst [vmem:[#allocation74_spill] sm:$0xff] %v7012_v38 }
 0x2a1   : > { %v2267_v24 = vpop.f32.mrf.mxu2  ;;  %v2436_v35 = vpop.f32.mrf.mxu3 }
 0x2a2   : > { %v7014_v46 = vadd.f32 %v2267_v24, %v2099_v7  ;;  %v7016_v42 = vadd.f32 %v2605_v51, %v2436_v35  ;;  %v2101_v5 = vpop.f32.mrf.mxu1  ;;  %v2608_v14 = vpop.f32.mrf.mxu0  ;;  %v4904_v24 = vld [vmem:[%s6050_s20 + $0x2a8] sm:$0xf]  ;;  %v5320_v35 = vld [vmem:[%s6050_s20 + $0x2b0] sm:$0xf0] }
 0x2a3   : > { %v2102_v6 = vadd.f32 %v2101_v5, %v8210_v27 }
 0x2a4   : > { %8206 = vst [vmem:[#allocation169_spill] sm:$0xff] %v7014_v46  ;;  %v8213_v46 = vld [vmem:[#allocation80_spill] sm:$0xff] }
 0x2a5   : > { %8207 = vst [vmem:[#allocation170_spill] sm:$0xff] %v7016_v42  ;;  %2140 = vmatmul.bf16.gmra.mxu1 %v7012_v38  ;;  %2647 = vmatmul.bf16.gmra.mxu0 %v7012_v38 }
 0x2a6   : > { %2309 = vmatmul.bf16.gmra.mxu2 %v7018_v8  ;;  %2478 = vmatmul.bf16.gmra.mxu3 %v8209_v20  ;;  %8214 = vst [vmem:[#allocation80_spill] sm:$0xff] %v7034_v54 }
 0x2a9   : > { %v2270_v62 = vpop.f32.mrf.mxu2  ;;  %v2439_v51 = vpop.f32.mrf.mxu3 }
 0x2aa   : > { %v7025_v4 = vadd.f32 %v2270_v62, %v2102_v6  ;;  %v7027_v37 = vadd.f32 %v2608_v14, %v2439_v51  ;;  %v2103_v2 = vpop.f32.mrf.mxu1  ;;  %v2610_v7 = vpop.f32.mrf.mxu0  ;;  %v7040_v6 = vor.u32 %v5320_v35, %v4904_v24  ;;  %v4910_v24 = vld [vmem:[%s6050_s20 + $0x2c4] sm:$0xf0]  ;;  %v4916_v35 = vld [vmem:[%s6050_s20 + $0x2c0] sm:$0xf] }
 0x2ab   : > { %v2104_v38 = vadd.f32 %v2103_v2, %v8213_v46  ;;  %v8218_v46 = vld [vmem:[#allocation45_spill] sm:$0xff] }
 0x2ac   : > { %8211 = vst [vmem:[#allocation78_spill] sm:$0xff] %v7025_v4 }
 0x2ad   : > { %8212 = vst [vmem:[#allocation172_spill] sm:$0xff] %v7027_v37  ;;  %v7056_v37 = vor.u32 %v5321_v13, %v4910_v24  ;;  %v4922_v24 = vld [vmem:[%s6050_s20 + $0x2dc] sm:$0xf0] }
 0x2ae   : > { %8217 = vst [vmem:[#allocation175_spill] sm:$0xff] %v7040_v6 }
 0x2b1   : > { %v2272_v42 = vpop.f32.mrf.mxu2  ;;  %v2441_v8 = vpop.f32.mrf.mxu3 }
 0x2b2   : > { %v7036_v20 = vadd.f32 %v2272_v42, %v2104_v38  ;;  %v7038_v5 = vadd.f32 %v2610_v7, %v2441_v8  ;;  %v2106_v14 = vpop.f32.mrf.mxu1  ;;  %v2613_v27 = vpop.f32.mrf.mxu0  ;;  %v8219_v38 = vld [vmem:[#allocation84_spill] sm:$0xff] }
 0x2b3   : > { %v2107_v42 = vadd.f32 %v2106_v14, %v8219_v38 }
 0x2b4   : > { %8215 = vst [vmem:[#allocation173_spill] sm:$0xff] %v7036_v20  ;;  %v5323_v20 = vld [vmem:[%s6050_s20 + $0x2c8] sm:$0xf0] }
 0x2b5   : > { %8216 = vst [vmem:[#allocation174_spill] sm:$0xff] %v7038_v5  ;;  %2145 = vmatmul.bf16.gmra.mxu1 %v7034_v54  ;;  %2652 = vmatmul.bf16.gmra.mxu0 %v7034_v54  ;;  %v8222_v5 = vld [vmem:[#allocation86_spill] sm:$0xff] }
 0x2b6   : > { %2314 = vmatmul.bf16.gmra.mxu2 %v7040_v6  ;;  %2483 = vmatmul.bf16.gmra.mxu3 %v8218_v46  ;;  %8223 = vst [vmem:[#allocation86_spill] sm:$0xff] %v7056_v37 }
 0x2b9   : > { %v2275_v62 = vpop.f32.mrf.mxu2  ;;  %v2444_v8 = vpop.f32.mrf.mxu3 }
 0x2ba   : > { %v7047_v51 = vadd.f32 %v2275_v62, %v2107_v42  ;;  %v7049_v2 = vadd.f32 %v2613_v27, %v2444_v8  ;;  %v2108_v7 = vpop.f32.mrf.mxu1  ;;  %v2615_v23 = vpop.f32.mrf.mxu0  ;;  %v7062_v42 = vor.u32 %v5323_v20, %v4916_v35  ;;  %v5324_v20 = vld [vmem:[%s6050_s20 + $0x2d4] sm:$0xf]  ;;  %v4928_v35 = vld [vmem:[%s6050_s20 + $0x2d8] sm:$0xf] }
 0x2bb   : > { %v2109_v54 = vadd.f32 %v2108_v7, %v8222_v5  ;;  %v8227_v5 = vld [vmem:[#allocation49_spill] sm:$0xff] }
 0x2bc   : > { %8220 = vst [vmem:[#allocation84_spill] sm:$0xff] %v7047_v51 }
 0x2bd   : > { %8221 = vst [vmem:[#allocation176_spill] sm:$0xff] %v7049_v2  ;;  %v7078_v2 = vor.u32 %v5324_v20, %v4922_v24  ;;  %v4934_v24 = vld [vmem:[%s6050_s20 + $0x2f4] sm:$0xf0] }
 0x2be   : > { %8226 = vst [vmem:[#allocation179_spill] sm:$0xff] %v7062_v42 }
 0x2c1   : > { %v2277_v4 = vpop.f32.mrf.mxu2  ;;  %v2446_v6 = vpop.f32.mrf.mxu3 }
 0x2c2   : > { %v7058_v46 = vadd.f32 %v2277_v4, %v2109_v54  ;;  %v7060_v14 = vadd.f32 %v2615_v23, %v2446_v6  ;;  %v2111_v27 = vpop.f32.mrf.mxu1  ;;  %v2618_v38 = vpop.f32.mrf.mxu0  ;;  %v8228_v54 = vld [vmem:[#allocation90_spill] sm:$0xff] }
 0x2c3   : > { %v2112_v4 = vadd.f32 %v2111_v27, %v8228_v54 }
 0x2c4   : > { %8224 = vst [vmem:[#allocation177_spill] sm:$0xff] %v7058_v46  ;;  %v5326_v46 = vld [vmem:[%s6050_s20 + $0x2e0] sm:$0xf0] }
 0x2c5   : > { %8225 = vst [vmem:[#allocation178_spill] sm:$0xff] %v7060_v14  ;;  %2150 = vmatmul.bf16.gmra.mxu1 %v7056_v37  ;;  %2657 = vmatmul.bf16.gmra.mxu0 %v7056_v37  ;;  %v8231_v14 = vld [vmem:[#allocation92_spill] sm:$0xff] }
 0x2c6   : > { %2319 = vmatmul.bf16.gmra.mxu2 %v7062_v42  ;;  %2488 = vmatmul.bf16.gmra.mxu3 %v8227_v5  ;;  %8232 = vst [vmem:[#allocation92_spill] sm:$0xff] %v7078_v2 }
 0x2c9   : > { %v2280_v62 = vpop.f32.mrf.mxu2  ;;  %v2449_v6 = vpop.f32.mrf.mxu3 }
 0x2ca   : > { %v7069_v8 = vadd.f32 %v2280_v62, %v2112_v4  ;;  %v7071_v7 = vadd.f32 %v2618_v38, %v2449_v6  ;;  %v2113_v23 = vpop.f32.mrf.mxu1  ;;  %v2620_v13 = vpop.f32.mrf.mxu0  ;;  %v7084_v4 = vor.u32 %v5326_v46, %v4928_v35  ;;  %v5327_v46 = vld [vmem:[%s6050_s20 + $0x2ec] sm:$0xf]  ;;  %v4940_v35 = vld [vmem:[%s6050_s20 + $0x2f0] sm:$0xf] }
 0x2cb   : > { %v2114_v37 = vadd.f32 %v2113_v23, %v8231_v14  ;;  %v8236_v14 = vld [vmem:[#allocation53_spill] sm:$0xff] }
 0x2cc   : > { %8229 = vst [vmem:[#allocation90_spill] sm:$0xff] %v7069_v8 }
 0x2cd   : > { %8230 = vst [vmem:[#allocation180_spill] sm:$0xff] %v7071_v7  ;;  %v7100_v7 = vor.u32 %v5327_v46, %v4934_v24 }
 0x2ce   : > { %8235 = vst [vmem:[#allocation183_spill] sm:$0xff] %v7084_v4 }
 0x2d1   : > { %v2282_v51 = vpop.f32.mrf.mxu2  ;;  %v2451_v42 = vpop.f32.mrf.mxu3 }
 0x2d2   : > { %v7080_v5 = vadd.f32 %v2282_v51, %v2114_v37  ;;  %v7082_v27 = vadd.f32 %v2620_v13, %v2451_v42  ;;  %v2116_v38 = vpop.f32.mrf.mxu1  ;;  %v2623_v54 = vpop.f32.mrf.mxu0  ;;  %v8237_v37 = vld [vmem:[#allocation96_spill] sm:$0xff] }
 0x2d3   : > { %v2117_v51 = vadd.f32 %v2116_v38, %v8237_v37 }
 0x2d4   : > { %8233 = vst [vmem:[#allocation181_spill] sm:$0xff] %v7080_v5  ;;  %v5329_v5 = vld [vmem:[%s6050_s20 + $0x2f8] sm:$0xf0]  ;;  %s5683_s20 = scalar_lea.hbm %s5682_s14, 768 }
 0x2d5   : > { %8234 = vst [vmem:[#allocation182_spill] sm:$0xff] %v7082_v27  ;;  %2155 = vmatmul.bf16.gmra.mxu1 %v7078_v2  ;;  %2662 = vmatmul.bf16.gmra.mxu0 %v7078_v2  ;;  %v8239_v27 = vld [vmem:[#allocation98_spill] sm:$0xff]  ;;  %p5684_p4 = scmp.ne.s32.totalorder %s5682_s14, %s5683_s20  ;;  %p5689_p1 = scmp.lt.s32.totalorder %s5687_s25, %s5683_s20 }
 0x2d6   : > { %2324 = vmatmul.bf16.gmra.mxu2 %v7084_v4  ;;  %2493 = vmatmul.bf16.gmra.mxu3 %v8236_v14  ;;  %8240 = vst [vmem:[#allocation98_spill] sm:$0xff] %v7100_v7 }
 0x2d7   : > { %p5685_p6 = pnand %p5684_p4, %p6016_p3  ;;  %p5690_p7 = por %p5689_p1, %p5688_p2 }
 0x2d9   : > { %v2285_v62 = vpop.f32.mrf.mxu2  ;;  %v2454_v42 = vpop.f32.mrf.mxu3  ;;  %p5686_p9 = pneg %p5685_p6 }
 0x2da   : > { %v7091_v6 = vadd.f32 %v2285_v62, %v2117_v51  ;;  %v7093_v23 = vadd.f32 %v2623_v54, %v2454_v42  ;;  %v2118_v13 = vpop.f32.mrf.mxu1  ;;  %v2625_v20 = vpop.f32.mrf.mxu0  ;;  %v7106_v54 = vor.u32 %v5329_v5, %v4940_v35  ;;  %v8244_v62 = vld [vmem:[#allocation57_spill] sm:$0xff] }
 0x2db   : > { %v2119_v2 = vadd.f32 %v2118_v13, %v8239_v27  ;;  %v8245_v27 = vld [vmem:[#allocation102_spill] sm:$0xff]  ;;  %v8248_v5 = vld [vmem:[#allocation105_spill] sm:$0xff]  ;;  %p5691_p8 = pnand %p5690_p7, %p5686_p9 }
 0x2dc   : > { %8238 = vst [vmem:[#allocation96_spill] sm:$0xff] %v7091_v6  ;;  %v8251_v6 = vld [vmem:[#allocation59_spill] sm:$0xff] }
 0x2dd   : > { %8243 = vst [vmem:[#allocation186_spill] sm:$0xff] %v7106_v54 }
 0x2e1   : > { %v2287_v8 = vpop.f32.mrf.mxu2  ;;  %v2456_v4 = vpop.f32.mrf.mxu3 }
 0x2e2   : > { %v7102_v14 = vadd.f32 %v2287_v8, %v2119_v2  ;;  %v7104_v38 = vadd.f32 %v2625_v20, %v2456_v4  ;;  %v2121_v37 = vpop.f32.mrf.mxu1  ;;  %v2628_v51 = vpop.f32.mrf.mxu0 }
 0x2e3   : > { %v2122_v42 = vadd.f32 %v2121_v37, %v8245_v27  ;;  %v8252_v37 = vld [vmem:[#allocation26_spill] sm:$0xff]  ;;  %v8254_v27 = vld [vmem:[#allocation61_spill] sm:$0xff] }
 0x2e4   : > { %8241 = vst [vmem:[#allocation184_spill] sm:$0xff] %v7102_v14 }
 0x2e5   : > { %8242 = vst [vmem:[#allocation185_spill] sm:$0xff] %v7104_v38  ;;  %2160 = vmatmul.bf16.gmra.mxu1 %v7100_v7  ;;  %2667 = vmatmul.bf16.gmra.mxu0 %v7100_v7 }
 0x2e6   : > { %2329 = vmatmul.bf16.gmra.mxu2 %v7106_v54  ;;  %2498 = vmatmul.bf16.gmra.mxu3 %v8244_v62 }
 0x2e9   : > { %v2290_v13 = vpop.f32.mrf.mxu2  ;;  %v2459_v46 = vpop.f32.mrf.mxu3 }
 0x2ea   : > { %v7113_v2 = vadd.f32 %v2290_v13, %v2122_v42  ;;  %v7115_v8 = vadd.f32 %v2628_v51, %v2459_v46  ;;  %v2123_v4 = vpop.f32.mrf.mxu1  ;;  %v2630_v20 = vpop.f32.mrf.mxu0  ;;  %v8253_v51 = vld [vmem:[#allocation58_spill] sm:$0xff] }
 0x2eb   : > { %v2124_v24 = vadd.f32 %v2123_v4, %v8248_v5 }
 0x2ec   : > { %8246 = vst [vmem:[#allocation102_spill] sm:$0xff] %v7113_v2 }
 0x2ed   : > { %8247 = vst [vmem:[#allocation187_spill] sm:$0xff] %v7115_v8  ;;  %v8260_v8 = vld [vmem:[#allocation65_spill] sm:$0xff] }
 0x2f1   : > { %v2292_v35 = vpop.f32.mrf.mxu2  ;;  %v2461_v14 = vpop.f32.mrf.mxu3 }
 0x2f2   : > { %v7118_v38 = vadd.f32 %v2292_v35, %v2124_v24  ;;  %v7120_v7 = vadd.f32 %v2630_v20, %v2461_v14  ;;  %v2126_v54 = vpop.f32.mrf.mxu1  ;;  %v2633_v62 = vpop.f32.mrf.mxu0  ;;  %v8257_v24 = vld [vmem:[#allocation63_spill] sm:$0xff] }
 0x2f3   : > { %v2127_v42 = vadd.f32 %v2126_v54, %v8254_v27  ;;  %v8261_v54 = vld [vmem:[#allocation30_spill] sm:$0xff]  ;;  %v8263_v27 = vld [vmem:[#allocation67_spill] sm:$0xff] }
 0x2f4   : > { %8249 = vst [vmem:[#allocation105_spill] sm:$0xff] %v7118_v38 }
 0x2f5   : > { %8250 = vst [vmem:[#allocation188_spill] sm:$0xff] %v7120_v7  ;;  %2681 = vmatmul.bf16.vlgmr.msra.gmra.mxu1 %v8251_v6  ;;  %3188 = vmatmul.bf16.vlgmr.msra.gmra.mxu0 %v8251_v6 }
 0x2f6   : > { %2850 = vmatmul.bf16.vlgmr.msra.gmra.mxu2 %v8252_v37  ;;  %3019 = vmatmul.bf16.vlgmr.msra.gmra.mxu3 %v8253_v51 }
 0x2f9   : > { %v2295_v13 = vpop.f32.mrf.mxu2  ;;  %v2464_v46 = vpop.f32.mrf.mxu3 }
 0x2fa   : > { %v7127_v4 = vadd.f32 %v2295_v13, %v2127_v42  ;;  %v7129_v5 = vadd.f32 %v2633_v62, %v2464_v46  ;;  %v2128_v14 = vpop.f32.mrf.mxu1  ;;  %v2635_v20 = vpop.f32.mrf.mxu0  ;;  %v8262_v62 = vld [vmem:[#allocation64_spill] sm:$0xff] }
 0x2fb   : > { %v2129_v35 = vadd.f32 %v2128_v14, %v8257_v24  ;;  %v8266_v24 = vld [vmem:[#allocation69_spill] sm:$0xff] }
 0x2fc   : > { %8255 = vst [vmem:[#allocation59_spill] sm:$0xff] %v7127_v4 }
 0x2fd   : > { %8256 = vst [vmem:[#allocation26_spill] sm:$0xff] %v7129_v5  ;;  %v8269_v5 = vld [vmem:[#allocation71_spill] sm:$0xff] }
 0x301   : > { %v2297_v38 = vpop.f32.mrf.mxu2  ;;  %v2466_v7 = vpop.f32.mrf.mxu3 }
 0x302   : > { %v7132_v2 = vadd.f32 %v2297_v38, %v2129_v35  ;;  %v7134_v6 = vadd.f32 %v2635_v20, %v2466_v7  ;;  %v2131_v37 = vpop.f32.mrf.mxu1  ;;  %v2638_v51 = vpop.f32.mrf.mxu0 }
 0x303   : > { %v2132_v42 = vadd.f32 %v2131_v37, %v8263_v27  ;;  %v8270_v37 = vld [vmem:[#allocation34_spill] sm:$0xff]  ;;  %v8272_v27 = vld [vmem:[#allocation73_spill] sm:$0xff] }
 0x304   : > { %8258 = vst [vmem:[#allocation58_spill] sm:$0xff] %v7132_v2 }
 0x305   : > { %8259 = vst [vmem:[#allocation61_spill] sm:$0xff] %v7134_v6  ;;  %2686 = vmatmul.bf16.gmra.mxu1 %v8260_v8  ;;  %3193 = vmatmul.bf16.gmra.mxu0 %v8260_v8 }
 0x306   : > { %2855 = vmatmul.bf16.gmra.mxu2 %v8261_v54  ;;  %3024 = vmatmul.bf16.gmra.mxu3 %v8262_v62 }
 0x309   : > { %v2300_v13 = vpop.f32.mrf.mxu2  ;;  %v2469_v46 = vpop.f32.mrf.mxu3 }
 0x30a   : > { %v7141_v14 = vadd.f32 %v2300_v13, %v2132_v42  ;;  %v7143_v38 = vadd.f32 %v2638_v51, %v2469_v46  ;;  %v2133_v7 = vpop.f32.mrf.mxu1  ;;  %v2640_v20 = vpop.f32.mrf.mxu0  ;;  %v8271_v51 = vld [vmem:[#allocation70_spill] sm:$0xff] }
 0x30b   : > { %v2134_v35 = vadd.f32 %v2133_v7, %v8266_v24  ;;  %v8275_v24 = vld [vmem:[#allocation75_spill] sm:$0xff] }
 0x30c   : > { %8264 = vst [vmem:[#allocation63_spill] sm:$0xff] %v7141_v14 }
 0x30d   : > { %8265 = vst [vmem:[#allocation65_spill] sm:$0xff] %v7143_v38  ;;  %v8278_v38 = vld [vmem:[#allocation77_spill] sm:$0xff] }
 0x311   : > { %v2302_v2 = vpop.f32.mrf.mxu2  ;;  %v2471_v6 = vpop.f32.mrf.mxu3 }
 0x312   : > { %v7146_v4 = vadd.f32 %v2302_v2, %v2134_v35  ;;  %v7148_v8 = vadd.f32 %v2640_v20, %v2471_v6  ;;  %v2136_v54 = vpop.f32.mrf.mxu1  ;;  %v2643_v62 = vpop.f32.mrf.mxu0 }
 0x313   : > { %v2137_v42 = vadd.f32 %v2136_v54, %v8272_v27  ;;  %v8279_v54 = vld [vmem:[#allocation38_spill] sm:$0xff]  ;;  %v8281_v27 = vld [vmem:[#allocation79_spill] sm:$0xff] }
 0x314   : > { %8267 = vst [vmem:[#allocation30_spill] sm:$0xff] %v7146_v4 }
 0x315   : > { %8268 = vst [vmem:[#allocation64_spill] sm:$0xff] %v7148_v8  ;;  %2691 = vmatmul.bf16.gmra.mxu1 %v8269_v5  ;;  %3198 = vmatmul.bf16.gmra.mxu0 %v8269_v5 }
 0x316   : > { %2860 = vmatmul.bf16.gmra.mxu2 %v8270_v37  ;;  %3029 = vmatmul.bf16.gmra.mxu3 %v8271_v51 }
 0x319   : > { %v2305_v13 = vpop.f32.mrf.mxu2  ;;  %v2474_v46 = vpop.f32.mrf.mxu3 }
 0x31a   : > { %v7155_v7 = vadd.f32 %v2305_v13, %v2137_v42  ;;  %v7157_v2 = vadd.f32 %v2643_v62, %v2474_v46  ;;  %v2138_v6 = vpop.f32.mrf.mxu1  ;;  %v2645_v20 = vpop.f32.mrf.mxu0  ;;  %v8280_v62 = vld [vmem:[#allocation76_spill] sm:$0xff] }
 0x31b   : > { %v2139_v35 = vadd.f32 %v2138_v6, %v8275_v24  ;;  %v8284_v24 = vld [vmem:[#allocation81_spill] sm:$0xff] }
 0x31c   : > { %8273 = vst [vmem:[#allocation67_spill] sm:$0xff] %v7155_v7 }
 0x31d   : > { %8274 = vst [vmem:[#allocation69_spill] sm:$0xff] %v7157_v2  ;;  %v8287_v2 = vld [vmem:[#allocation83_spill] sm:$0xff] }
 0x321   : > { %v2307_v4 = vpop.f32.mrf.mxu2  ;;  %v2476_v8 = vpop.f32.mrf.mxu3 }
 0x322   : > { %v7160_v14 = vadd.f32 %v2307_v4, %v2139_v35  ;;  %v7162_v5 = vadd.f32 %v2645_v20, %v2476_v8  ;;  %v2141_v37 = vpop.f32.mrf.mxu1  ;;  %v2648_v51 = vpop.f32.mrf.mxu0 }
 0x323   : > { %v2142_v42 = vadd.f32 %v2141_v37, %v8281_v27  ;;  %v8288_v37 = vld [vmem:[#allocation42_spill] sm:$0xff]  ;;  %v8290_v27 = vld [vmem:[#allocation85_spill] sm:$0xff] }
 0x324   : > { %8276 = vst [vmem:[#allocation71_spill] sm:$0xff] %v7160_v14 }
 0x325   : > { %8277 = vst [vmem:[#allocation34_spill] sm:$0xff] %v7162_v5  ;;  %2696 = vmatmul.bf16.gmra.mxu1 %v8278_v38  ;;  %3203 = vmatmul.bf16.gmra.mxu0 %v8278_v38 }
 0x326   : > { %2865 = vmatmul.bf16.gmra.mxu2 %v8279_v54  ;;  %3034 = vmatmul.bf16.gmra.mxu3 %v8280_v62 }
 0x329   : > { %v2310_v13 = vpop.f32.mrf.mxu2  ;;  %v2479_v46 = vpop.f32.mrf.mxu3 }
 0x32a   : > { %v7169_v6 = vadd.f32 %v2310_v13, %v2142_v42  ;;  %v7171_v4 = vadd.f32 %v2648_v51, %v2479_v46  ;;  %v2143_v8 = vpop.f32.mrf.mxu1  ;;  %v2650_v20 = vpop.f32.mrf.mxu0  ;;  %v8289_v51 = vld [vmem:[#allocation82_spill] sm:$0xff] }
 0x32b   : > { %v2144_v35 = vadd.f32 %v2143_v8, %v8284_v24  ;;  %v8293_v24 = vld [vmem:[#allocation87_spill] sm:$0xff] }
 0x32c   : > { %8282 = vst [vmem:[#allocation70_spill] sm:$0xff] %v7169_v6 }
 0x32d   : > { %8283 = vst [vmem:[#allocation73_spill] sm:$0xff] %v7171_v4  ;;  %v8296_v4 = vld [vmem:[#allocation89_spill] sm:$0xff] }
 0x331   : > { %v2312_v14 = vpop.f32.mrf.mxu2  ;;  %v2481_v5 = vpop.f32.mrf.mxu3 }
 0x332   : > { %v7174_v7 = vadd.f32 %v2312_v14, %v2144_v35  ;;  %v7176_v38 = vadd.f32 %v2650_v20, %v2481_v5  ;;  %v2146_v54 = vpop.f32.mrf.mxu1  ;;  %v2653_v62 = vpop.f32.mrf.mxu0 }
 0x333   : > { %v2147_v42 = vadd.f32 %v2146_v54, %v8290_v27  ;;  %v8297_v54 = vld [vmem:[#allocation46_spill] sm:$0xff]  ;;  %v8299_v27 = vld [vmem:[#allocation91_spill] sm:$0xff] }
 0x334   : > { %8285 = vst [vmem:[#allocation75_spill] sm:$0xff] %v7174_v7 }
 0x335   : > { %8286 = vst [vmem:[#allocation77_spill] sm:$0xff] %v7176_v38  ;;  %2701 = vmatmul.bf16.gmra.mxu1 %v8287_v2  ;;  %3208 = vmatmul.bf16.gmra.mxu0 %v8287_v2 }
 0x336   : > { %2870 = vmatmul.bf16.gmra.mxu2 %v8288_v37  ;;  %3039 = vmatmul.bf16.gmra.mxu3 %v8289_v51 }
 0x339   : > { %v2315_v13 = vpop.f32.mrf.mxu2  ;;  %v2484_v46 = vpop.f32.mrf.mxu3 }
 0x33a   : > { %v7183_v8 = vadd.f32 %v2315_v13, %v2147_v42  ;;  %v7185_v14 = vadd.f32 %v2653_v62, %v2484_v46  ;;  %v2148_v5 = vpop.f32.mrf.mxu1  ;;  %v2655_v20 = vpop.f32.mrf.mxu0  ;;  %v8298_v62 = vld [vmem:[#allocation88_spill] sm:$0xff] }
 0x33b   : > { %v2149_v35 = vadd.f32 %v2148_v5, %v8293_v24  ;;  %v8300_v24 = vld [vmem:[#allocation93_spill] sm:$0xff] }
 0x33c   : > { %8291 = vst [vmem:[#allocation38_spill] sm:$0xff] %v7183_v8 }
 0x33d   : > { %8292 = vst [vmem:[#allocation76_spill] sm:$0xff] %v7185_v14  ;;  %v8303_v14 = vld [vmem:[#allocation95_spill] sm:$0xff] }
 0x341   : > { %v2317_v7 = vpop.f32.mrf.mxu2  ;;  %v2486_v38 = vpop.f32.mrf.mxu3 }
 0x342   : > { %v7188_v6 = vadd.f32 %v2317_v7, %v2149_v35  ;;  %v7190_v2 = vadd.f32 %v2655_v20, %v2486_v38  ;;  %v2151_v37 = vpop.f32.mrf.mxu1  ;;  %v2658_v51 = vpop.f32.mrf.mxu0 }
 0x343   : > { %v2152_v42 = vadd.f32 %v2151_v37, %v8299_v27  ;;  %v8304_v37 = vld [vmem:[#allocation50_spill] sm:$0xff]  ;;  %v8306_v27 = vld [vmem:[#allocation97_spill] sm:$0xff] }
 0x344   : > { %8294 = vst [vmem:[#allocation79_spill] sm:$0xff] %v7188_v6 }
 0x345   : > { %8295 = vst [vmem:[#allocation81_spill] sm:$0xff] %v7190_v2  ;;  %2706 = vmatmul.bf16.gmra.mxu1 %v8296_v4  ;;  %3213 = vmatmul.bf16.gmra.mxu0 %v8296_v4 }
 0x346   : > { %2875 = vmatmul.bf16.gmra.mxu2 %v8297_v54  ;;  %3044 = vmatmul.bf16.gmra.mxu3 %v8298_v62 }
 0x349   : > { %v2320_v13 = vpop.f32.mrf.mxu2  ;;  %v2489_v46 = vpop.f32.mrf.mxu3 }
 0x34a   : > { %v7197_v5 = vadd.f32 %v2320_v13, %v2152_v42  ;;  %v7199_v7 = vadd.f32 %v2658_v51, %v2489_v46  ;;  %v2153_v38 = vpop.f32.mrf.mxu1  ;;  %v2660_v20 = vpop.f32.mrf.mxu0  ;;  %v8305_v51 = vld [vmem:[#allocation94_spill] sm:$0xff] }
 0x34b   : > { %v2154_v35 = vadd.f32 %v2153_v38, %v8300_v24  ;;  %v8309_v24 = vld [vmem:[#allocation99_spill] sm:$0xff] }
 0x351   : > { %v2322_v6 = vpop.f32.mrf.mxu2  ;;  %v2491_v2 = vpop.f32.mrf.mxu3 }
 0x352   : > { %v7202_v8 = vadd.f32 %v2322_v6, %v2154_v35  ;;  %v7204_v4 = vadd.f32 %v2660_v20, %v2491_v2  ;;  %v2156_v54 = vpop.f32.mrf.mxu1  ;;  %v2663_v62 = vpop.f32.mrf.mxu0 }
 0x353   : > { %v2157_v42 = vadd.f32 %v2156_v54, %v8306_v27  ;;  %v8312_v27 = vld [vmem:[#allocation101_spill] sm:$0xff] }
 0x354   : > { %8301 = vst [vmem:[#allocation83_spill] sm:$0xff] %v7202_v8 }
 0x355   : > { %8302 = vst [vmem:[#allocation42_spill] sm:$0xff] %v7204_v4  ;;  %2711 = vmatmul.bf16.gmra.mxu1 %v8303_v14  ;;  %3218 = vmatmul.bf16.gmra.mxu0 %v8303_v14 }
 0x356   : > { %2880 = vmatmul.bf16.gmra.mxu2 %v8304_v37  ;;  %3049 = vmatmul.bf16.gmra.mxu3 %v8305_v51 }
 0x359   : > { %v2325_v13 = vpop.f32.mrf.mxu2  ;;  %v2494_v46 = vpop.f32.mrf.mxu3 }
 0x35a   : > { %v7211_v38 = vadd.f32 %v2325_v13, %v2157_v42  ;;  %v7213_v6 = vadd.f32 %v2663_v62, %v2494_v46  ;;  %v2158_v2 = vpop.f32.mrf.mxu1  ;;  %v2665_v20 = vpop.f32.mrf.mxu0  ;;  %v8313_v42 = vld [vmem:[#allocation54_spill] sm:$0xff]  ;;  %v8314_v62 = vld [vmem:[#allocation100_spill] sm:$0xff]  ;;  %v8315_v13 = vld [vmem:[#allocation103_spill] sm:$0xff] }
 0x35b   : > { %v2159_v35 = vadd.f32 %v2158_v2, %v8309_v24 }
 0x35c   : > { %8307 = vst [vmem:[#allocation82_spill] sm:$0xff] %v7211_v38 }
 0x35d   : > { %8308 = vst [vmem:[#allocation85_spill] sm:$0xff] %v7213_v6 }
 0x361   : > { %v2327_v8 = vpop.f32.mrf.mxu2  ;;  %v2496_v4 = vpop.f32.mrf.mxu3 }
 0x362   : > { %v7216_v14 = vadd.f32 %v2327_v8, %v2159_v35  ;;  %v7218_v37 = vadd.f32 %v2665_v20, %v2496_v4  ;;  %v2161_v51 = vpop.f32.mrf.mxu1  ;;  %v2668_v54 = vpop.f32.mrf.mxu0 }
 0x363   : > { %v2162_v46 = vadd.f32 %v2161_v51, %v8315_v13 }
 0x364   : > { %8310 = vst [vmem:[#allocation87_spill] sm:$0xff] %v7216_v14  ;;  %v3928_v14 = vld [vmem:[%s279_s7] sm:$0x7] }
 0x365   : > { %8311 = vst [vmem:[#allocation89_spill] sm:$0xff] %v7218_v37  ;;  %2716 = vmatmul.bf16.gmra.mxu1 %v8312_v27  ;;  %3223 = vmatmul.bf16.gmra.mxu0 %v8312_v27  ;;  %v8318_v27 = vld [vmem:[#allocation106_spill] sm:$0xff]  ;;  %v7233_v37 = vperm.slane %v3928_v14, 0  ;;  %v7235_v6 = vperm.slane %v3928_v14, 1 }
 0x366   : > { %2885 = vmatmul.bf16.gmra.mxu2 %v8313_v42  ;;  %3054 = vmatmul.bf16.gmra.mxu3 %v8314_v62 }
 0x369   : > { %v2330_v2 = vpop.f32.mrf.mxu2  ;;  %v2499_v8 = vpop.f32.mrf.mxu3 }
 0x36a   : > { %v7227_v4 = vadd.f32 %v2330_v2, %v2162_v46  ;;  %v7229_v20 = vadd.f32 %v2668_v54, %v2499_v8  ;;  %v2163_v24 = vpop.f32.mrf.mxu1  ;;  %v2670_v35 = vpop.f32.mrf.mxu0  ;;  %v3936_v8 = vadd.f32 %v7233_v37, %v6567_v16 }
 0x36b   : > { %v2164_v42 = vadd.f32 %v2163_v24, %v8318_v27  ;;  %v8321_v27 = vld [vmem:[#allocation108_spill] sm:$0xff] }
 0x36c   : > { %8316 = vst [vmem:[#allocation46_spill] sm:$0xff] %v7227_v4  ;;  %v8322_v4 = vld [vmem:[#allocation27_spill] sm:$0xff] }
 0x36d   : > { %8317 = vst [vmem:[#allocation88_spill] sm:$0xff] %v7229_v20 }
 0x371   : > { %v2332_v62 = vpop.f32.mrf.mxu2  ;;  %v2501_v38 = vpop.f32.mrf.mxu3 }
 0x372   : > { %v7237_v51 = vadd.f32 %v2332_v62, %v2164_v42  ;;  %v7239_v13 = vadd.f32 %v2670_v35, %v2501_v38  ;;  %v2682_v54 = vpop.f32.mrf.mxu1  ;;  %v3189_v46 = vpop.f32.mrf.mxu0  ;;  %v8323_v42 = vld [vmem:[#allocation107_spill] sm:$0xff]  ;;  %v7254_v62 = vperm.slane %v3928_v14, 2 }
 0x373   : > { %v2683_v2 = vadd.f32 %v2682_v54, %v6569_v45 }
 0x374   : > { %8319 = vst [vmem:[#allocation91_spill] sm:$0xff] %v7237_v51 }
 0x375   : > { %8320 = vst [vmem:[#allocation93_spill] sm:$0xff] %v7239_v13  ;;  %v3937_v24 = vadd.f32 %v7235_v6, %v2683_v2  ;;  %2721 = vmatmul.bf16.gmra.mxu1 %v8321_v27  ;;  %3228 = vmatmul.bf16.gmra.mxu0 %v8321_v27 }
 0x376   : > { %2890 = vmatmul.bf16.gmra.mxu2 %v8322_v4  ;;  %3059 = vmatmul.bf16.gmra.mxu3 %v8323_v42  ;;  %v3939_v4 = vadd.f32 %v7233_v37, %v6578_v44 }
 0x377   : > { %v4128_v38 = vpack.c.bf16 %v3937_v24, %v3936_v8 }
 0x379   : > { %4256 = vst [vmem:[%s7251_s10] sm:$0xff] %v4128_v38  ;;  %v2851_v45 = vpop.f32.mrf.mxu2  ;;  %v3020_v35 = vpop.f32.mrf.mxu3 }
 0x37a   : > { %v3021_v16 = vadd.f32 %v3020_v35, %v2851_v45  ;;  %v2684_v54 = vpop.f32.mrf.mxu1  ;;  %v3191_v2 = vpop.f32.mrf.mxu0 }
 0x37b   : > { %v2685_v27 = vadd.f32 %v2684_v54, %v6580_v12 }
 0x37c   : > { %v3190_v51 = vadd.f32 %v3189_v46, %v3021_v16  ;;  %v8324_v16 = vld [vmem:[#allocation111_spill] sm:$0xff] }
 0x37d   : > { %v3940_v8 = vadd.f32 %v7235_v6, %v2685_v27  ;;  %v3942_v44 = vadd.f32 %v7233_v37, %v8324_v16  ;;  %v8329_v16 = vld [vmem:[#allocation113_spill] sm:$0xff] }
 0x37e   : > { %v3938_v24 = vadd.f32 %v7254_v62, %v3190_v51  ;;  %v8325_v51 = vld [vmem:[#allocation110_spill] sm:$0xff] }
 0x37f   : > { %v4130_v42 = vpack.c.bf16 %v3940_v8, %v3939_v4  ;;  %v8326_v4 = vld [vmem:[#allocation31_spill] sm:$0xff] }
 0x380   : > { %v4129_v38 = vpack.c.bf16 %v3938_v24, %v3938_v24 }
 0x381   : > { %4258 = vst [vmem:[%s7251_s10 + $0xc] sm:$0xff] %v4130_v42  ;;  %v2853_v13 = vpop.f32.mrf.mxu2  ;;  %v3022_v20 = vpop.f32.mrf.mxu3 }
 0x382   : > { %4257 = vst [vmem:[%s7251_s10 + $0x8] sm:$0xf] %v4129_v38  ;;  %v3023_v14 = vadd.f32 %v3022_v20, %v2853_v13  ;;  %v2687_v45 = vpop.f32.mrf.mxu1  ;;  %v3194_v35 = vpop.f32.mrf.mxu0  ;;  %v8327_v20 = vld [vmem:[#allocation109_spill] sm:$0xff] }
 0x383   : > { %v2688_v12 = vadd.f32 %v2687_v45, %v6591_v15 }
 0x384   : > { %v3192_v46 = vadd.f32 %v3191_v2, %v3023_v14  ;;  %v8328_v14 = vld [vmem:[#allocation114_spill] sm:$0xff] }
 0x385   : > { %v3943_v54 = vadd.f32 %v7235_v6, %v2688_v12  ;;  %2726 = vmatmul.bf16.gmra.mxu1 %v8325_v51  ;;  %3233 = vmatmul.bf16.gmra.mxu0 %v8325_v51 }
 0x386   : > { %v3941_v27 = vadd.f32 %v7254_v62, %v3192_v46  ;;  %2895 = vmatmul.bf16.gmra.mxu2 %v8326_v4  ;;  %3064 = vmatmul.bf16.gmra.mxu3 %v8327_v20  ;;  %v3945_v46 = vadd.f32 %v7233_v37, %v8329_v16  ;;  %v8332_v16 = vld [vmem:[#allocation112_spill] sm:$0xff] }
 0x387   : > { %v4132_v13 = vpack.c.bf16 %v3943_v54, %v3942_v44 }
 0x388   : > { %v4131_v8 = vpack.c.bf16 %v3941_v27, %v3941_v27 }
 0x389   : > { %4260 = vst [vmem:[%s7251_s10 + $0x18] sm:$0xff] %v4132_v13  ;;  %v2856_v15 = vpop.f32.mrf.mxu2  ;;  %v3025_v2 = vpop.f32.mrf.mxu3 }
 0x38a   : > { %4259 = vst [vmem:[%s7251_s10 + $0x14] sm:$0xf] %v4131_v8  ;;  %v3026_v24 = vadd.f32 %v3025_v2, %v2856_v15  ;;  %v2689_v42 = vpop.f32.mrf.mxu1  ;;  %v3196_v38 = vpop.f32.mrf.mxu0 }
 0x38b   : > { %v2690_v45 = vadd.f32 %v2689_v42, %v8328_v14  ;;  %v8330_v14 = vld [vmem:[#allocation115_spill] sm:$0xff] }
 0x38c   : > { %v3195_v12 = vadd.f32 %v3194_v35, %v3026_v24  ;;  %v3948_v24 = vadd.f32 %v7233_v37, %v6615_v55 }
 0x38d   : > { %v3946_v51 = vadd.f32 %v7235_v6, %v2690_v45 }
 0x38e   : > { %v3944_v44 = vadd.f32 %v7254_v62, %v3195_v12  ;;  %v8331_v12 = vld [vmem:[#allocation35_spill] sm:$0xff] }
 0x38f   : > { %v4134_v54 = vpack.c.bf16 %v3946_v51, %v3945_v46 }
 0x390   : > { %v4133_v27 = vpack.c.bf16 %v3944_v44, %v3944_v44 }
 0x391   : > { %4262 = vst [vmem:[%s7251_s10 + $0x24] sm:$0xff] %v4134_v54  ;;  %v2858_v4 = vpop.f32.mrf.mxu2  ;;  %v3027_v20 = vpop.f32.mrf.mxu3 }
 0x392   : > { %4261 = vst [vmem:[%s7251_s10 + $0x20] sm:$0xf] %v4133_v27  ;;  %v3028_v13 = vadd.f32 %v3027_v20, %v2858_v4  ;;  %v2692_v8 = vpop.f32.mrf.mxu1  ;;  %v3199_v15 = vpop.f32.mrf.mxu0  ;;  %v3951_v20 = vadd.f32 %v7233_v37, %v6630_v32  ;;  %v3954_v32 = vadd.f32 %v7233_v37, %v6641_v49 }
 0x393   : > { %v2693_v35 = vadd.f32 %v2692_v8, %v6617_v0 }
 0x394   : > { %v3197_v2 = vadd.f32 %v3196_v38, %v3028_v13 }
 0x395   : > { %v3949_v42 = vadd.f32 %v7235_v6, %v2693_v35  ;;  %2731 = vmatmul.bf16.gmra.mxu1 %v8330_v14  ;;  %3238 = vmatmul.bf16.gmra.mxu0 %v8330_v14 }
 0x396   : > { %v3947_v45 = vadd.f32 %v7254_v62, %v3197_v2  ;;  %2900 = vmatmul.bf16.gmra.mxu2 %v8331_v12  ;;  %3069 = vmatmul.bf16.gmra.mxu3 %v8332_v16 }
 0x397   : > { %v4136_v46 = vpack.c.bf16 %v3949_v42, %v3948_v24 }
 0x398   : > { %v4135_v51 = vpack.c.bf16 %v3947_v45, %v3947_v45 }
 0x399   : > { %4264 = vst [vmem:[%s7251_s10 + $0x30] sm:$0xff] %v4136_v46  ;;  %v2861_v0 = vpop.f32.mrf.mxu2  ;;  %v3030_v38 = vpop.f32.mrf.mxu3  ;;  %v8333_v46 = vld [vmem:[#allocation117_spill] sm:$0xff] }
 0x39a   : > { %4263 = vst [vmem:[%s7251_s10 + $0x2c] sm:$0xf] %v4135_v51  ;;  %v3031_v55 = vadd.f32 %v3030_v38, %v2861_v0  ;;  %v2694_v44 = vpop.f32.mrf.mxu1  ;;  %v3201_v54 = vpop.f32.mrf.mxu0  ;;  %v8334_v0 = vld [vmem:[#allocation39_spill] sm:$0xff]  ;;  %v8335_v38 = vld [vmem:[#allocation116_spill] sm:$0xff] }
 0x39b   : > { %v2695_v27 = vadd.f32 %v2694_v44, %v6632_v39 }
 0x39c   : > { %v3200_v4 = vadd.f32 %v3199_v15, %v3031_v55 }
 0x39d   : > { %v3952_v13 = vadd.f32 %v7235_v6, %v2695_v27 }
 0x39e   : > { %v3950_v8 = vadd.f32 %v7254_v62, %v3200_v4 }
 0x39f   : > { %v4138_v35 = vpack.c.bf16 %v3952_v13, %v3951_v20 }
 0x3a0   : > { %v4137_v2 = vpack.c.bf16 %v3950_v8, %v3950_v8  ;;  %v8336_v8 = vld [vmem:[#allocation119_spill] sm:$0xff] }
 0x3a1   : > { %4266 = vst [vmem:[%s7251_s10 + $0x3c] sm:$0xff] %v4138_v35  ;;  %v2863_v24 = vpop.f32.mrf.mxu2  ;;  %v3032_v42 = vpop.f32.mrf.mxu3  ;;  %v3957_v35 = vadd.f32 %v7233_v37, %v8336_v8  ;;  %v3963_v8 = vadd.f32 %v7233_v37, %v6674_v33 }
 0x3a2   : > { %4265 = vst [vmem:[%s7251_s10 + $0x38] sm:$0xf] %v4137_v2  ;;  %v3033_v14 = vadd.f32 %v3032_v42, %v2863_v24  ;;  %v2697_v45 = vpop.f32.mrf.mxu1  ;;  %v3204_v12 = vpop.f32.mrf.mxu0 }
 0x3a3   : > { %v2698_v39 = vadd.f32 %v2697_v45, %v6643_v25 }
 0x3a4   : > { %v3202_v15 = vadd.f32 %v3201_v54, %v3033_v14 }
 0x3a5   : > { %v3955_v16 = vadd.f32 %v7235_v6, %v2698_v39  ;;  %2736 = vmatmul.bf16.gmra.mxu1 %v8333_v46  ;;  %3243 = vmatmul.bf16.gmra.mxu0 %v8333_v46  ;;  %v3960_v46 = vadd.f32 %v7233_v37, %v6663_v17 }
 0x3a6   : > { %v3953_v51 = vadd.f32 %v7254_v62, %v3202_v15  ;;  %2905 = vmatmul.bf16.gmra.mxu2 %v8334_v0  ;;  %3074 = vmatmul.bf16.gmra.mxu3 %v8335_v38  ;;  %v8337_v0 = vld [vmem:[#allocation120_spill] sm:$0xff] }
 0x3a7   : > { %v4140_v55 = vpack.c.bf16 %v3955_v16, %v3954_v32 }
 0x3a8   : > { %v4139_v44 = vpack.c.bf16 %v3953_v51, %v3953_v51 }
 0x3a9   : > { %4268 = vst [vmem:[%s7251_s10 + $0x48] sm:$0xff] %v4140_v55  ;;  %v2866_v25 = vpop.f32.mrf.mxu2  ;;  %v3035_v54 = vpop.f32.mrf.mxu3  ;;  %v8338_v55 = vld [vmem:[#allocation43_spill] sm:$0xff] }
 0x3aa   : > { %4267 = vst [vmem:[%s7251_s10 + $0x44] sm:$0xf] %v4139_v44  ;;  %v3036_v49 = vadd.f32 %v3035_v54, %v2866_v25  ;;  %v2699_v27 = vpop.f32.mrf.mxu1  ;;  %v3206_v4 = vpop.f32.mrf.mxu0  ;;  %v8339_v44 = vld [vmem:[#allocation118_spill] sm:$0xff] }
 0x3ab   : > { %v2700_v20 = vadd.f32 %v2699_v27, %v6654_v53 }
 0x3ac   : > { %v3205_v13 = vadd.f32 %v3204_v12, %v3036_v49 }
 0x3ad   : > { %v3958_v2 = vadd.f32 %v7235_v6, %v2700_v20 }
 0x3ae   : > { %v3956_v24 = vadd.f32 %v7254_v62, %v3205_v13 }
 0x3af   : > { %v4142_v42 = vpack.c.bf16 %v3958_v2, %v3957_v35 }
 0x3b0   : > { %v4141_v14 = vpack.c.bf16 %v3956_v24, %v3956_v24 }
 0x3b1   : > { %4270 = vst [vmem:[%s7251_s10 + $0x54] sm:$0xff] %v4142_v42  ;;  %v2868_v45 = vpop.f32.mrf.mxu2  ;;  %v3037_v39 = vpop.f32.mrf.mxu3 }
 0x3b2   : > { %4269 = vst [vmem:[%s7251_s10 + $0x50] sm:$0xf] %v4141_v14  ;;  %v3038_v15 = vadd.f32 %v3037_v39, %v2868_v45  ;;  %v2702_v32 = vpop.f32.mrf.mxu1  ;;  %v3209_v16 = vpop.f32.mrf.mxu0 }
 0x3b3   : > { %v2703_v53 = vadd.f32 %v2702_v32, %v6665_v21 }
 0x3b4   : > { %v3207_v12 = vadd.f32 %v3206_v4, %v3038_v15 }
 0x3b5   : > { %v3961_v51 = vadd.f32 %v7235_v6, %v2703_v53  ;;  %2741 = vmatmul.bf16.gmra.mxu1 %v8337_v0  ;;  %3248 = vmatmul.bf16.gmra.mxu0 %v8337_v0  ;;  %v8340_v53 = vld [vmem:[#allocation123_spill] sm:$0xff] }
 0x3b6   : > { %v3959_v38 = vadd.f32 %v7254_v62, %v3207_v12  ;;  %2910 = vmatmul.bf16.gmra.mxu2 %v8338_v55  ;;  %3079 = vmatmul.bf16.gmra.mxu3 %v8339_v44  ;;  %v3966_v33 = vadd.f32 %v7233_v37, %v8340_v53  ;;  %v8342_v0 = vld [vmem:[#allocation47_spill] sm:$0xff] }
 0x3b7   : > { %v4144_v25 = vpack.c.bf16 %v3961_v51, %v3960_v46  ;;  %v8341_v46 = vld [vmem:[#allocation122_spill] sm:$0xff] }
 0x3b8   : > { %v4143_v54 = vpack.c.bf16 %v3959_v38, %v3959_v38  ;;  %v8343_v38 = vld [vmem:[#allocation121_spill] sm:$0xff] }
 0x3b9   : > { %4272 = vst [vmem:[%s7251_s10 + $0x60] sm:$0xff] %v4144_v25  ;;  %v2871_v21 = vpop.f32.mrf.mxu2  ;;  %v3040_v49 = vpop.f32.mrf.mxu3 }
 0x3ba   : > { %4271 = vst [vmem:[%s7251_s10 + $0x5c] sm:$0xf] %v4143_v54  ;;  %v3041_v17 = vadd.f32 %v3040_v49, %v2871_v21  ;;  %v2704_v27 = vpop.f32.mrf.mxu1  ;;  %v3211_v4 = vpop.f32.mrf.mxu0 }
 0x3bb   : > { %v2705_v20 = vadd.f32 %v2704_v27, %v6676_v59 }
 0x3bc   : > { %v3210_v13 = vadd.f32 %v3209_v16, %v3041_v17  ;;  %v8344_v17 = vld [vmem:[#allocation126_spill] sm:$0xff] }
 0x3bd   : > { %v3964_v35 = vadd.f32 %v7235_v6, %v2705_v20  ;;  %v8345_v20 = vld [vmem:[#allocation125_spill] sm:$0xff] }
 0x3be   : > { %v3962_v2 = vadd.f32 %v7254_v62, %v3210_v13  ;;  %v3969_v13 = vadd.f32 %v7233_v37, %v8345_v20 }
 0x3bf   : > { %v4146_v24 = vpack.c.bf16 %v3964_v35, %v3963_v8 }
 0x3c0   : > { %v4145_v42 = vpack.c.bf16 %v3962_v2, %v3962_v2 }
 0x3c1   : > { %4274 = vst [vmem:[%s7251_s10 + $0x6c] sm:$0xff] %v4146_v24  ;;  %v2873_v14 = vpop.f32.mrf.mxu2  ;;  %v3042_v45 = vpop.f32.mrf.mxu3 }
 0x3c2   : > { %4273 = vst [vmem:[%s7251_s10 + $0x68] sm:$0xf] %v4145_v42  ;;  %v3043_v39 = vadd.f32 %v3042_v45, %v2873_v14  ;;  %v2707_v15 = vpop.f32.mrf.mxu1  ;;  %v3214_v32 = vpop.f32.mrf.mxu0 }
 0x3c3   : > { %v2708_v59 = vadd.f32 %v2707_v15, %v6687_v9 }
 0x3c4   : > { %v3212_v16 = vadd.f32 %v3211_v4, %v3043_v39 }
 0x3c5   : > { %v3967_v12 = vadd.f32 %v7235_v6, %v2708_v59  ;;  %2746 = vmatmul.bf16.gmra.mxu1 %v8341_v46  ;;  %3253 = vmatmul.bf16.gmra.mxu0 %v8341_v46  ;;  %v8347_v46 = vld [vmem:[#allocation51_spill] sm:$0xff] }
 0x3c6   : > { %v3965_v51 = vadd.f32 %v7254_v62, %v3212_v16  ;;  %2915 = vmatmul.bf16.gmra.mxu2 %v8342_v0  ;;  %3084 = vmatmul.bf16.gmra.mxu3 %v8343_v38  ;;  %v3972_v16 = vadd.f32 %v7233_v37, %v6711_v29 }
 0x3c7   : > { %v4148_v55 = vpack.c.bf16 %v3967_v12, %v3966_v33  ;;  %v8346_v33 = vld [vmem:[#allocation127_spill] sm:$0xff] }
 0x3c8   : > { %v4147_v44 = vpack.c.bf16 %v3965_v51, %v3965_v51  ;;  %v8348_v51 = vld [vmem:[#allocation124_spill] sm:$0xff] }
 0x3c9   : > { %4276 = vst [vmem:[%s7251_s10 + $0x78] sm:$0xff] %v4148_v55  ;;  %v2876_v9 = vpop.f32.mrf.mxu2  ;;  %v3045_v25 = vpop.f32.mrf.mxu3 }
 0x3ca   : > { %4275 = vst [vmem:[%s7251_s10 + $0x74] sm:$0xf] %v4147_v44  ;;  %v3046_v54 = vadd.f32 %v3045_v25, %v2876_v9  ;;  %v2709_v21 = vpop.f32.mrf.mxu1  ;;  %v3216_v49 = vpop.f32.mrf.mxu0 }
 0x3cb   : > { %v2710_v27 = vadd.f32 %v2709_v21, %v8344_v17  ;;  %v3975_v21 = vadd.f32 %v7233_v37, %v6726_v19  ;;  %v3978_v19 = vadd.f32 %v7233_v37, %v6737_v50 }
 0x3cc   : > { %v3215_v4 = vadd.f32 %v3214_v32, %v3046_v54 }
 0x3cd   : > { %v3970_v8 = vadd.f32 %v7235_v6, %v2710_v27 }
 0x3ce   : > { %v3968_v35 = vadd.f32 %v7254_v62, %v3215_v4 }
 0x3cf   : > { %v4150_v2 = vpack.c.bf16 %v3970_v8, %v3969_v13 }
 0x3d0   : > { %v4149_v24 = vpack.c.bf16 %v3968_v35, %v3968_v35 }
 0x3d1   : > { %4278 = vst [vmem:[%s7251_s10 + $0x84] sm:$0xff] %v4150_v2  ;;  %v2878_v42 = vpop.f32.mrf.mxu2  ;;  %v3047_v14 = vpop.f32.mrf.mxu3 }
 0x3d2   : > { %4277 = vst [vmem:[%s7251_s10 + $0x80] sm:$0xf] %v4149_v24  ;;  %v3048_v45 = vadd.f32 %v3047_v14, %v2878_v42  ;;  %v2712_v39 = vpop.f32.mrf.mxu1  ;;  %v3219_v15 = vpop.f32.mrf.mxu0  ;;  %v8349_v14 = vld [vmem:[#allocation129_spill] sm:$0xff] }
 0x3d3   : > { %v2713_v32 = vadd.f32 %v2712_v39, %v6713_v60  ;;  %v8350_v39 = vld [vmem:[#allocation55_spill] sm:$0xff] }
 0x3d4   : > { %v3217_v59 = vadd.f32 %v3216_v49, %v3048_v45 }
 0x3d5   : > { %v3973_v53 = vadd.f32 %v7235_v6, %v2713_v32  ;;  %2751 = vmatmul.bf16.gmra.mxu1 %v8346_v33  ;;  %3258 = vmatmul.bf16.gmra.mxu0 %v8346_v33 }
 0x3d6   : > { %v3971_v12 = vadd.f32 %v7254_v62, %v3217_v59  ;;  %2920 = vmatmul.bf16.gmra.mxu2 %v8347_v46  ;;  %3089 = vmatmul.bf16.gmra.mxu3 %v8348_v51  ;;  %v8352_v51 = vld [vmem:[#allocation131_spill] sm:$0xff] }
 0x3d7   : > { %v4152_v0 = vpack.c.bf16 %v3973_v53, %v3972_v16 }
 0x3d8   : > { %v4151_v38 = vpack.c.bf16 %v3971_v12, %v3971_v12 }
 0x3d9   : > { %4280 = vst [vmem:[%s7251_s10 + $0x90] sm:$0xff] %v4152_v0  ;;  %v2881_v60 = vpop.f32.mrf.mxu2  ;;  %v3050_v55 = vpop.f32.mrf.mxu3  ;;  %v3981_v0 = vadd.f32 %v7233_v37, %v8352_v51 }
 0x3da   : > { %4279 = vst [vmem:[%s7251_s10 + $0x8c] sm:$0xf] %v4151_v38  ;;  %v3051_v29 = vadd.f32 %v3050_v55, %v2881_v60  ;;  %v2714_v44 = vpop.f32.mrf.mxu1  ;;  %v3221_v9 = vpop.f32.mrf.mxu0 }
 0x3db   : > { %v2715_v25 = vadd.f32 %v2714_v44, %v6728_v10 }
 0x3dc   : > { %v3220_v54 = vadd.f32 %v3219_v15, %v3051_v29  ;;  %v8351_v15 = vld [vmem:[#allocation128_spill] sm:$0xff] }
 0x3dd   : > { %v3976_v49 = vadd.f32 %v7235_v6, %v2715_v25 }
 0x3de   : > { %v3974_v17 = vadd.f32 %v7254_v62, %v3220_v54 }
 0x3df   : > { %v4154_v27 = vpack.c.bf16 %v3976_v49, %v3975_v21 }
 0x3e0   : > { %v4153_v4 = vpack.c.bf16 %v3974_v17, %v3974_v17  ;;  %v3984_v17 = vadd.f32 %v7233_v37, %v6759_v1 }
 0x3e1   : > { %4282 = vst [vmem:[%s7251_s10 + $0x9c] sm:$0xff] %v4154_v27  ;;  %v2883_v20 = vpop.f32.mrf.mxu2  ;;  %v3052_v13 = vpop.f32.mrf.mxu3 }
 0x3e2   : > { %4281 = vst [vmem:[%s7251_s10 + $0x98] sm:$0xf] %v4153_v4  ;;  %v3053_v8 = vadd.f32 %v3052_v13, %v2883_v20  ;;  %v2717_v35 = vpop.f32.mrf.mxu1  ;;  %v3224_v2 = vpop.f32.mrf.mxu0  ;;  %v8353_v4 = vld [vmem:[#allocation132_spill] sm:$0xff] }
 0x3e3   : > { %v2718_v10 = vadd.f32 %v2717_v35, %v6739_v36  ;;  %v8354_v13 = vld [vmem:[#allocation28_spill] sm:$0xff] }
 0x3e4   : > { %v3222_v24 = vadd.f32 %v3221_v9, %v3053_v8  ;;  %v8355_v8 = vld [vmem:[#allocation130_spill] sm:$0xff] }
 0x3e5   : > { %v3979_v42 = vadd.f32 %v7235_v6, %v2718_v10  ;;  %2756 = vmatmul.bf16.gmra.mxu1 %v8349_v14  ;;  %3263 = vmatmul.bf16.gmra.mxu0 %v8349_v14 }
 0x3e6   : > { %v3977_v45 = vadd.f32 %v7254_v62, %v3222_v24  ;;  %2925 = vmatmul.bf16.gmra.mxu2 %v8350_v39  ;;  %3094 = vmatmul.bf16.gmra.mxu3 %v8351_v15 }
 0x3e7   : > { %v4156_v32 = vpack.c.bf16 %v3979_v42, %v3978_v19 }
 0x3e8   : > { %v4155_v59 = vpack.c.bf16 %v3977_v45, %v3977_v45  ;;  %v3987_v45 = vadd.f32 %v7233_v37, %v6770_v48 }
 0x3e9   : > { %4284 = vst [vmem:[%s7251_s10 + $0xa8] sm:$0xff] %v4156_v32  ;;  %v2886_v36 = vpop.f32.mrf.mxu2  ;;  %v3055_v16 = vpop.f32.mrf.mxu3 }
 0x3ea   : > { %4283 = vst [vmem:[%s7251_s10 + $0xa4] sm:$0xf] %v4155_v59  ;;  %v3056_v50 = vadd.f32 %v3055_v16, %v2886_v36  ;;  %v2719_v53 = vpop.f32.mrf.mxu1  ;;  %v3226_v33 = vpop.f32.mrf.mxu0 }
 0x3eb   : > { %v2720_v12 = vadd.f32 %v2719_v53, %v6750_v57 }
 0x3ec   : > { %v3225_v46 = vadd.f32 %v3224_v2, %v3056_v50 }
 0x3ed   : > { %v3982_v38 = vadd.f32 %v7235_v6, %v2720_v12 }
 0x3ee   : > { %v3980_v60 = vadd.f32 %v7254_v62, %v3225_v46  ;;  %v8356_v46 = vld [vmem:[#allocation135_spill] sm:$0xff] }
 0x3ef   : > { %v4158_v55 = vpack.c.bf16 %v3982_v38, %v3981_v0  ;;  %v3990_v48 = vadd.f32 %v7233_v37, %v8356_v46  ;;  %v8357_v0 = vld [vmem:[#allocation134_spill] sm:$0xff]  ;;  %v3999_v46 = vadd.f32 %v7233_v37, %v6822_v41  ;;  %v4002_v41 = vadd.f32 %v7233_v37, %v6833_v31 }
 0x3f0   : > { %v4157_v29 = vpack.c.bf16 %v3980_v60, %v3980_v60  ;;  %v8358_v60 = vld [vmem:[#allocation32_spill] sm:$0xff] }
 0x3f1   : > { %4286 = vst [vmem:[%s7251_s10 + $0xb4] sm:$0xff] %v4158_v55  ;;  %v2888_v44 = vpop.f32.mrf.mxu2  ;;  %v3057_v9 = vpop.f32.mrf.mxu3  ;;  %v8359_v55 = vld [vmem:[#allocation133_spill] sm:$0xff] }
 0x3f2   : > { %4285 = vst [vmem:[%s7251_s10 + $0xb0] sm:$0xf] %v4157_v29  ;;  %v3058_v25 = vadd.f32 %v3057_v9, %v2888_v44  ;;  %v2722_v54 = vpop.f32.mrf.mxu1  ;;  %v3229_v21 = vpop.f32.mrf.mxu0 }
 0x3f3   : > { %v2723_v57 = vadd.f32 %v2722_v54, %v6761_v3 }
 0x3f4   : > { %v3227_v49 = vadd.f32 %v3226_v33, %v3058_v25 }
 0x3f5   : > { %v3985_v27 = vadd.f32 %v7235_v6, %v2723_v57  ;;  %2761 = vmatmul.bf16.gmra.mxu1 %v8353_v4  ;;  %3268 = vmatmul.bf16.gmra.mxu0 %v8353_v4  ;;  %v8360_v57 = vld [vmem:[#allocation138_spill] sm:$0xff] }
 0x3f6   : > { %v3983_v20 = vadd.f32 %v7254_v62, %v3227_v49  ;;  %2930 = vmatmul.bf16.gmra.mxu2 %v8354_v13  ;;  %3099 = vmatmul.bf16.gmra.mxu3 %v8355_v8 }
 0x3f7   : > { %v4160_v35 = vpack.c.bf16 %v3985_v27, %v3984_v17  ;;  %v8361_v27 = vld [vmem:[#allocation137_spill] sm:$0xff] }
 0x3f8   : > { %v4159_v2 = vpack.c.bf16 %v3983_v20, %v3983_v20  ;;  %v3993_v4 = vadd.f32 %v7233_v37, %v8361_v27 }
 0x3f9   : > { %4288 = vst [vmem:[%s7251_s10 + $0xc0] sm:$0xff] %v4160_v35  ;;  %v2891_v3 = vpop.f32.mrf.mxu2  ;;  %v3060_v10 = vpop.f32.mrf.mxu3 }
 0x3fa   : > { %4287 = vst [vmem:[%s7251_s10 + $0xbc] sm:$0xf] %v4159_v2  ;;  %v3061_v1 = vadd.f32 %v3060_v10, %v2891_v3  ;;  %v2724_v24 = vpop.f32.mrf.mxu1  ;;  %v3231_v19 = vpop.f32.mrf.mxu0 }
 0x3fb   : > { %v2725_v42 = vadd.f32 %v2724_v24, %v6772_v26 }
 0x3fc   : > { %v3230_v14 = vadd.f32 %v3229_v21, %v3061_v1 }
 0x3fd   : > { %v3988_v39 = vadd.f32 %v7235_v6, %v2725_v42 }
 0x3fe   : > { %v3986_v15 = vadd.f32 %v7254_v62, %v3230_v14  ;;  %v3996_v14 = vadd.f32 %v7233_v37, %v6807_v56 }
 0x3ff   : > { %v4162_v32 = vpack.c.bf16 %v3988_v39, %v3987_v45  ;;  %v8362_v39 = vld [vmem:[#allocation139_spill] sm:$0xff] }
 0x400   : > { %v4161_v59 = vpack.c.bf16 %v3986_v15, %v3986_v15 }
 0x401   : > { %4290 = vst [vmem:[%s7251_s10 + $0xcc] sm:$0xff] %v4162_v32  ;;  %v2893_v36 = vpop.f32.mrf.mxu2  ;;  %v3062_v16 = vpop.f32.mrf.mxu3  ;;  %v8363_v32 = vld [vmem:[#allocation36_spill] sm:$0xff] }
 0x402   : > { %4289 = vst [vmem:[%s7251_s10 + $0xc8] sm:$0xf] %v4161_v59  ;;  %v3063_v50 = vadd.f32 %v3062_v16, %v2893_v36  ;;  %v2727_v53 = vpop.f32.mrf.mxu1  ;;  %v3234_v33 = vpop.f32.mrf.mxu0  ;;  %v8364_v59 = vld [vmem:[#allocation136_spill] sm:$0xff] }
 0x403   : > { %v2728_v26 = vadd.f32 %v2727_v53, %v6783_v52 }
 0x404   : > { %v3232_v12 = vadd.f32 %v3231_v19, %v3063_v50 }
 0x405   : > { %v3991_v51 = vadd.f32 %v7235_v6, %v2728_v26  ;;  %2766 = vmatmul.bf16.gmra.mxu1 %v8357_v0  ;;  %3273 = vmatmul.bf16.gmra.mxu0 %v8357_v0 }
 0x406   : > { %v3989_v38 = vadd.f32 %v7254_v62, %v3232_v12  ;;  %2935 = vmatmul.bf16.gmra.mxu2 %v8358_v60  ;;  %3104 = vmatmul.bf16.gmra.mxu3 %v8359_v55 }
 0x407   : > { %v4164_v29 = vpack.c.bf16 %v3991_v51, %v3990_v48 }
 0x408   : > { %v4163_v44 = vpack.c.bf16 %v3989_v38, %v3989_v38 }
 0x409   : > { %4292 = vst [vmem:[%s7251_s10 + $0xd8] sm:$0xff] %v4164_v29  ;;  %v2896_v52 = vpop.f32.mrf.mxu2  ;;  %v3065_v9 = vpop.f32.mrf.mxu3 }
 0x40a   : > { %4291 = vst [vmem:[%s7251_s10 + $0xd4] sm:$0xf] %v4163_v44  ;;  %v3066_v25 = vadd.f32 %v3065_v9, %v2896_v52  ;;  %v2729_v54 = vpop.f32.mrf.mxu1  ;;  %v3236_v21 = vpop.f32.mrf.mxu0 }
 0x40b   : > { %v2730_v49 = vadd.f32 %v2729_v54, %v8360_v57  ;;  %v8365_v54 = vld [vmem:[#allocation141_spill] sm:$0xff]  ;;  %v8366_v57 = vld [vmem:[#allocation40_spill] sm:$0xff] }
 0x40c   : > { %v3235_v17 = vadd.f32 %v3234_v33, %v3066_v25 }
 0x40d   : > { %v3994_v20 = vadd.f32 %v7235_v6, %v2730_v49  ;;  %v8367_v49 = vld [vmem:[#allocation140_spill] sm:$0xff] }
 0x40e   : > { %v3992_v13 = vadd.f32 %v7254_v62, %v3235_v17 }
 0x40f   : > { %v4166_v8 = vpack.c.bf16 %v3994_v20, %v3993_v4 }
 0x410   : > { %v4165_v35 = vpack.c.bf16 %v3992_v13, %v3992_v13 }
 0x411   : > { %4294 = vst [vmem:[%s7251_s10 + $0xe4] sm:$0xff] %v4166_v8  ;;  %v2898_v2 = vpop.f32.mrf.mxu2  ;;  %v3067_v3 = vpop.f32.mrf.mxu3 }
 0x412   : > { %4293 = vst [vmem:[%s7251_s10 + $0xe0] sm:$0xf] %v4165_v35  ;;  %v3068_v10 = vadd.f32 %v3067_v3, %v2898_v2  ;;  %v2732_v1 = vpop.f32.mrf.mxu1  ;;  %v3239_v24 = vpop.f32.mrf.mxu0  ;;  %v8368_v2 = vld [vmem:[#allocation143_spill] sm:$0xff] }
 0x413   : > { %v2733_v19 = vadd.f32 %v2732_v1, %v6809_v43  ;;  %v4005_v3 = vadd.f32 %v7233_v37, %v8368_v2 }
 0x414   : > { %v3237_v42 = vadd.f32 %v3236_v21, %v3068_v10 }
 0x415   : > { %v3997_v45 = vadd.f32 %v7235_v6, %v2733_v19  ;;  %2771 = vmatmul.bf16.gmra.mxu1 %v8362_v39  ;;  %3278 = vmatmul.bf16.gmra.mxu0 %v8362_v39 }
 0x416   : > { %v3995_v15 = vadd.f32 %v7254_v62, %v3237_v42  ;;  %2940 = vmatmul.bf16.gmra.mxu2 %v8363_v32  ;;  %3109 = vmatmul.bf16.gmra.mxu3 %v8364_v59  ;;  %v4008_v59 = vadd.f32 %v7233_v37, %v6855_v18 }
 0x417   : > { %v4168_v36 = vpack.c.bf16 %v3997_v45, %v3996_v14 }
 0x418   : > { %v4167_v16 = vpack.c.bf16 %v3995_v15, %v3995_v15 }
 0x419   : > { %4296 = vst [vmem:[%s7251_s10 + $0xf0] sm:$0xff] %v4168_v36  ;;  %v2901_v43 = vpop.f32.mrf.mxu2  ;;  %v3070_v50 = vpop.f32.mrf.mxu3 }
 0x41a   : > { %4295 = vst [vmem:[%s7251_s10 + $0xec] sm:$0xf] %v4167_v16  ;;  %v3071_v56 = vadd.f32 %v3070_v50, %v2901_v43  ;;  %v2734_v53 = vpop.f32.mrf.mxu1  ;;  %v3241_v33 = vpop.f32.mrf.mxu0  ;;  %v8369_v16 = vld [vmem:[#allocation144_spill] sm:$0xff] }
 0x41b   : > { %v2735_v26 = vadd.f32 %v2734_v53, %v6824_v58  ;;  %v8370_v50 = vld [vmem:[#allocation44_spill] sm:$0xff] }
 0x41c   : > { %v3240_v12 = vadd.f32 %v3239_v24, %v3071_v56  ;;  %v8371_v56 = vld [vmem:[#allocation142_spill] sm:$0xff] }
 0x41d   : > { %v4000_v48 = vadd.f32 %v7235_v6, %v2735_v26 }
 0x41e   : > { %v3998_v51 = vadd.f32 %v7254_v62, %v3240_v12 }
 0x41f   : > { %v4170_v0 = vpack.c.bf16 %v4000_v48, %v3999_v46 }
 0x420   : > { %v4169_v38 = vpack.c.bf16 %v3998_v51, %v3998_v51 }
 0x421   : > { %4298 = vst [vmem:[%s7251_s10 + $0xfc] sm:$0xff] %v4170_v0  ;;  %v2903_v60 = vpop.f32.mrf.mxu2  ;;  %v3072_v55 = vpop.f32.mrf.mxu3  ;;  %v4011_v0 = vadd.f32 %v7233_v37, %v6866_v34 }
 0x422   : > { %4297 = vst [vmem:[%s7251_s10 + $0xf8] sm:$0xf] %v4169_v38  ;;  %v3073_v29 = vadd.f32 %v3072_v55, %v2903_v60  ;;  %v2737_v44 = vpop.f32.mrf.mxu1  ;;  %v3244_v52 = vpop.f32.mrf.mxu0 }
 0x423   : > { %v2738_v58 = vadd.f32 %v2737_v44, %v6835_v30 }
 0x424   : > { %v3242_v9 = vadd.f32 %v3241_v33, %v3073_v29 }
 0x425   : > { %v4003_v25 = vadd.f32 %v7235_v6, %v2738_v58  ;;  %2776 = vmatmul.bf16.gmra.mxu1 %v8365_v54  ;;  %3283 = vmatmul.bf16.gmra.mxu0 %v8365_v54  ;;  %v8372_v54 = vld [vmem:[#allocation147_spill] sm:$0xff] }
 0x426   : > { %v4001_v21 = vadd.f32 %v7254_v62, %v3242_v9  ;;  %2945 = vmatmul.bf16.gmra.mxu2 %v8366_v57  ;;  %3114 = vmatmul.bf16.gmra.mxu3 %v8367_v49  ;;  %v4014_v34 = vadd.f32 %v7233_v37, %v8372_v54  ;;  %v8373_v57 = vld [vmem:[#allocation146_spill] sm:$0xff]  ;;  %v8383_v54 = vld [vmem:[#allocation157_spill] sm:$0xff] }
 0x427   : > { %v4172_v17 = vpack.c.bf16 %v4003_v25, %v4002_v41 }
 0x428   : > { %v4171_v27 = vpack.c.bf16 %v4001_v21, %v4001_v21 }
 0x429   : > { %4300 = vst [vmem:[%s7251_s10 + $0x108] sm:$0xff] %v4172_v17  ;;  %v2906_v30 = vpop.f32.mrf.mxu2  ;;  %v3075_v4 = vpop.f32.mrf.mxu3  ;;  %v8374_v17 = vld [vmem:[#allocation48_spill] sm:$0xff] }
 0x42a   : > { %4299 = vst [vmem:[%s7251_s10 + $0x104] sm:$0xf] %v4171_v27  ;;  %v3076_v31 = vadd.f32 %v3075_v4, %v2906_v30  ;;  %v2739_v20 = vpop.f32.mrf.mxu1  ;;  %v3246_v13 = vpop.f32.mrf.mxu0  ;;  %v8375_v27 = vld [vmem:[#allocation145_spill] sm:$0xff] }
 0x42b   : > { %v2740_v8 = vadd.f32 %v2739_v20, %v6846_v40 }
 0x42c   : > { %v3245_v35 = vadd.f32 %v3244_v52, %v3076_v31 }
 0x42d   : > { %v4006_v10 = vadd.f32 %v7235_v6, %v2740_v8 }
 0x42e   : > { %v4004_v1 = vadd.f32 %v7254_v62, %v3245_v35  ;;  %v8376_v35 = vld [vmem:[#allocation150_spill] sm:$0xff] }
 0x42f   : > { %v4174_v24 = vpack.c.bf16 %v4006_v10, %v4005_v3  ;;  %v8377_v10 = vld [vmem:[#allocation149_spill] sm:$0xff] }
 0x430   : > { %v4173_v19 = vpack.c.bf16 %v4004_v1, %v4004_v1  ;;  %v4017_v1 = vadd.f32 %v7233_v37, %v8377_v10  ;;  %v8388_v10 = vld [vmem:[#allocation159_spill] sm:$0xff] }
 0x431   : > { %4302 = vst [vmem:[%s7251_s10 + $0x114] sm:$0xff] %v4174_v24  ;;  %v2908_v42 = vpop.f32.mrf.mxu2  ;;  %v3077_v14 = vpop.f32.mrf.mxu3 }
 0x432   : > { %4301 = vst [vmem:[%s7251_s10 + $0x110] sm:$0xf] %v4173_v19  ;;  %v3078_v45 = vadd.f32 %v3077_v14, %v2908_v42  ;;  %v2742_v39 = vpop.f32.mrf.mxu1  ;;  %v3249_v15 = vpop.f32.mrf.mxu0 }
 0x433   : > { %v2743_v40 = vadd.f32 %v2742_v39, %v6857_v22 }
 0x434   : > { %v3247_v32 = vadd.f32 %v3246_v13, %v3078_v45 }
 0x435   : > { %v4009_v36 = vadd.f32 %v7235_v6, %v2743_v40  ;;  %2781 = vmatmul.bf16.gmra.mxu1 %v8369_v16  ;;  %3288 = vmatmul.bf16.gmra.mxu0 %v8369_v16  ;;  %v4020_v16 = vadd.f32 %v7233_v37, %v6903_v63 }
 0x436   : > { %v4007_v43 = vadd.f32 %v7254_v62, %v3247_v32  ;;  %2950 = vmatmul.bf16.gmra.mxu2 %v8370_v50  ;;  %3119 = vmatmul.bf16.gmra.mxu3 %v8371_v56  ;;  %v8378_v50 = vld [vmem:[#allocation151_spill] sm:$0xff] }
 0x437   : > { %v4176_v53 = vpack.c.bf16 %v4009_v36, %v4008_v59 }
 0x438   : > { %v4175_v33 = vpack.c.bf16 %v4007_v43, %v4007_v43 }
 0x439   : > { %4304 = vst [vmem:[%s7251_s10 + $0x120] sm:$0xff] %v4176_v53  ;;  %v2911_v22 = vpop.f32.mrf.mxu2  ;;  %v3080_v26 = vpop.f32.mrf.mxu3  ;;  %v8379_v53 = vld [vmem:[#allocation52_spill] sm:$0xff] }
 0x43a   : > { %4303 = vst [vmem:[%s7251_s10 + $0x11c] sm:$0xf] %v4175_v33  ;;  %v3081_v18 = vadd.f32 %v3080_v26, %v2911_v22  ;;  %v2744_v12 = vpop.f32.mrf.mxu1  ;;  %v3251_v46 = vpop.f32.mrf.mxu0  ;;  %v8380_v33 = vld [vmem:[#allocation148_spill] sm:$0xff] }
 0x43b   : > { %v2745_v48 = vadd.f32 %v2744_v12, %v6868_v11 }
 0x43c   : > { %v3250_v51 = vadd.f32 %v3249_v15, %v3081_v18 }
 0x43d   : > { %v4012_v38 = vadd.f32 %v7235_v6, %v2745_v48  ;;  %v8381_v48 = vld [vmem:[#allocation154_spill] sm:$0xff] }
 0x43e   : > { %v4010_v60 = vadd.f32 %v7254_v62, %v3250_v51 }
 0x43f   : > { %v4178_v55 = vpack.c.bf16 %v4012_v38, %v4011_v0  ;;  %v8382_v38 = vld [vmem:[#allocation153_spill] sm:$0xff] }
 0x440   : > { %v4177_v29 = vpack.c.bf16 %v4010_v60, %v4010_v60  ;;  %v4023_v60 = vadd.f32 %v7233_v37, %v8382_v38 }
 0x441   : > { %4306 = vst [vmem:[%s7251_s10 + $0x12c] sm:$0xff] %v4178_v55  ;;  %v2913_v44 = vpop.f32.mrf.mxu2  ;;  %v3082_v52 = vpop.f32.mrf.mxu3 }
 0x442   : > { %4305 = vst [vmem:[%s7251_s10 + $0x128] sm:$0xf] %v4177_v29  ;;  %v3083_v58 = vadd.f32 %v3082_v52, %v2913_v44  ;;  %v2747_v9 = vpop.f32.mrf.mxu1  ;;  %v3254_v41 = vpop.f32.mrf.mxu0 }
 0x443   : > { %v2748_v11 = vadd.f32 %v2747_v9, %v6879_v28 }
 0x444   : > { %v3252_v25 = vadd.f32 %v3251_v46, %v3083_v58 }
 0x445   : > { %v4015_v21 = vadd.f32 %v7235_v6, %v2748_v11  ;;  %2786 = vmatmul.bf16.gmra.mxu1 %v8373_v57  ;;  %3293 = vmatmul.bf16.gmra.mxu0 %v8373_v57  ;;  %v8384_v57 = vld [vmem:[#allocation156_spill] sm:$0xff] }
 0x446   : > { %v4013_v49 = vadd.f32 %v7254_v62, %v3252_v25  ;;  %2955 = vmatmul.bf16.gmra.mxu2 %v8374_v17  ;;  %3124 = vmatmul.bf16.gmra.mxu3 %v8375_v27  ;;  %v8385_v27 = vld [vmem:[#allocation155_spill] sm:$0xff] }
 0x447   : > { %v4180_v30 = vpack.c.bf16 %v4015_v21, %v4014_v34 }
 0x448   : > { %v4179_v4 = vpack.c.bf16 %v4013_v49, %v4013_v49  ;;  %v4026_v49 = vadd.f32 %v7233_v37, %v8384_v57 }
 0x449   : > { %4308 = vst [vmem:[%s7251_s10 + $0x138] sm:$0xff] %v4180_v30  ;;  %v2916_v28 = vpop.f32.mrf.mxu2  ;;  %v3085_v31 = vpop.f32.mrf.mxu3 }
 0x44a   : > { %4307 = vst [vmem:[%s7251_s10 + $0x134] sm:$0xf] %v4179_v4  ;;  %v3086_v20 = vadd.f32 %v3085_v31, %v2916_v28  ;;  %v2749_v13 = vpop.f32.mrf.mxu1  ;;  %v3256_v8 = vpop.f32.mrf.mxu0  ;;  %v8386_v4 = vld [vmem:[#allocation56_spill] sm:$0xff] }
 0x44b   : > { %v2750_v2 = vadd.f32 %v2749_v13, %v8376_v35  ;;  %v8387_v28 = vld [vmem:[#allocation152_spill] sm:$0xff] }
 0x44c   : > { %v3255_v3 = vadd.f32 %v3254_v41, %v3086_v20 }
 0x44d   : > { %v4018_v24 = vadd.f32 %v7235_v6, %v2750_v2 }
 0x44e   : > { %v4016_v19 = vadd.f32 %v7254_v62, %v3255_v3 }
 0x44f   : > { %v4182_v42 = vpack.c.bf16 %v4018_v24, %v4017_v1 }
 0x450   : > { %v4181_v14 = vpack.c.bf16 %v4016_v19, %v4016_v19  ;;  %v8389_v19 = vld [vmem:[#allocation158_spill] sm:$0xff] }
 0x451   : > { %4310 = vst [vmem:[%s7251_s10 + $0x144] sm:$0xff] %v4182_v42  ;;  %v2918_v45 = vpop.f32.mrf.mxu2  ;;  %v3087_v39 = vpop.f32.mrf.mxu3  ;;  %v4029_v42 = vadd.f32 %v7233_v37, %v8389_v19 }
 0x452   : > { %4309 = vst [vmem:[%s7251_s10 + $0x140] sm:$0xf] %v4181_v14  ;;  %v3088_v15 = vadd.f32 %v3087_v39, %v2918_v45  ;;  %v2752_v40 = vpop.f32.mrf.mxu1  ;;  %v3259_v32 = vpop.f32.mrf.mxu0 }
 0x453   : > { %v2753_v59 = vadd.f32 %v2752_v40, %v6905_v61 }
 0x454   : > { %v3257_v36 = vadd.f32 %v3256_v8, %v3088_v15 }
 0x455   : > { %v4021_v43 = vadd.f32 %v7235_v6, %v2753_v59  ;;  %2791 = vmatmul.bf16.gmra.mxu1 %v8378_v50  ;;  %3298 = vmatmul.bf16.gmra.mxu0 %v8378_v50 }
 0x456   : > { %v4019_v56 = vadd.f32 %v7254_v62, %v3257_v36  ;;  %2960 = vmatmul.bf16.gmra.mxu2 %v8379_v53  ;;  %3129 = vmatmul.bf16.gmra.mxu3 %v8380_v33  ;;  %v8391_v53 = vld [vmem:[#allocation60_spill] sm:$0xff] }
 0x457   : > { %v4184_v22 = vpack.c.bf16 %v4021_v43, %v4020_v16  ;;  %v8390_v43 = vld [vmem:[#allocation161_spill] sm:$0xff]  ;;  %v4032_v33 = vadd.f32 %v7233_v37, %v8391_v53 }
 0x458   : > { %v4183_v26 = vpack.c.bf16 %v4019_v56, %v4019_v56 }
 0x459   : > { %4312 = vst [vmem:[%s7251_s10 + $0x150] sm:$0xff] %v4184_v22  ;;  %v2921_v61 = vpop.f32.mrf.mxu2  ;;  %v3090_v18 = vpop.f32.mrf.mxu3 }
 0x45a   : > { %4311 = vst [vmem:[%s7251_s10 + $0x14c] sm:$0xf] %v4183_v26  ;;  %v3091_v63 = vadd.f32 %v3090_v18, %v2921_v61  ;;  %v2754_v12 = vpop.f32.mrf.mxu1  ;;  %v3261_v46 = vpop.f32.mrf.mxu0  ;;  %v8392_v26 = vld [vmem:[#allocation160_spill] sm:$0xff]  ;;  %v8393_v18 = vld [vmem:[#allocation29_spill] sm:$0xff] }
 0x45b   : > { %v2755_v51 = vadd.f32 %v2754_v12, %v8381_v48 }
 0x45c   : > { %v3260_v0 = vadd.f32 %v3259_v32, %v3091_v63  ;;  %v8394_v63 = vld [vmem:[#allocation104_spill] sm:$0xff] }
 0x45d   : > { %v4024_v55 = vadd.f32 %v7235_v6, %v2755_v51 }
 0x45e   : > { %v4022_v29 = vadd.f32 %v7254_v62, %v3260_v0 }
 0x45f   : > { %v4186_v44 = vpack.c.bf16 %v4024_v55, %v4023_v60  ;;  %v8395_v55 = vld [vmem:[#allocation163_spill] sm:$0xff] }
 0x460   : > { %v4185_v52 = vpack.c.bf16 %v4022_v29, %v4022_v29 }
 0x461   : > { %4314 = vst [vmem:[%s7251_s10 + $0x15c] sm:$0xff] %v4186_v44  ;;  %v2923_v58 = vpop.f32.mrf.mxu2  ;;  %v3092_v9 = vpop.f32.mrf.mxu3 }
 0x462   : > { %4313 = vst [vmem:[%s7251_s10 + $0x158] sm:$0xf] %v4185_v52  ;;  %v3093_v41 = vadd.f32 %v3092_v9, %v2923_v58  ;;  %v2757_v11 = vpop.f32.mrf.mxu1  ;;  %v3264_v25 = vpop.f32.mrf.mxu0  ;;  %v8396_v52 = vld [vmem:[#allocation162_spill] sm:$0xff] }
 0x463   : > { %v2758_v34 = vadd.f32 %v2757_v11, %v8383_v54  ;;  %v4035_v58 = vadd.f32 %v7233_v37, %v8396_v52  ;;  %v8408_v52 = vld [vmem:[#allocation170_spill] sm:$0xff] }
 0x464   : > { %v3262_v21 = vadd.f32 %v3261_v46, %v3093_v41 }
 0x465   : > { %v4027_v17 = vadd.f32 %v7235_v6, %v2758_v34  ;;  %2796 = vmatmul.bf16.gmra.mxu1 %v8385_v27  ;;  %3303 = vmatmul.bf16.gmra.mxu0 %v8385_v27 }
 0x466   : > { %v4025_v30 = vadd.f32 %v7254_v62, %v3262_v21  ;;  %2965 = vmatmul.bf16.gmra.mxu2 %v8386_v4  ;;  %3134 = vmatmul.bf16.gmra.mxu3 %v8387_v28  ;;  %v8398_v4 = vld [vmem:[#allocation66_spill] sm:$0xff] }
 0x467   : > { %v4188_v31 = vpack.c.bf16 %v4027_v17, %v4026_v49  ;;  %v8397_v17 = vld [vmem:[#allocation165_spill] sm:$0xff]  ;;  %v4038_v28 = vadd.f32 %v7233_v37, %v8398_v4  ;;  %v8410_v4 = vld [vmem:[#allocation172_spill] sm:$0xff] }
 0x468   : > { %v4187_v20 = vpack.c.bf16 %v4025_v30, %v4025_v30 }
 0x469   : > { %4316 = vst [vmem:[%s7251_s10 + $0x168] sm:$0xff] %v4188_v31  ;;  %v2926_v13 = vpop.f32.mrf.mxu2  ;;  %v3095_v8 = vpop.f32.mrf.mxu3 }
 0x46a   : > { %4315 = vst [vmem:[%s7251_s10 + $0x164] sm:$0xf] %v4187_v20  ;;  %v3096_v35 = vadd.f32 %v3095_v8, %v2926_v13  ;;  %v2759_v2 = vpop.f32.mrf.mxu1  ;;  %v3266_v3 = vpop.f32.mrf.mxu0  ;;  %v8399_v20 = vld [vmem:[#allocation164_spill] sm:$0xff]  ;;  %v8400_v8 = vld [vmem:[#allocation33_spill] sm:$0xff] }
 0x46b   : > { %v2760_v1 = vadd.f32 %v2759_v2, %v8388_v10 }
 0x46c   : > { %v3265_v24 = vadd.f32 %v3264_v25, %v3096_v35  ;;  %v8401_v35 = vld [vmem:[#allocation62_spill] sm:$0xff] }
 0x46d   : > { %v4030_v14 = vadd.f32 %v7235_v6, %v2760_v1 }
 0x46e   : > { %v4028_v45 = vadd.f32 %v7254_v62, %v3265_v24 }
 0x46f   : > { %v4190_v39 = vpack.c.bf16 %v4030_v14, %v4029_v42  ;;  %v8402_v14 = vld [vmem:[#allocation167_spill] sm:$0xff] }
 0x470   : > { %v4189_v15 = vpack.c.bf16 %v4028_v45, %v4028_v45 }
 0x471   : > { %4318 = vst [vmem:[%s7251_s10 + $0x174] sm:$0xff] %v4190_v39  ;;  %v2928_v40 = vpop.f32.mrf.mxu2  ;;  %v3097_v32 = vpop.f32.mrf.mxu3 }
 0x472   : > { %4317 = vst [vmem:[%s7251_s10 + $0x170] sm:$0xf] %v4189_v15  ;;  %v3098_v59 = vadd.f32 %v3097_v32, %v2928_v40  ;;  %v2762_v36 = vpop.f32.mrf.mxu1  ;;  %v3269_v16 = vpop.f32.mrf.mxu0  ;;  %v8403_v15 = vld [vmem:[#allocation166_spill] sm:$0xff] }
 0x473   : > { %v2763_v50 = vadd.f32 %v2762_v36, %v8390_v43  ;;  %v4041_v40 = vadd.f32 %v7233_v37, %v8403_v15  ;;  %v8415_v15 = vld [vmem:[#allocation174_spill] sm:$0xff] }
 0x474   : > { %v3267_v56 = vadd.f32 %v3266_v3, %v3098_v59 }
 0x475   : > { %v4033_v22 = vadd.f32 %v7235_v6, %v2763_v50  ;;  %2801 = vmatmul.bf16.gmra.mxu1 %v8392_v26  ;;  %3308 = vmatmul.bf16.gmra.mxu0 %v8392_v26 }
 0x476   : > { %v4031_v61 = vadd.f32 %v7254_v62, %v3267_v56  ;;  %2970 = vmatmul.bf16.gmra.mxu2 %v8393_v18  ;;  %3139 = vmatmul.bf16.gmra.mxu3 %v8394_v63 }
 0x477   : > { %v4192_v12 = vpack.c.bf16 %v4033_v22, %v4032_v33 }
 0x478   : > { %v4191_v46 = vpack.c.bf16 %v4031_v61, %v4031_v61  ;;  %v8404_v61 = vld [vmem:[#allocation72_spill] sm:$0xff] }
 0x479   : > { %4320 = vst [vmem:[%s7251_s10 + $0x180] sm:$0xff] %v4192_v12  ;;  %v2931_v48 = vpop.f32.mrf.mxu2  ;;  %v3100_v51 = vpop.f32.mrf.mxu3  ;;  %v4044_v18 = vadd.f32 %v7233_v37, %v8404_v61  ;;  %v8405_v12 = vld [vmem:[#allocation168_spill] sm:$0xff] }
 0x47a   : > { %4319 = vst [vmem:[%s7251_s10 + $0x17c] sm:$0xf] %v4191_v46  ;;  %v3101_v0 = vadd.f32 %v3100_v51, %v2931_v48  ;;  %v2764_v38 = vpop.f32.mrf.mxu1  ;;  %v3271_v60 = vpop.f32.mrf.mxu0  ;;  %v8406_v48 = vld [vmem:[#allocation37_spill] sm:$0xff]  ;;  %v8407_v51 = vld [vmem:[#allocation68_spill] sm:$0xff] }
 0x47b   : > { %v2765_v29 = vadd.f32 %v2764_v38, %v8395_v55 }
 0x47c   : > { %v3270_v44 = vadd.f32 %v3269_v16, %v3101_v0 }
 0x47d   : > { %v4036_v9 = vadd.f32 %v7235_v6, %v2765_v29 }
 0x47e   : > { %v4034_v41 = vadd.f32 %v7254_v62, %v3270_v44 }
 0x47f   : > { %v4194_v11 = vpack.c.bf16 %v4036_v9, %v4035_v58 }
 0x480   : > { %v4193_v25 = vpack.c.bf16 %v4034_v41, %v4034_v41  ;;  %v8409_v41 = vld [vmem:[#allocation169_spill] sm:$0xff] }
 0x481   : > { %4322 = vst [vmem:[%s7251_s10 + $0x18c] sm:$0xff] %v4194_v11  ;;  %v2933_v54 = vpop.f32.mrf.mxu2  ;;  %v3102_v34 = vpop.f32.mrf.mxu3  ;;  %v4047_v11 = vadd.f32 %v7233_v37, %v8409_v41 }
 0x482   : > { %4321 = vst [vmem:[%s7251_s10 + $0x188] sm:$0xf] %v4193_v25  ;;  %v3103_v21 = vadd.f32 %v3102_v34, %v2933_v54  ;;  %v2767_v57 = vpop.f32.mrf.mxu1  ;;  %v3274_v49 = vpop.f32.mrf.mxu0 }
 0x483   : > { %v2768_v27 = vadd.f32 %v2767_v57, %v8397_v17 }
 0x484   : > { %v3272_v30 = vadd.f32 %v3271_v60, %v3103_v21 }
 0x485   : > { %v4039_v31 = vadd.f32 %v7235_v6, %v2768_v27  ;;  %2806 = vmatmul.bf16.gmra.mxu1 %v8399_v20  ;;  %3313 = vmatmul.bf16.gmra.mxu0 %v8399_v20  ;;  %v8411_v20 = vld [vmem:[#allocation78_spill] sm:$0xff] }
 0x486   : > { %v4037_v13 = vadd.f32 %v7254_v62, %v3272_v30  ;;  %2975 = vmatmul.bf16.gmra.mxu2 %v8400_v8  ;;  %3144 = vmatmul.bf16.gmra.mxu3 %v8401_v35  ;;  %v8412_v35 = vld [vmem:[#allocation171_spill] sm:$0xff] }
 0x487   : > { %v4196_v2 = vpack.c.bf16 %v4039_v31, %v4038_v28 }
 0x488   : > { %v4195_v3 = vpack.c.bf16 %v4037_v13, %v4037_v13  ;;  %v4050_v13 = vadd.f32 %v7233_v37, %v8411_v20 }
 0x489   : > { %4324 = vst [vmem:[%s7251_s10 + $0x198] sm:$0xff] %v4196_v2  ;;  %v2936_v10 = vpop.f32.mrf.mxu2  ;;  %v3105_v1 = vpop.f32.mrf.mxu3 }
 0x48a   : > { %4323 = vst [vmem:[%s7251_s10 + $0x194] sm:$0xf] %v4195_v3  ;;  %v3106_v24 = vadd.f32 %v3105_v1, %v2936_v10  ;;  %v2769_v19 = vpop.f32.mrf.mxu1  ;;  %v3276_v42 = vpop.f32.mrf.mxu0  ;;  %v8413_v3 = vld [vmem:[#allocation41_spill] sm:$0xff]  ;;  %v8414_v10 = vld [vmem:[#allocation74_spill] sm:$0xff] }
 0x48b   : > { %v2770_v45 = vadd.f32 %v2769_v19, %v8402_v14 }
 0x48c   : > { %v3275_v39 = vadd.f32 %v3274_v49, %v3106_v24 }
 0x48d   : > { %v4042_v32 = vadd.f32 %v7235_v6, %v2770_v45 }
 0x48e   : > { %v4040_v59 = vadd.f32 %v7254_v62, %v3275_v39 }
 0x48f   : > { %v4198_v36 = vpack.c.bf16 %v4042_v32, %v4041_v40 }
 0x490   : > { %v4197_v16 = vpack.c.bf16 %v4040_v59, %v4040_v59  ;;  %v8416_v59 = vld [vmem:[#allocation173_spill] sm:$0xff] }
 0x491   : > { %4326 = vst [vmem:[%s7251_s10 + $0x1a4] sm:$0xff] %v4198_v36  ;;  %v2938_v43 = vpop.f32.mrf.mxu2  ;;  %v3107_v50 = vpop.f32.mrf.mxu3  ;;  %v4053_v36 = vadd.f32 %v7233_v37, %v8416_v59 }
 0x492   : > { %4325 = vst [vmem:[%s7251_s10 + $0x1a0] sm:$0xf] %v4197_v16  ;;  %v3108_v56 = vadd.f32 %v3107_v50, %v2938_v43  ;;  %v2772_v53 = vpop.f32.mrf.mxu1  ;;  %v3279_v33 = vpop.f32.mrf.mxu0 }
 0x493   : > { %v2773_v22 = vadd.f32 %v2772_v53, %v7001_v47 }
 0x494   : > { %v3277_v26 = vadd.f32 %v3276_v42, %v3108_v56 }
 0x495   : > { %v4045_v63 = vadd.f32 %v7235_v6, %v2773_v22  ;;  %2811 = vmatmul.bf16.gmra.mxu1 %v8405_v12  ;;  %3318 = vmatmul.bf16.gmra.mxu0 %v8405_v12 }
 0x496   : > { %v4043_v46 = vadd.f32 %v7254_v62, %v3277_v26  ;;  %2980 = vmatmul.bf16.gmra.mxu2 %v8406_v48  ;;  %3149 = vmatmul.bf16.gmra.mxu3 %v8407_v51 }
 0x497   : > { %v4200_v0 = vpack.c.bf16 %v4045_v63, %v4044_v18  ;;  %v8417_v18 = vld [vmem:[#allocation176_spill] sm:$0xff] }
 0x498   : > { %v4199_v38 = vpack.c.bf16 %v4043_v46, %v4043_v46  ;;  %v8418_v46 = vld [vmem:[#allocation84_spill] sm:$0xff] }
 0x499   : > { %4328 = vst [vmem:[%s7251_s10 + $0x1b0] sm:$0xff] %v4200_v0  ;;  %v2941_v47 = vpop.f32.mrf.mxu2  ;;  %v3110_v60 = vpop.f32.mrf.mxu3  ;;  %v4056_v48 = vadd.f32 %v7233_v37, %v8418_v46  ;;  %v8419_v0 = vld [vmem:[#allocation175_spill] sm:$0xff] }
 0x49a   : > { %4327 = vst [vmem:[%s7251_s10 + $0x1ac] sm:$0xf] %v4199_v38  ;;  %v3111_v55 = vadd.f32 %v3110_v60, %v2941_v47  ;;  %v2774_v29 = vpop.f32.mrf.mxu1  ;;  %v3281_v44 = vpop.f32.mrf.mxu0  ;;  %v8420_v47 = vld [vmem:[#allocation45_spill] sm:$0xff]  ;;  %v8421_v60 = vld [vmem:[#allocation80_spill] sm:$0xff] }
 0x49b   : > { %v2775_v58 = vadd.f32 %v2774_v29, %v8408_v52 }
 0x49c   : > { %v3280_v9 = vadd.f32 %v3279_v33, %v3111_v55 }
 0x49d   : > { %v4048_v25 = vadd.f32 %v7235_v6, %v2775_v58 }
 0x49e   : > { %v4046_v54 = vadd.f32 %v7254_v62, %v3280_v9 }
 0x49f   : > { %v4202_v34 = vpack.c.bf16 %v4048_v25, %v4047_v11  ;;  %v8422_v11 = vld [vmem:[#allocation178_spill] sm:$0xff] }
 0x4a0   : > { %v4201_v21 = vpack.c.bf16 %v4046_v54, %v4046_v54 }
 0x4a1   : > { %4330 = vst [vmem:[%s7251_s10 + $0x1bc] sm:$0xff] %v4202_v34  ;;  %v2943_v57 = vpop.f32.mrf.mxu2  ;;  %v3112_v49 = vpop.f32.mrf.mxu3  ;;  %v8423_v34 = vld [vmem:[#allocation177_spill] sm:$0xff] }
 0x4a2   : > { %4329 = vst [vmem:[%s7251_s10 + $0x1b8] sm:$0xf] %v4201_v21  ;;  %v3113_v17 = vadd.f32 %v3112_v49, %v2943_v57  ;;  %v2777_v27 = vpop.f32.mrf.mxu1  ;;  %v3284_v30 = vpop.f32.mrf.mxu0  ;;  %v4059_v21 = vadd.f32 %v7233_v37, %v8423_v34 }
 0x4a3   : > { %v2778_v28 = vadd.f32 %v2777_v27, %v8410_v4 }
 0x4a4   : > { %v3282_v31 = vadd.f32 %v3281_v44, %v3113_v17 }
 0x4a5   : > { %v4051_v8 = vadd.f32 %v7235_v6, %v2778_v28  ;;  %2816 = vmatmul.bf16.gmra.mxu1 %v8412_v35  ;;  %3323 = vmatmul.bf16.gmra.mxu0 %v8412_v35 }
 0x4a6   : > { %v4049_v2 = vadd.f32 %v7254_v62, %v3282_v31  ;;  %2985 = vmatmul.bf16.gmra.mxu2 %v8413_v3  ;;  %3154 = vmatmul.bf16.gmra.mxu3 %v8414_v10 }
 0x4a7   : > { %v4204_v1 = vpack.c.bf16 %v4051_v8, %v4050_v13  ;;  %v8424_v13 = vld [vmem:[#allocation180_spill] sm:$0xff] }
 0x4a8   : > { %v4203_v24 = vpack.c.bf16 %v4049_v2, %v4049_v2  ;;  %v8425_v2 = vld [vmem:[#allocation90_spill] sm:$0xff] }
 0x4a9   : > { %4332 = vst [vmem:[%s7251_s10 + $0x1c8] sm:$0xff] %v4204_v1  ;;  %v2946_v19 = vpop.f32.mrf.mxu2  ;;  %v3115_v42 = vpop.f32.mrf.mxu3  ;;  %v4062_v3 = vadd.f32 %v7233_v37, %v8425_v2  ;;  %v8426_v1 = vld [vmem:[#allocation179_spill] sm:$0xff] }
 0x4aa   : > { %4331 = vst [vmem:[%s7251_s10 + $0x1c4] sm:$0xf] %v4203_v24  ;;  %v3116_v14 = vadd.f32 %v3115_v42, %v2946_v19  ;;  %v2779_v45 = vpop.f32.mrf.mxu1  ;;  %v3286_v39 = vpop.f32.mrf.mxu0  ;;  %v8427_v19 = vld [vmem:[#allocation49_spill] sm:$0xff]  ;;  %v8428_v42 = vld [vmem:[#allocation86_spill] sm:$0xff] }
 0x4ab   : > { %v2780_v40 = vadd.f32 %v2779_v45, %v8415_v15 }
 0x4ac   : > { %v3285_v32 = vadd.f32 %v3284_v30, %v3116_v14 }
 0x4ad   : > { %v4054_v16 = vadd.f32 %v7235_v6, %v2780_v40 }
 0x4ae   : > { %v4052_v43 = vadd.f32 %v7254_v62, %v3285_v32 }
 0x4af   : > { %v4206_v50 = vpack.c.bf16 %v4054_v16, %v4053_v36  ;;  %v8429_v36 = vld [vmem:[#allocation182_spill] sm:$0xff] }
 0x4b0   : > { %v4205_v56 = vpack.c.bf16 %v4052_v43, %v4052_v43 }
 0x4b1   : > { %4334 = vst [vmem:[%s7251_s10 + $0x1d4] sm:$0xff] %v4206_v50  ;;  %v2948_v53 = vpop.f32.mrf.mxu2  ;;  %v3117_v33 = vpop.f32.mrf.mxu3  ;;  %v8430_v50 = vld [vmem:[#allocation181_spill] sm:$0xff] }
 0x4b2   : > { %4333 = vst [vmem:[%s7251_s10 + $0x1d0] sm:$0xf] %v4205_v56  ;;  %v3118_v22 = vadd.f32 %v3117_v33, %v2948_v53  ;;  %v2782_v26 = vpop.f32.mrf.mxu1  ;;  %v3289_v61 = vpop.f32.mrf.mxu0  ;;  %v4065_v56 = vadd.f32 %v7233_v37, %v8430_v50 }
 0x4b3   : > { %v2783_v63 = vadd.f32 %v2782_v26, %v8417_v18 }
 0x4b4   : > { %v3287_v12 = vadd.f32 %v3286_v39, %v3118_v22 }
 0x4b5   : > { %v4057_v51 = vadd.f32 %v7235_v6, %v2783_v63  ;;  %2821 = vmatmul.bf16.gmra.mxu1 %v8419_v0  ;;  %3328 = vmatmul.bf16.gmra.mxu0 %v8419_v0  ;;  %v8431_v0 = vld [vmem:[#allocation96_spill] sm:$0xff] }
 0x4b6   : > { %v4055_v38 = vadd.f32 %v7254_v62, %v3287_v12  ;;  %2990 = vmatmul.bf16.gmra.mxu2 %v8420_v47  ;;  %3159 = vmatmul.bf16.gmra.mxu3 %v8421_v60  ;;  %v8432_v60 = vld [vmem:[#allocation183_spill] sm:$0xff] }
 0x4b7   : > { %v4208_v55 = vpack.c.bf16 %v4057_v51, %v4056_v48 }
 0x4b8   : > { %v4207_v29 = vpack.c.bf16 %v4055_v38, %v4055_v38  ;;  %v4068_v38 = vadd.f32 %v7233_v37, %v8431_v0  ;;  %v8444_v0 = vld [vmem:[#allocation26_spill] sm:$0xff] }
 0x4b9   : > { %4336 = vst [vmem:[%s7251_s10 + $0x1e0] sm:$0xff] %v4208_v55  ;;  %v2951_v44 = vpop.f32.mrf.mxu2  ;;  %v3120_v52 = vpop.f32.mrf.mxu3 }
 0x4ba   : > { %4335 = vst [vmem:[%s7251_s10 + $0x1dc] sm:$0xf] %v4207_v29  ;;  %v3121_v58 = vadd.f32 %v3120_v52, %v2951_v44  ;;  %v2784_v9 = vpop.f32.mrf.mxu1  ;;  %v3291_v41 = vpop.f32.mrf.mxu0  ;;  %v8433_v29 = vld [vmem:[#allocation53_spill] sm:$0xff]  ;;  %v8434_v44 = vld [vmem:[#allocation92_spill] sm:$0xff] }
 0x4bb   : > { %v2785_v25 = vadd.f32 %v2784_v9, %v8422_v11 }
 0x4bc   : > { %v3290_v54 = vadd.f32 %v3289_v61, %v3121_v58 }
 0x4bd   : > { %v4060_v57 = vadd.f32 %v7235_v6, %v2785_v25 }
 0x4be   : > { %v4058_v49 = vadd.f32 %v7254_v62, %v3290_v54  ;;  %v8435_v54 = vld [vmem:[#allocation185_spill] sm:$0xff] }
 0x4bf   : > { %v4210_v17 = vpack.c.bf16 %v4060_v57, %v4059_v21  ;;  %v8436_v57 = vld [vmem:[#allocation184_spill] sm:$0xff] }
 0x4c0   : > { %v4209_v27 = vpack.c.bf16 %v4058_v49, %v4058_v49  ;;  %v4071_v49 = vadd.f32 %v7233_v37, %v8436_v57  ;;  %v8447_v57 = vld [vmem:[#allocation58_spill] sm:$0xff] }
 0x4c1   : > { %4338 = vst [vmem:[%s7251_s10 + $0x1ec] sm:$0xff] %v4210_v17  ;;  %v2953_v30 = vpop.f32.mrf.mxu2  ;;  %v3122_v4 = vpop.f32.mrf.mxu3 }
 0x4c2   : > { %4337 = vst [vmem:[%s7251_s10 + $0x1e8] sm:$0xf] %v4209_v27  ;;  %v3123_v28 = vadd.f32 %v3122_v4, %v2953_v30  ;;  %v2787_v31 = vpop.f32.mrf.mxu1  ;;  %v3294_v20 = vpop.f32.mrf.mxu0 }
 0x4c3   : > { %v2788_v8 = vadd.f32 %v2787_v31, %v8424_v13 }
 0x4c4   : > { %v3292_v35 = vadd.f32 %v3291_v41, %v3123_v28 }
 0x4c5   : > { %v4063_v10 = vadd.f32 %v7235_v6, %v2788_v8  ;;  %2826 = vmatmul.bf16.gmra.mxu1 %v8426_v1  ;;  %3333 = vmatmul.bf16.gmra.mxu0 %v8426_v1 }
 0x4c6   : > { %v4061_v24 = vadd.f32 %v7254_v62, %v3292_v35  ;;  %2995 = vmatmul.bf16.gmra.mxu2 %v8427_v19  ;;  %3164 = vmatmul.bf16.gmra.mxu3 %v8428_v42  ;;  %v8437_v35 = vld [vmem:[#allocation187_spill] sm:$0xff]  ;;  %v8439_v19 = vld [vmem:[#allocation186_spill] sm:$0xff] }
 0x4c7   : > { %v4212_v14 = vpack.c.bf16 %v4063_v10, %v4062_v3  ;;  %v8438_v10 = vld [vmem:[#allocation102_spill] sm:$0xff] }
 0x4c8   : > { %v4211_v45 = vpack.c.bf16 %v4061_v24, %v4061_v24  ;;  %v4074_v1 = vadd.f32 %v7233_v37, %v8438_v10  ;;  %v8449_v10 = vld [vmem:[#allocation63_spill] sm:$0xff] }
 0x4c9   : > { %4340 = vst [vmem:[%s7251_s10 + $0x1f8] sm:$0xff] %v4212_v14  ;;  %v2956_v39 = vpop.f32.mrf.mxu2  ;;  %v3125_v15 = vpop.f32.mrf.mxu3  ;;  %v8440_v14 = vld [vmem:[#allocation57_spill] sm:$0xff] }
 0x4ca   : > { %4339 = vst [vmem:[%s7251_s10 + $0x1f4] sm:$0xf] %v4211_v45  ;;  %v3126_v40 = vadd.f32 %v3125_v15, %v2956_v39  ;;  %v2789_v32 = vpop.f32.mrf.mxu1  ;;  %v3296_v59 = vpop.f32.mrf.mxu0  ;;  %v8441_v45 = vld [vmem:[#allocation98_spill] sm:$0xff] }
 0x4cb   : > { %v2790_v16 = vadd.f32 %v2789_v32, %v8429_v36 }
 0x4cc   : > { %v3295_v43 = vadd.f32 %v3294_v20, %v3126_v40 }
 0x4cd   : > { %v4066_v53 = vadd.f32 %v7235_v6, %v2790_v16 }
 0x4ce   : > { %v4064_v33 = vadd.f32 %v7254_v62, %v3295_v43  ;;  %v8442_v43 = vld [vmem:[#allocation188_spill] sm:$0xff] }
 0x4cf   : > { %v4214_v22 = vpack.c.bf16 %v4066_v53, %v4065_v56  ;;  %v8443_v53 = vld [vmem:[#allocation105_spill] sm:$0xff] }
 0x4d0   : > { %v4213_v26 = vpack.c.bf16 %v4064_v33, %v4064_v33  ;;  %v4077_v33 = vadd.f32 %v7233_v37, %v8443_v53 }
 0x4d1   : > { %4342 = vst [vmem:[%s7251_s10 + $0x204] sm:$0xff] %v4214_v22  ;;  %v2958_v61 = vpop.f32.mrf.mxu2  ;;  %v3127_v18 = vpop.f32.mrf.mxu3 }
 0x4d2   : > { %4341 = vst [vmem:[%s7251_s10 + $0x200] sm:$0xf] %v4213_v26  ;;  %v3128_v63 = vadd.f32 %v3127_v18, %v2958_v61  ;;  %v2792_v12 = vpop.f32.mrf.mxu1  ;;  %v3299_v46 = vpop.f32.mrf.mxu0 }
 0x4d3   : > { %v2793_v48 = vadd.f32 %v2792_v12, %v7093_v23 }
 0x4d4   : > { %v3297_v51 = vadd.f32 %v3296_v59, %v3128_v63 }
 0x4d5   : > { %v4069_v47 = vadd.f32 %v7235_v6, %v2793_v48  ;;  %2831 = vmatmul.bf16.gmra.mxu1 %v8432_v60  ;;  %3338 = vmatmul.bf16.gmra.mxu0 %v8432_v60  ;;  %v8445_v60 = vld [vmem:[#allocation59_spill] sm:$0xff] }
 0x4d6   : > { %v4067_v55 = vadd.f32 %v7254_v62, %v3297_v51  ;;  %3000 = vmatmul.bf16.gmra.mxu2 %v8433_v29  ;;  %3169 = vmatmul.bf16.gmra.mxu3 %v8434_v44 }
 0x4d7   : > { %v4216_v52 = vpack.c.bf16 %v4069_v47, %v4068_v38 }
 0x4d8   : > { %v4215_v58 = vpack.c.bf16 %v4067_v55, %v4067_v55  ;;  %v4080_v55 = vadd.f32 %v7233_v37, %v8445_v60 }
 0x4d9   : > { %4344 = vst [vmem:[%s7251_s10 + $0x210] sm:$0xff] %v4216_v52  ;;  %v2961_v23 = vpop.f32.mrf.mxu2  ;;  %v3130_v9 = vpop.f32.mrf.mxu3 }
 0x4da   : > { %4343 = vst [vmem:[%s7251_s10 + $0x20c] sm:$0xf] %v4215_v58  ;;  %v3131_v41 = vadd.f32 %v3130_v9, %v2961_v23  ;;  %v2794_v11 = vpop.f32.mrf.mxu1  ;;  %v3301_v25 = vpop.f32.mrf.mxu0 }
 0x4db   : > { %v2795_v34 = vadd.f32 %v2794_v11, %v8435_v54  ;;  %v8446_v54 = vld [vmem:[#allocation61_spill] sm:$0xff] }
 0x4dc   : > { %v3300_v21 = vadd.f32 %v3299_v46, %v3131_v41 }
 0x4dd   : > { %v4072_v17 = vadd.f32 %v7235_v6, %v2795_v34 }
 0x4de   : > { %v4070_v27 = vadd.f32 %v7254_v62, %v3300_v21 }
 0x4df   : > { %v4218_v30 = vpack.c.bf16 %v4072_v17, %v4071_v49  ;;  %v4083_v49 = vadd.f32 %v7233_v37, %v8447_v57 }
 0x4e0   : > { %v4217_v4 = vpack.c.bf16 %v4070_v27, %v4070_v27 }
 0x4e1   : > { %4346 = vst [vmem:[%s7251_s10 + $0x21c] sm:$0xff] %v4218_v30  ;;  %v2963_v28 = vpop.f32.mrf.mxu2  ;;  %v3132_v31 = vpop.f32.mrf.mxu3 }
 0x4e2   : > { %4345 = vst [vmem:[%s7251_s10 + $0x218] sm:$0xf] %v4217_v4  ;;  %v3133_v20 = vadd.f32 %v3132_v31, %v2963_v28  ;;  %v2797_v13 = vpop.f32.mrf.mxu1  ;;  %v3304_v8 = vpop.f32.mrf.mxu0 }
 0x4e3   : > { %v2798_v2 = vadd.f32 %v2797_v13, %v8437_v35  ;;  %v8448_v35 = vld [vmem:[#allocation65_spill] sm:$0xff] }
 0x4e4   : > { %v3302_v3 = vadd.f32 %v3301_v25, %v3133_v20 }
 0x4e5   : > { %v4075_v24 = vadd.f32 %v7235_v6, %v2798_v2  ;;  %2836 = vmatmul.bf16.gmra.mxu1 %v8439_v19  ;;  %3343 = vmatmul.bf16.gmra.mxu0 %v8439_v19 }
 0x4e6   : > { %v4073_v42 = vadd.f32 %v7254_v62, %v3302_v3  ;;  %3005 = vmatmul.bf16.gmra.mxu2 %v8440_v14  ;;  %3174 = vmatmul.bf16.gmra.mxu3 %v8441_v45 }
 0x4e7   : > { %v4220_v39 = vpack.c.bf16 %v4075_v24, %v4074_v1  ;;  %v4086_v1 = vadd.f32 %v7233_v37, %v8449_v10 }
 0x4e8   : > { %v4219_v15 = vpack.c.bf16 %v4073_v42, %v4073_v42 }
 0x4e9   : > { %4348 = vst [vmem:[%s7251_s10 + $0x228] sm:$0xff] %v4220_v39  ;;  %v2966_v40 = vpop.f32.mrf.mxu2  ;;  %v3135_v32 = vpop.f32.mrf.mxu3 }
 0x4ea   : > { %4347 = vst [vmem:[%s7251_s10 + $0x224] sm:$0xf] %v4219_v15  ;;  %v3136_v59 = vadd.f32 %v3135_v32, %v2966_v40  ;;  %v2799_v36 = vpop.f32.mrf.mxu1  ;;  %v3306_v16 = vpop.f32.mrf.mxu0 }
 0x4eb   : > { %v2800_v50 = vadd.f32 %v2799_v36, %v8442_v43  ;;  %v8451_v43 = vld [vmem:[#allocation30_spill] sm:$0xff] }
 0x4ec   : > { %v3305_v56 = vadd.f32 %v3304_v8, %v3136_v59  ;;  %v8450_v59 = vld [vmem:[#allocation64_spill] sm:$0xff] }
 0x4ed   : > { %v4078_v22 = vadd.f32 %v7235_v6, %v2800_v50  ;;  %v4089_v50 = vadd.f32 %v7233_v37, %v8451_v43 }
 0x4ee   : > { %v4076_v26 = vadd.f32 %v7254_v62, %v3305_v56 }
 0x4ef   : > { %v4222_v61 = vpack.c.bf16 %v4078_v22, %v4077_v33 }
 0x4f0   : > { %v4221_v18 = vpack.c.bf16 %v4076_v26, %v4076_v26 }
 0x4f1   : > { %4350 = vst [vmem:[%s7251_s10 + $0x234] sm:$0xff] %v4222_v61  ;;  %v2968_v63 = vpop.f32.mrf.mxu2  ;;  %v3137_v12 = vpop.f32.mrf.mxu3 }
 0x4f2   : > { %4349 = vst [vmem:[%s7251_s10 + $0x230] sm:$0xf] %v4221_v18  ;;  %v3138_v46 = vadd.f32 %v3137_v12, %v2968_v63  ;;  %v2802_v48 = vpop.f32.mrf.mxu1  ;;  %v3309_v51 = vpop.f32.mrf.mxu0 }
 0x4f3   : > { %v2803_v38 = vadd.f32 %v2802_v48, %v8444_v0  ;;  %v8453_v0 = vld [vmem:[#allocation67_spill] sm:$0xff] }
 0x4f4   : > { %v3307_v47 = vadd.f32 %v3306_v16, %v3138_v46  ;;  %v8452_v46 = vld [vmem:[#allocation69_spill] sm:$0xff] }
 0x4f5   : > { %v4081_v29 = vadd.f32 %v7235_v6, %v2803_v38  ;;  %v4092_v38 = vadd.f32 %v7233_v37, %v8453_v0 }
 0x4f6   : > { %v4079_v44 = vadd.f32 %v7254_v62, %v3307_v47 }
 0x4f7   : > { %v4224_v52 = vpack.c.bf16 %v4081_v29, %v4080_v55 }
 0x4f8   : > { %v4223_v58 = vpack.c.bf16 %v4079_v44, %v4079_v44 }
 0x4f9   : > { %4352 = vst [vmem:[%s7251_s10 + $0x240] sm:$0xff] %v4224_v52  ;;  %v2971_v23 = vpop.f32.mrf.mxu2  ;;  %v3140_v9 = vpop.f32.mrf.mxu3 }
 0x4fa   : > { %4351 = vst [vmem:[%s7251_s10 + $0x23c] sm:$0xf] %v4223_v58  ;;  %v3141_v41 = vadd.f32 %v3140_v9, %v2971_v23  ;;  %v2804_v11 = vpop.f32.mrf.mxu1  ;;  %v3311_v25 = vpop.f32.mrf.mxu0 }
 0x4fb   : > { %v2805_v34 = vadd.f32 %v2804_v11, %v8446_v54  ;;  %v8455_v54 = vld [vmem:[#allocation71_spill] sm:$0xff] }
 0x4fc   : > { %v3310_v21 = vadd.f32 %v3309_v51, %v3141_v41  ;;  %v8454_v41 = vld [vmem:[#allocation34_spill] sm:$0xff] }
 0x4fd   : > { %v4084_v17 = vadd.f32 %v7235_v6, %v2805_v34  ;;  %v4095_v34 = vadd.f32 %v7233_v37, %v8455_v54 }
 0x4fe   : > { %v4082_v27 = vadd.f32 %v7254_v62, %v3310_v21 }
 0x4ff   : > { %v4226_v30 = vpack.c.bf16 %v4084_v17, %v4083_v49 }
 0x500   : > { %v4225_v4 = vpack.c.bf16 %v4082_v27, %v4082_v27 }
 0x501   : > { %4354 = vst [vmem:[%s7251_s10 + $0x24c] sm:$0xff] %v4226_v30  ;;  %v2973_v28 = vpop.f32.mrf.mxu2  ;;  %v3142_v31 = vpop.f32.mrf.mxu3 }
 0x502   : > { %4353 = vst [vmem:[%s7251_s10 + $0x248] sm:$0xf] %v4225_v4  ;;  %v3143_v20 = vadd.f32 %v3142_v31, %v2973_v28  ;;  %v2807_v13 = vpop.f32.mrf.mxu1  ;;  %v3314_v8 = vpop.f32.mrf.mxu0 }
 0x503   : > { %v2808_v2 = vadd.f32 %v2807_v13, %v8448_v35  ;;  %v8457_v35 = vld [vmem:[#allocation70_spill] sm:$0xff] }
 0x504   : > { %v3312_v3 = vadd.f32 %v3311_v25, %v3143_v20  ;;  %v8456_v20 = vld [vmem:[#allocation73_spill] sm:$0xff] }
 0x505   : > { %v4087_v24 = vadd.f32 %v7235_v6, %v2808_v2  ;;  %v4098_v2 = vadd.f32 %v7233_v37, %v8457_v35 }
 0x506   : > { %v4085_v19 = vadd.f32 %v7254_v62, %v3312_v3 }
 0x507   : > { %v4228_v42 = vpack.c.bf16 %v4087_v24, %v4086_v1 }
 0x508   : > { %v4227_v14 = vpack.c.bf16 %v4085_v19, %v4085_v19 }
 0x509   : > { %4356 = vst [vmem:[%s7251_s10 + $0x258] sm:$0xff] %v4228_v42  ;;  %v2976_v45 = vpop.f32.mrf.mxu2  ;;  %v3145_v39 = vpop.f32.mrf.mxu3 }
 0x50a   : > { %4355 = vst [vmem:[%s7251_s10 + $0x254] sm:$0xf] %v4227_v14  ;;  %v3146_v15 = vadd.f32 %v3145_v39, %v2976_v45  ;;  %v2809_v40 = vpop.f32.mrf.mxu1  ;;  %v3316_v32 = vpop.f32.mrf.mxu0 }
 0x50b   : > { %v2810_v36 = vadd.f32 %v2809_v40, %v8450_v59  ;;  %v8459_v59 = vld [vmem:[#allocation75_spill] sm:$0xff] }
 0x50c   : > { %v3315_v16 = vadd.f32 %v3314_v8, %v3146_v15  ;;  %v8458_v15 = vld [vmem:[#allocation77_spill] sm:$0xff] }
 0x50d   : > { %v4090_v56 = vadd.f32 %v7235_v6, %v2810_v36  ;;  %v4101_v36 = vadd.f32 %v7233_v37, %v8459_v59 }
 0x50e   : > { %v4088_v53 = vadd.f32 %v7254_v62, %v3315_v16 }
 0x50f   : > { %v4230_v33 = vpack.c.bf16 %v4090_v56, %v4089_v50 }
 0x510   : > { %v4229_v22 = vpack.c.bf16 %v4088_v53, %v4088_v53 }
 0x511   : > { %4358 = vst [vmem:[%s7251_s10 + $0x264] sm:$0xff] %v4230_v33  ;;  %v2978_v26 = vpop.f32.mrf.mxu2  ;;  %v3147_v61 = vpop.f32.mrf.mxu3 }
 0x512   : > { %4357 = vst [vmem:[%s7251_s10 + $0x260] sm:$0xf] %v4229_v22  ;;  %v3148_v18 = vadd.f32 %v3147_v61, %v2978_v26  ;;  %v2812_v63 = vpop.f32.mrf.mxu1  ;;  %v3319_v12 = vpop.f32.mrf.mxu0 }
 0x513   : > { %v2813_v48 = vadd.f32 %v2812_v63, %v8452_v46  ;;  %v8461_v46 = vld [vmem:[#allocation38_spill] sm:$0xff] }
 0x514   : > { %v3317_v51 = vadd.f32 %v3316_v32, %v3148_v18  ;;  %v8460_v18 = vld [vmem:[#allocation76_spill] sm:$0xff] }
 0x515   : > { %v4093_v47 = vadd.f32 %v7235_v6, %v2813_v48  ;;  %v4104_v48 = vadd.f32 %v7233_v37, %v8461_v46 }
 0x516   : > { %v4091_v60 = vadd.f32 %v7254_v62, %v3317_v51 }
 0x517   : > { %v4232_v55 = vpack.c.bf16 %v4093_v47, %v4092_v38 }
 0x518   : > { %v4231_v29 = vpack.c.bf16 %v4091_v60, %v4091_v60 }
 0x519   : > { %4360 = vst [vmem:[%s7251_s10 + $0x270] sm:$0xff] %v4232_v55  ;;  %v2981_v44 = vpop.f32.mrf.mxu2  ;;  %v3150_v52 = vpop.f32.mrf.mxu3 }
 0x51a   : > { %4359 = vst [vmem:[%s7251_s10 + $0x26c] sm:$0xf] %v4231_v29  ;;  %v3151_v58 = vadd.f32 %v3150_v52, %v2981_v44  ;;  %v2814_v23 = vpop.f32.mrf.mxu1  ;;  %v3321_v9 = vpop.f32.mrf.mxu0 }
 0x51b   : > { %v2815_v11 = vadd.f32 %v2814_v23, %v8454_v41  ;;  %v8463_v41 = vld [vmem:[#allocation79_spill] sm:$0xff] }
 0x51c   : > { %v3320_v25 = vadd.f32 %v3319_v12, %v3151_v58  ;;  %v8462_v58 = vld [vmem:[#allocation81_spill] sm:$0xff] }
 0x51d   : > { %v4096_v21 = vadd.f32 %v7235_v6, %v2815_v11  ;;  %v4107_v11 = vadd.f32 %v7233_v37, %v8463_v41 }
 0x51e   : > { %v4094_v57 = vadd.f32 %v7254_v62, %v3320_v25 }
 0x51f   : > { %v4234_v49 = vpack.c.bf16 %v4096_v21, %v4095_v34 }
 0x520   : > { %v4233_v17 = vpack.c.bf16 %v4094_v57, %v4094_v57 }
 0x521   : > { %4362 = vst [vmem:[%s7251_s10 + $0x27c] sm:$0xff] %v4234_v49  ;;  %v2983_v27 = vpop.f32.mrf.mxu2  ;;  %v3152_v30 = vpop.f32.mrf.mxu3 }
 0x522   : > { %4361 = vst [vmem:[%s7251_s10 + $0x278] sm:$0xf] %v4233_v17  ;;  %v3153_v4 = vadd.f32 %v3152_v30, %v2983_v27  ;;  %v2817_v28 = vpop.f32.mrf.mxu1  ;;  %v3324_v31 = vpop.f32.mrf.mxu0 }
 0x523   : > { %v2818_v13 = vadd.f32 %v2817_v28, %v8456_v20 }
 0x524   : > { %v3322_v8 = vadd.f32 %v3321_v9, %v3153_v4 }
 0x525   : > { %v4099_v3 = vadd.f32 %v7235_v6, %v2818_v13 }
 0x526   : > { %v4097_v10 = vadd.f32 %v7254_v62, %v3322_v8 }
 0x527   : > { %v4236_v1 = vpack.c.bf16 %v4099_v3, %v4098_v2 }
 0x528   : > { %v4235_v24 = vpack.c.bf16 %v4097_v10, %v4097_v10 }
 0x529   : > { %4364 = vst [vmem:[%s7251_s10 + $0x288] sm:$0xff] %v4236_v1  ;;  %v2986_v19 = vpop.f32.mrf.mxu2  ;;  %v3155_v42 = vpop.f32.mrf.mxu3 }
 0x52a   : > { %4363 = vst [vmem:[%s7251_s10 + $0x284] sm:$0xf] %v4235_v24  ;;  %v3156_v14 = vadd.f32 %v3155_v42, %v2986_v19  ;;  %v2819_v45 = vpop.f32.mrf.mxu1  ;;  %v3326_v39 = vpop.f32.mrf.mxu0 }
 0x52b   : > { %v2820_v40 = vadd.f32 %v2819_v45, %v8458_v15 }
 0x52c   : > { %v3325_v32 = vadd.f32 %v3324_v31, %v3156_v14  ;;  %v4110_v31 = vadd.f32 %v7233_v37, %v7197_v5  ;;  %v8465_v14 = vld [vmem:[#allocation83_spill] sm:$0xff] }
 0x52d   : > { %v4102_v16 = vadd.f32 %v7235_v6, %v2820_v40  ;;  %v4113_v5 = vadd.f32 %v7233_v37, %v8465_v14 }
 0x52e   : > { %v4100_v43 = vadd.f32 %v7254_v62, %v3325_v32 }
 0x52f   : > { %v4238_v50 = vpack.c.bf16 %v4102_v16, %v4101_v36 }
 0x530   : > { %v4237_v56 = vpack.c.bf16 %v4100_v43, %v4100_v43  ;;  %v8466_v43 = vld [vmem:[#allocation85_spill] sm:$0xff] }
 0x531   : > { %4366 = vst [vmem:[%s7251_s10 + $0x294] sm:$0xff] %v4238_v50  ;;  %v2988_v53 = vpop.f32.mrf.mxu2  ;;  %v3157_v33 = vpop.f32.mrf.mxu3 }
 0x532   : > { %4365 = vst [vmem:[%s7251_s10 + $0x290] sm:$0xf] %v4237_v56  ;;  %v3158_v22 = vadd.f32 %v3157_v33, %v2988_v53  ;;  %v2822_v26 = vpop.f32.mrf.mxu1  ;;  %v3329_v61 = vpop.f32.mrf.mxu0  ;;  %v8467_v33 = vld [vmem:[#allocation82_spill] sm:$0xff] }
 0x533   : > { %v2823_v63 = vadd.f32 %v2822_v26, %v8460_v18 }
 0x534   : > { %v3327_v12 = vadd.f32 %v3326_v39, %v3158_v22  ;;  %v4116_v22 = vadd.f32 %v7233_v37, %v8467_v33 }
 0x535   : > { %v4105_v51 = vadd.f32 %v7235_v6, %v2823_v63 }
 0x536   : > { %v4103_v0 = vadd.f32 %v7254_v62, %v3327_v12 }
 0x537   : > { %v4240_v38 = vpack.c.bf16 %v4105_v51, %v4104_v48 }
 0x538   : > { %v4239_v47 = vpack.c.bf16 %v4103_v0, %v4103_v0  ;;  %v8468_v0 = vld [vmem:[#allocation89_spill] sm:$0xff] }
 0x539   : > { %4368 = vst [vmem:[%s7251_s10 + $0x2a0] sm:$0xff] %v4240_v38  ;;  %v2991_v60 = vpop.f32.mrf.mxu2  ;;  %v3160_v55 = vpop.f32.mrf.mxu3 }
 0x53a   : > { %4367 = vst [vmem:[%s7251_s10 + $0x29c] sm:$0xf] %v4239_v47  ;;  %v3161_v29 = vadd.f32 %v3160_v55, %v2991_v60  ;;  %v2824_v44 = vpop.f32.mrf.mxu1  ;;  %v3331_v52 = vpop.f32.mrf.mxu0  ;;  %v8469_v60 = vld [vmem:[#allocation87_spill] sm:$0xff] }
 0x53b   : > { %v2825_v23 = vadd.f32 %v2824_v44, %v8462_v58  ;;  %v4119_v55 = vadd.f32 %v7233_v37, %v8469_v60 }
 0x53c   : > { %v3330_v9 = vadd.f32 %v3329_v61, %v3161_v29 }
 0x53d   : > { %v4108_v25 = vadd.f32 %v7235_v6, %v2825_v23 }
 0x53e   : > { %v4106_v54 = vadd.f32 %v7254_v62, %v3330_v9 }
 0x53f   : > { %v4242_v34 = vpack.c.bf16 %v4108_v25, %v4107_v11 }
 0x540   : > { %v4241_v21 = vpack.c.bf16 %v4106_v54, %v4106_v54  ;;  %v8471_v54 = vld [vmem:[#allocation88_spill] sm:$0xff] }
 0x541   : > { %4370 = vst [vmem:[%s7251_s10 + $0x2ac] sm:$0xff] %v4242_v34  ;;  %v2993_v57 = vpop.f32.mrf.mxu2  ;;  %v3162_v49 = vpop.f32.mrf.mxu3 }
 0x542   : > { %4369 = vst [vmem:[%s7251_s10 + $0x2a8] sm:$0xf] %v4241_v21  ;;  %v3163_v17 = vadd.f32 %v3162_v49, %v2993_v57  ;;  %v2827_v27 = vpop.f32.mrf.mxu1  ;;  %v3334_v30 = vpop.f32.mrf.mxu0  ;;  %v8472_v57 = vld [vmem:[#allocation46_spill] sm:$0xff] }
 0x543   : > { %v2828_v4 = vadd.f32 %v2827_v27, %v7199_v7  ;;  %v8464_v7 = vld [vmem:[#allocation42_spill] sm:$0xff]  ;;  %v4122_v49 = vadd.f32 %v7233_v37, %v8472_v57 }
 0x544   : > { %v3332_v28 = vadd.f32 %v3331_v52, %v3163_v17 }
 0x545   : > { %v4111_v20 = vadd.f32 %v7235_v6, %v2828_v4 }
 0x546   : > { %v4109_v13 = vadd.f32 %v7254_v62, %v3332_v28 }
 0x547   : > { %v4244_v8 = vpack.c.bf16 %v4111_v20, %v4110_v31 }
 0x548   : > { %v4243_v35 = vpack.c.bf16 %v4109_v13, %v4109_v13 }
 0x549   : > { %4372 = vst [vmem:[%s7251_s10 + $0x2b8] sm:$0xff] %v4244_v8  ;;  %v2996_v2 = vpop.f32.mrf.mxu2  ;;  %v3165_v3 = vpop.f32.mrf.mxu3 }
 0x54a   : > { %4371 = vst [vmem:[%s7251_s10 + $0x2b4] sm:$0xf] %v4243_v35  ;;  %v3166_v10 = vadd.f32 %v3165_v3, %v2996_v2  ;;  %v2829_v1 = vpop.f32.mrf.mxu1  ;;  %v3336_v24 = vpop.f32.mrf.mxu0  ;;  %v8473_v35 = vld [vmem:[#allocation93_spill] sm:$0xff] }
 0x54b   : > { %v2830_v19 = vadd.f32 %v2829_v1, %v8464_v7 }
 0x54c   : > { %v3335_v42 = vadd.f32 %v3334_v30, %v3166_v10  ;;  %v8474_v10 = vld [vmem:[#allocation91_spill] sm:$0xff] }
 0x54d   : > { %v4114_v45 = vadd.f32 %v7235_v6, %v2830_v19  ;;  %v4125_v1 = vadd.f32 %v7233_v37, %v8474_v10 }
 0x54e   : > { %v4112_v39 = vadd.f32 %v7254_v62, %v3335_v42 }
 0x54f   : > { %v4246_v15 = vpack.c.bf16 %v4114_v45, %v4113_v5 }
 0x550   : > { %v4245_v40 = vpack.c.bf16 %v4112_v39, %v4112_v39 }
 0x551   : > { %4374 = vst [vmem:[%s7251_s10 + $0x2c4] sm:$0xff] %v4246_v15  ;;  %v2998_v32 = vpop.f32.mrf.mxu2  ;;  %v3167_v59 = vpop.f32.mrf.mxu3 }
 0x552   : > { %4373 = vst [vmem:[%s7251_s10 + $0x2c0] sm:$0xf] %v4245_v40  ;;  %v3168_v36 = vadd.f32 %v3167_v59, %v2998_v32  ;;  %v2832_v16 = vpop.f32.mrf.mxu1  ;;  %v3339_v53 = vpop.f32.mrf.mxu0 }
 0x553   : > { %v2833_v50 = vadd.f32 %v2832_v16, %v8466_v43 }
 0x554   : > { %v3337_v56 = vadd.f32 %v3336_v24, %v3168_v36 }
 0x555   : > { %v4117_v26 = vadd.f32 %v7235_v6, %v2833_v50 }
 0x556   : > { %v4115_v61 = vadd.f32 %v7254_v62, %v3337_v56 }
 0x557   : > { %v4248_v18 = vpack.c.bf16 %v4117_v26, %v4116_v22 }
 0x558   : > { %v4247_v63 = vpack.c.bf16 %v4115_v61, %v4115_v61 }
 0x559   : > { %4376 = vst [vmem:[%s7251_s10 + $0x2d0] sm:$0xff] %v4248_v18  ;;  %v3001_v12 = vpop.f32.mrf.mxu2  ;;  %v3170_v46 = vpop.f32.mrf.mxu3 }
 0x55a   : > { %4375 = vst [vmem:[%s7251_s10 + $0x2cc] sm:$0xf] %v4247_v63  ;;  %v3171_v48 = vadd.f32 %v3170_v46, %v3001_v12  ;;  %v2834_v51 = vpop.f32.mrf.mxu1  ;;  %v3341_v52 = vpop.f32.mrf.mxu0 }
 0x55b   : > { %v2835_v38 = vadd.f32 %v2834_v51, %v8468_v0 }
 0x55c   : > { %v3340_v47 = vadd.f32 %v3339_v53, %v3171_v48 }
 0x55d   : > { %v4120_v29 = vadd.f32 %v7235_v6, %v2835_v38 }
 0x55e   : > { %v4118_v44 = vadd.f32 %v7254_v62, %v3340_v47 }
 0x55f   : > { %v4250_v58 = vpack.c.bf16 %v4120_v29, %v4119_v55 }
 0x560   : > { %v4249_v23 = vpack.c.bf16 %v4118_v44, %v4118_v44 }
 0x561   : > { %4378 = vst [vmem:[%s7251_s10 + $0x2dc] sm:$0xff] %v4250_v58  ;;  %v3003_v9 = vpop.f32.mrf.mxu2  ;;  %v3172_v41 = vpop.f32.mrf.mxu3 }
 0x562   : > { %4377 = vst [vmem:[%s7251_s10 + $0x2d8] sm:$0xf] %v4249_v23  ;;  %v3173_v11 = vadd.f32 %v3172_v41, %v3003_v9  ;;  %v2837_v25 = vpop.f32.mrf.mxu1  ;;  %v3344_v28 = vpop.f32.mrf.mxu0 }
 0x563   : > { %v2838_v34 = vadd.f32 %v2837_v25, %v8471_v54 }
 0x564   : > { %v3342_v21 = vadd.f32 %v3341_v52, %v3173_v11 }
 0x565   : > { %v4123_v17 = vadd.f32 %v7235_v6, %v2838_v34 }
 0x566   : > { %v4121_v27 = vadd.f32 %v7254_v62, %v3342_v21 }
 0x567   : > { %v4252_v30 = vpack.c.bf16 %v4123_v17, %v4122_v49 }
 0x568   : > { %v4251_v4 = vpack.c.bf16 %v4121_v27, %v4121_v27 }
 0x569   : > { %4380 = vst [vmem:[%s7251_s10 + $0x2e8] sm:$0xff] %v4252_v30  ;;  %v3006_v31 = vpop.f32.mrf.mxu2  ;;  %v3175_v20 = vpop.f32.mrf.mxu3 }
 0x56a   : > { %4379 = vst [vmem:[%s7251_s10 + $0x2e4] sm:$0xf] %v4251_v4  ;;  %v3176_v13 = vadd.f32 %v3175_v20, %v3006_v31  ;;  %v2839_v8 = vpop.f32.mrf.mxu1  ;;  %v3346_v37 = vpop.f32.mrf.mxu0 }
 0x56b   : > { %v2840_v2 = vadd.f32 %v2839_v8, %v8473_v35 }
 0x56c   : > { %v3345_v3 = vadd.f32 %v3344_v28, %v3176_v13 }
 0x56d   : > { %v4126_v24 = vadd.f32 %v7235_v6, %v2840_v2 }
 0x56e   : > { %v4124_v7 = vadd.f32 %v7254_v62, %v3345_v3 }
 0x56f   : > { %v4254_v19 = vpack.c.bf16 %v4126_v24, %v4125_v1 }
 0x570   : > { %v4253_v42 = vpack.c.bf16 %v4124_v7, %v4124_v7 }
 0x571   : > { %4382 = vst [vmem:[%s7251_s10 + $0x2f4] sm:$0xff] %v4254_v19  ;;  %v3008_v14 = vpop.f32.mrf.mxu2  ;;  %v3177_v5 = vpop.f32.mrf.mxu3 }
 0x572   : > { %4381 = vst [vmem:[%s7251_s10 + $0x2f0] sm:$0xf] %v4253_v42  ;;  %v3178_v45 = vadd.f32 %v3177_v5, %v3008_v14 }
 0x574   : > { %v3347_v6 = vadd.f32 %v3346_v37, %v3178_v45 }
 0x576   : > { %v4127_v39 = vadd.f32 %v7254_v62, %v3347_v6 }
 0x578   : > { %v4255_v15 = vpack.c.bf16 %v4127_v39, %v4127_v39 }
 0x57a   : > { %4383 = vst [vmem:[%s7251_s10 + $0x2fc] sm:$0xf] %v4255_v15 }
 0x57b   : > { %5694 = shalt.err (!%p5691_p8)
}
 0x57c   : > { %s5822_s5 = smov 192   ;;  %s5823_s7 = smov 576  }
 0x57d   : > { %s5824_s8 = smov 12  }
 0x57e   : > { %5441 = dma.vmem_to_hbm [thread:$0]  (%p6016_p3), %s4403_s30, 12288, %s4405_s3, %s4385_s12, %s5822_s5, %s5823_s7, %s5824_s8  }
 0x57f PF: > { %s8477_s9 = sld [smem:[#allocation18_spill]] }
 0x580   : > { %s8478_s10 = sld [smem:[#allocation13_spill]] }
 0x585   : > { %p5458_p10 = scmp.ge.s32.totalorder %s8477_s9, 2 }
 0x586   : > { %s4419_s15 = sand.u32 1, %s8478_s10  }
 0x587   : > { %p5454_p11 = pnand %p5458_p10, %p6023_p5  ;;  %s4420_s6 = scalar_lea.sflag [#allocation5], %s4419_s15 }
 0x589   : > { %p5455_p12 = pneg %p5454_p11 }
 0x58b   : > { %5760 = dma.done.wait (%p5455_p12), %s4420_s6, 12288  }
 0x58c   : > { %5762 = vsyncadd (%p5455_p12), %s4420_s6, 4294955008  ;;  %s22_s25 = sadd.s32 1, %s8477_s9   ;;  %s8481_s21 = sld [smem:[#allocation14_spill]] }
 0x58d   : > { %p7814_p13 = scmp.ge.s32.totalorder %s22_s25, 8   ;;  %s8482_s14 = sld [smem:[#allocation23_spill]] }
 0x58e   : > { %s8483_s1 = sld [smem:[#allocation21_spill]]  ;;  %s8490_s12 = smov %s5769_s13 }
 0x58f   : > { %s8484_s29 = sld [smem:[#allocation15_spill]]  ;;  %s8492_s15 = smov %s5781_s16 }
 0x590   : > { %s8485_s20 = sld [smem:[#allocation22_spill]]  ;;  %s8493_s16 = smov %s5785_s17 }
 0x591   : > { %s8486_s22 = sld [smem:[#allocation17_spill]]  ;;  %s8495_s18 = smov %s5793_s19 }
 0x592   : > { %s8487_s4 = sld [smem:[#allocation19_spill]]  ;;  %s8491_s13 = smov %s8481_s21 }
 0x593   : > { %s8488_s24 = sld [smem:[#allocation20_spill]]  ;;  %s8497_s21 = smov %s5809_s23 }
 0x594   : > { %s8494_s17 = smov %s8483_s1  ;;  %21 = sbr.rel (!%p7814_p13) target bundleno = 16 (0x10), region = 109 }
 0x595   : > { %s8496_s19 = smov %s8484_s29 }
 0x598   : > { %s8498_s23 = smov %s8487_s4 }
 0x599   :  { %4426 = vsyncpa [#allocation4], 1 }
 0x59a   :  { %4428 = vsyncpa [#allocation4 + $0x1], 1 }
 0x59b   :  { %4429 = vsyncpa [#allocation7], 1 }
 0x59c   :  { %4431 = vsyncpa [#allocation7 + $0x1], 1 }
 0x59d   :  { %4432 = vsyncpa [#allocation5], 1 }
 0x59e   :  { %4434 = vsyncpa [#allocation5 + $0x1], 1 }

</bundles_post_ra>
